<compile_context>
chip_gen: v7x
topology: tpu7x:2x2x1
jax: 0.10.0
libtpu: 0.0.40
codegen_flags: <defaults>
</compile_context>

<pallas_src>
import jax
import jax.numpy as jnp
from jax.experimental import pallas as pl
from jax.experimental.pallas import tpu as pltpu

KS = 3          # kernel size
PAD = 1         # padding
STRIDE = 1      # stride (only 1 supported by this kernel)
BN_EPS = 1e-5
LANE = 128      # TPU lane width


def _round_up(x, m):
    return (x + m - 1) // m * m


def _conv3x3_bn_relu(xpad, w_flat, scale, shift):
    """3x3 conv (s=1) + folded-BN affine + ReLU from a zero-padded activation.

    xpad   : (H+2, W+2, C) f32 value (loaded from a VMEM scratch)
    w_flat : (9*C, Cout) bf16, tap-major (dy, dx, cin)
    scale, shift : (Cout,) f32
    returns (H*W, Cout) f32
    """
    Hp, Wp, C = xpad.shape
    H, W = Hp - 2 * PAD, Wp - 2 * PAD
    # im2col: build one (H*W, 9*C) patch matrix -> a single MXU matmul.
    cols = []
    for dy in range(KS):
        for dx in range(KS):
            cols.append(xpad[dy:dy + H, dx:dx + W, :].reshape(H * W, C))
    patches = jnp.concatenate(cols, axis=-1).astype(jnp.bfloat16)
    acc = jnp.dot(patches, w_flat, preferred_element_type=jnp.float32)
    y = acc * scale + shift                 # folded BN affine + conv bias (f32)
    return jnp.maximum(y, 0.0)              # ReLU


def _unet_conv2_kernel(x_ref, w1_ref, s1_ref, b1_ref, w2_ref, s2_ref, b2_ref,
                       o_ref, xpad_ref, midpad_ref):
    """Fused (conv3x3 -> BN -> ReLU) x 2 for one batch element.

    x_ref   : (1, H, W, Cin)        bf16 input block
    w1_ref  : (9*Cin, C1)           bf16
    s1_ref, b1_ref : (1, C1)        f32 folded BN scale / shift (layer 1)
    w2_ref  : (9*C1, C2p)           bf16 (out channels zero-padded to 128 lanes)
    s2_ref, b2_ref : (1, C2p)       f32
    o_ref   : (1, H*W, C2p)         f32 lane-dense output block
    xpad_ref   : VMEM (H+2, W+2, Cin) f32 scratch (zero-padded input)
    midpad_ref : VMEM (H+2, W+2, C1)  f32 scratch (zero-padded intermediate)
    """
    H, W = x_ref.shape[1], x_ref.shape[2]
    C1 = s1_ref.shape[1]

    # ---- Layer 1: zero-pad the input inside VMEM (no HBM-side jnp.pad). ----
    xpad_ref[...] = jnp.zeros_like(xpad_ref)
    xpad_ref[pl.ds(PAD, H), pl.ds(PAD, W), :] = x_ref[0].astype(jnp.float32)
    y1 = _conv3x3_bn_relu(xpad_ref[...], w1_ref[...], s1_ref[0], b1_ref[0])

    # ---- Layer 2: intermediate stays in VMEM, never touches HBM. ----
    midpad_ref[...] = jnp.zeros_like(midpad_ref)
    midpad_ref[pl.ds(PAD, H), pl.ds(PAD, W), :] = y1.reshape(H, W, C1)
    y2 = _conv3x3_bn_relu(midpad_ref[...], w2_ref[...], s2_ref[0], b2_ref[0])

    # Lane-dense store: (H*W, C2p) with C2p a multiple of 128 -> unmasked vst.
    o_ref[0] = y2.astype(o_ref.dtype)


def unet_conv2_fused(x_nhwc_bf16, w1_flat, s1, b1, w2_flat, s2, b2):
    """x: (N,H,W,Cin) bf16; returns (N, H*W, C2p) f32 (C2p lane-padded)."""
    N, H, W, Cin = x_nhwc_bf16.shape
    C1 = w1_flat.shape[1]
    C2p = w2_flat.shape[1]
    Hp, Wp = H + 2 * PAD, W + 2 * PAD

    return pl.pallas_call(
        _unet_conv2_kernel,
        out_shape=jax.ShapeDtypeStruct((N, H * W, C2p), jnp.float32),
        grid_spec=pltpu.PrefetchScalarGridSpec(
            num_scalar_prefetch=0,
            grid=(N,),
            in_specs=[
                pl.BlockSpec((1, H, W, Cin), lambda n: (n, 0, 0, 0)),
                pl.BlockSpec((KS * KS * Cin, C1), lambda n: (0, 0)),
                pl.BlockSpec((1, C1), lambda n: (0, 0)),
                pl.BlockSpec((1, C1), lambda n: (0, 0)),
                pl.BlockSpec((KS * KS * C1, C2p), lambda n: (0, 0)),
                pl.BlockSpec((1, C2p), lambda n: (0, 0)),
                pl.BlockSpec((1, C2p), lambda n: (0, 0)),
            ],
            out_specs=pl.BlockSpec((1, H * W, C2p), lambda n: (n, 0, 0)),
            scratch_shapes=[
                pltpu.VMEM((Hp, Wp, Cin), jnp.float32),
                pltpu.VMEM((Hp, Wp, C1), jnp.float32),
            ],
        ),
        compiler_params=pltpu.CompilerParams(
            dimension_semantics=("parallel",),
            vmem_limit_bytes=32 * 1024 * 1024,
        ),
    )(x_nhwc_bf16, w1_flat, s1, b1, w2_flat, s2, b2)


def fold_bn(p):
    """Fold conv bias + eval-mode BN into per-channel (scale, shift)."""
    scale = p["gamma"] / jnp.sqrt(p["var"] + BN_EPS)
    shift = (p["b"] - p["mean"]) * scale + p["beta"]
    return scale.astype(jnp.float32), shift.astype(jnp.float32)


def _prep_layer(p, pad_out_to=None):
    """OIHW conv weight + BN stats -> (flat bf16 weight, f32 scale, f32 shift)."""
    w_hwio = jnp.transpose(p["w"], (2, 3, 1, 0))            # OIHW -> HWIO
    kh, kw, cin, cout = w_hwio.shape
    w_flat = w_hwio.reshape(kh * kw * cin, cout)
    scale, shift = fold_bn(p)
    if pad_out_to is not None and pad_out_to > cout:
        pad = pad_out_to - cout
        w_flat = jnp.pad(w_flat, ((0, 0), (0, pad)))        # zero channels -> 0
        scale = jnp.pad(scale, (0, pad))
        shift = jnp.pad(shift, (0, pad))
    return (w_flat.astype(jnp.bfloat16),
            scale.reshape(1, -1), shift.reshape(1, -1))


def unet_conv2_forward(x_nchw, params_list):
    """UnetConv2.forward: n=2 blocks of Conv -> BN(eval) -> ReLU. NCHW in/out."""
    assert len(params_list) == 2, "fused kernel implements the default n=2"
    N, _, H, W = x_nchw.shape
    c2 = params_list[1]["w"].shape[0]
    c2p = _round_up(c2, LANE)                               # lane-dense output

    # TODO(synk): if this block is chained inside a larger NHWC model, keep
    #             NHWC end-to-end and drop these two transposes.
    x = jnp.transpose(x_nchw, (0, 2, 3, 1)).astype(jnp.bfloat16)   # NCHW->NHWC
    w1, s1, b1 = _prep_layer(params_list[0])
    w2, s2, b2 = _prep_layer(params_list[1], pad_out_to=c2p)

    out = unet_conv2_fused(x, w1, s1, b1, w2, s2, b2)       # (N, H*W, c2p) f32
    out = out[:, :, :c2].reshape(N, H, W, c2)
    return jnp.transpose(out, (0, 3, 1, 2))                 # NHWC -> NCHW


def init_layer_params(key, cin, cout):
    """Deterministic kaiming-style init for one Conv+BN layer."""
    kw, kb, kg, kbeta, km, kv = jax.random.split(key, 6)
    fan_in = cin * KS * KS
    std = (2.0 / fan_in) ** 0.5
    w_oihw = std * jax.random.normal(kw, (cout, cin, KS, KS), jnp.float32)
    bias = 0.1 * jax.random.normal(kb, (cout,), jnp.float32)
    gamma = 1.0 + 0.1 * jax.random.normal(kg, (cout,), jnp.float32)
    beta = 0.1 * jax.random.normal(kbeta, (cout,), jnp.float32)
    running_mean = 0.1 * jax.random.normal(km, (cout,), jnp.float32)
    running_var = 1.0 + 0.1 * jax.random.uniform(kv, (cout,), jnp.float32)
    return dict(w=w_oihw, b=bias, gamma=gamma, beta=beta,
                mean=running_mean, var=running_var)


def reference_forward(x_nchw, params_list):
    """Pure-JAX f32 reference (lax conv) for correctness check."""
    x = x_nchw
    for p in params_list:
        y = jax.lax.conv_general_dilated(
            x, p["w"], window_strides=(STRIDE, STRIDE),
            padding=((PAD, PAD), (PAD, PAD)),
            dimension_numbers=("NCHW", "OIHW", "NCHW"))
        y = y + p["b"][None, :, None, None]
        y = (y - p["mean"][None, :, None, None]) / jnp.sqrt(
            p["var"][None, :, None, None] + BN_EPS)
        y = y * p["gamma"][None, :, None, None] + p["beta"][None, :, None, None]
        x = jnp.maximum(y, 0.0)
    return x


if __name__ == "__main__":
    key = jax.random.PRNGKey(0)
    k_x, k_l1, k_l2 = jax.random.split(key, 3)

    # UnetConv2(in_size=4, out_size=8, is_batchnorm=True), n=2
    N, Cin, H, W = 2, 4, 16, 16
    Cout = 8
    x = jax.random.normal(k_x, (N, Cin, H, W), jnp.float32)
    params = [init_layer_params(k_l1, Cin, Cout),
              init_layer_params(k_l2, Cout, Cout)]

    out = unet_conv2_forward(x, params)
    out = jax.block_until_ready(out)
    assert out.shape == (N, Cout, H, W), out.shape

    # Reference sees the same bf16-quantized input/weights the kernel's MXU
    # path sees (accumulation is f32 in both); remaining delta is the bf16
    # rounding of the fused intermediate activation + accumulation order.
    x_q = x.astype(jnp.bfloat16).astype(jnp.float32)
    params_q = [dict(p, w=p["w"].astype(jnp.bfloat16).astype(jnp.float32))
                for p in params]
    ref = reference_forward(x_q, params_q)

    max_err = float(jnp.max(jnp.abs(out - ref)))
    assert jnp.allclose(out, ref, atol=3e-2, rtol=3e-2), max_err
    print("KERNEL_OK")
</pallas_src>

<mosaic_0001>
module attributes {stable_mosaic.version = 11 : i64} {
  func.func @_unet_conv2_kernel(%arg0: i32, %arg1: memref<1x16x16x4xbf16, #tpu.memory_space<vmem>>, %arg2: memref<36x8xbf16, #tpu.memory_space<vmem>>, %arg3: memref<1x8xf32, #tpu.memory_space<vmem>>, %arg4: memref<1x8xf32, #tpu.memory_space<vmem>>, %arg5: memref<72x128xbf16, #tpu.memory_space<vmem>>, %arg6: memref<1x128xf32, #tpu.memory_space<vmem>>, %arg7: memref<1x128xf32, #tpu.memory_space<vmem>>, %arg8: memref<1x256x128xf32, #tpu.memory_space<vmem>>, %arg9: memref<18x18x4xf32, #tpu.memory_space<vmem>>, %arg10: memref<18x18x8xf32, #tpu.memory_space<vmem>>) attributes {dimension_semantics = [#tpu.dimension_semantics<parallel>], iteration_bounds = array<i64: 2>, scalar_prefetch = 0 : i64, scratch_operands = 2 : i64, tpu.core_type = #tpu.core_type<tc>, window_params = [{transform_indices = @transform_0, window_bounds = array<i64: 1, 16, 16, 4>}, {pipeline_mode = #tpu.pipeline_mode<synchronous>, transform_indices = @transform_1, window_bounds = array<i64: 36, 8>}, {pipeline_mode = #tpu.pipeline_mode<synchronous>, transform_indices = @transform_2, window_bounds = array<i64: 1, 8>}, {pipeline_mode = #tpu.pipeline_mode<synchronous>, transform_indices = @transform_3, window_bounds = array<i64: 1, 8>}, {pipeline_mode = #tpu.pipeline_mode<synchronous>, transform_indices = @transform_4, window_bounds = array<i64: 72, 128>}, {pipeline_mode = #tpu.pipeline_mode<synchronous>, transform_indices = @transform_5, window_bounds = array<i64: 1, 128>}, {pipeline_mode = #tpu.pipeline_mode<synchronous>, transform_indices = @transform_6, window_bounds = array<i64: 1, 128>}, {transform_indices = @transform_7, window_bounds = array<i64: 1, 256, 128>}]} {
    %cst = arith.constant 0.000000e+00 : f32
    %0 = vector.broadcast %cst : f32 to vector<18x18x4xf32>
    %c0 = arith.constant 0 : index
    %c0_0 = arith.constant 0 : index
    %c0_1 = arith.constant 0 : index
    %1 = vector.load %arg9[%c0, %c0_0, %c0_1] : memref<18x18x4xf32, #tpu.memory_space<vmem>>, vector<18x18x4xf32>
    tpu.vector_store %arg9[%c0, %c0_0, %c0_1], %0 {strides = array<i32>} : memref<18x18x4xf32, #tpu.memory_space<vmem>>, vector<18x18x4xf32>,
    %c0_2 = arith.constant 0 : index
    %c0_3 = arith.constant 0 : index
    %c0_4 = arith.constant 0 : index
    %c0_5 = arith.constant 0 : index
    %2 = vector.load %arg1[%c0_2, %c0_3, %c0_4, %c0_5] : memref<1x16x16x4xbf16, #tpu.memory_space<vmem>>, vector<1x16x16x4xbf16>
    %3 = vector.shape_cast %2 : vector<1x16x16x4xbf16> to vector<16x16x4xbf16>
    %4 = arith.extf %3 : vector<16x16x4xbf16> to vector<16x16x4xf32>
    %c1 = arith.constant 1 : index
    %c1_6 = arith.constant 1 : index
    %c0_7 = arith.constant 0 : index
    %5 = vector.load %arg9[%c1, %c1_6, %c0_7] : memref<18x18x4xf32, #tpu.memory_space<vmem>>, vector<16x16x4xf32>
    tpu.vector_store %arg9[%c1, %c1_6, %c0_7], %4 {strides = array<i32>} : memref<18x18x4xf32, #tpu.memory_space<vmem>>, vector<16x16x4xf32>,
    %c0_8 = arith.constant 0 : index
    %c0_9 = arith.constant 0 : index
    %c0_10 = arith.constant 0 : index
    %6 = vector.load %arg9[%c0_8, %c0_9, %c0_10] : memref<18x18x4xf32, #tpu.memory_space<vmem>>, vector<18x18x4xf32>
    %c0_11 = arith.constant 0 : index
    %c0_12 = arith.constant 0 : index
    %7 = vector.load %arg2[%c0_11, %c0_12] : memref<36x8xbf16, #tpu.memory_space<vmem>>, vector<36x8xbf16>
    %c0_13 = arith.constant 0 : index
    %c0_14 = arith.constant 0 : index
    %8 = vector.load %arg3[%c0_13, %c0_14] : memref<1x8xf32, #tpu.memory_space<vmem>>, vector<1x8xf32>
    %9 = vector.shape_cast %8 : vector<1x8xf32> to vector<8xf32>
    %c0_15 = arith.constant 0 : index
    %c0_16 = arith.constant 0 : index
    %10 = vector.load %arg4[%c0_15, %c0_16] : memref<1x8xf32, #tpu.memory_space<vmem>>, vector<1x8xf32>
    %11 = vector.shape_cast %10 : vector<1x8xf32> to vector<8xf32>
    %12 = vector.extract_strided_slice %6 {offsets = [0, 0, 0], sizes = [16, 16, 4], strides = [1, 1, 1]} : vector<18x18x4xf32> to vector<16x16x4xf32>
    %13 = vector.shape_cast %12 : vector<16x16x4xf32> to vector<256x4xf32>
    %14 = vector.extract_strided_slice %6 {offsets = [0, 1, 0], sizes = [16, 16, 4], strides = [1, 1, 1]} : vector<18x18x4xf32> to vector<16x16x4xf32>
    %15 = vector.shape_cast %14 : vector<16x16x4xf32> to vector<256x4xf32>
    %16 = vector.extract_strided_slice %6 {offsets = [0, 2, 0], sizes = [16, 16, 4], strides = [1, 1, 1]} : vector<18x18x4xf32> to vector<16x16x4xf32>
    %17 = vector.shape_cast %16 : vector<16x16x4xf32> to vector<256x4xf32>
    %18 = vector.extract_strided_slice %6 {offsets = [1, 0, 0], sizes = [16, 16, 4], strides = [1, 1, 1]} : vector<18x18x4xf32> to vector<16x16x4xf32>
    %19 = vector.shape_cast %18 : vector<16x16x4xf32> to vector<256x4xf32>
    %20 = vector.extract_strided_slice %6 {offsets = [1, 1, 0], sizes = [16, 16, 4], strides = [1, 1, 1]} : vector<18x18x4xf32> to vector<16x16x4xf32>
    %21 = vector.shape_cast %20 : vector<16x16x4xf32> to vector<256x4xf32>
    %22 = vector.extract_strided_slice %6 {offsets = [1, 2, 0], sizes = [16, 16, 4], strides = [1, 1, 1]} : vector<18x18x4xf32> to vector<16x16x4xf32>
    %23 = vector.shape_cast %22 : vector<16x16x4xf32> to vector<256x4xf32>
    %24 = vector.extract_strided_slice %6 {offsets = [2, 0, 0], sizes = [16, 16, 4], strides = [1, 1, 1]} : vector<18x18x4xf32> to vector<16x16x4xf32>
    %25 = vector.shape_cast %24 : vector<16x16x4xf32> to vector<256x4xf32>
    %26 = vector.extract_strided_slice %6 {offsets = [2, 1, 0], sizes = [16, 16, 4], strides = [1, 1, 1]} : vector<18x18x4xf32> to vector<16x16x4xf32>
    %27 = vector.shape_cast %26 : vector<16x16x4xf32> to vector<256x4xf32>
    %28 = vector.extract_strided_slice %6 {offsets = [2, 2, 0], sizes = [16, 16, 4], strides = [1, 1, 1]} : vector<18x18x4xf32> to vector<16x16x4xf32>
    %29 = vector.shape_cast %28 : vector<16x16x4xf32> to vector<256x4xf32>
    %30 = tpu.concatenate %13, %15, %17, %19, %21, %23, %25, %27, %29 in 1 : vector<256x4xf32>, vector<256x4xf32>, vector<256x4xf32>, vector<256x4xf32>, vector<256x4xf32>, vector<256x4xf32>, vector<256x4xf32>, vector<256x4xf32>, vector<256x4xf32> -> vector<256x36xf32>
    %31 = arith.truncf %30 : vector<256x36xf32> to vector<256x36xbf16>
    %cst_17 = arith.constant dense<0.000000e+00> : vector<256x8xf32>
    %32 = tpu.matmul %31, %7, %cst_17 {dimension_numbers = #tpu.dot_dimension_numbers<[1], [0], [0], [1], [0, 0, 1, 1], [], []>} : vector<256x36xbf16>, vector<36x8xbf16>, vector<256x8xf32> -> vector<256x8xf32>
    %33 = vector.shape_cast %9 : vector<8xf32> to vector<1x8xf32>
    %34 = vector.broadcast %33 : vector<1x8xf32> to vector<256x8xf32>
    %35 = arith.mulf %32, %34 : vector<256x8xf32>
    %36 = vector.shape_cast %11 : vector<8xf32> to vector<1x8xf32>
    %37 = vector.broadcast %36 : vector<1x8xf32> to vector<256x8xf32>
    %38 = arith.addf %35, %37 : vector<256x8xf32>
    %cst_18 = arith.constant 0.000000e+00 : f32
    %39 = vector.broadcast %cst_18 : f32 to vector<256x8xf32>
    %40 = arith.maximumf %38, %39 : vector<256x8xf32>
    %cst_19 = arith.constant 0.000000e+00 : f32
    %41 = vector.broadcast %cst_19 : f32 to vector<18x18x8xf32>
    %c0_20 = arith.constant 0 : index
    %c0_21 = arith.constant 0 : index
    %c0_22 = arith.constant 0 : index
    %42 = vector.load %arg10[%c0_20, %c0_21, %c0_22] : memref<18x18x8xf32, #tpu.memory_space<vmem>>, vector<18x18x8xf32>
    tpu.vector_store %arg10[%c0_20, %c0_21, %c0_22], %41 {strides = array<i32>} : memref<18x18x8xf32, #tpu.memory_space<vmem>>, vector<18x18x8xf32>,
    %43 = vector.shape_cast %40 : vector<256x8xf32> to vector<16x16x8xf32>
    %c1_23 = arith.constant 1 : index
    %c1_24 = arith.constant 1 : index
    %c0_25 = arith.constant 0 : index
    %44 = vector.load %arg10[%c1_23, %c1_24, %c0_25] : memref<18x18x8xf32, #tpu.memory_space<vmem>>, vector<16x16x8xf32>
    tpu.vector_store %arg10[%c1_23, %c1_24, %c0_25], %43 {strides = array<i32>} : memref<18x18x8xf32, #tpu.memory_space<vmem>>, vector<16x16x8xf32>,
    %c0_26 = arith.constant 0 : index
    %c0_27 = arith.constant 0 : index
    %c0_28 = arith.constant 0 : index
    %45 = vector.load %arg10[%c0_26, %c0_27, %c0_28] : memref<18x18x8xf32, #tpu.memory_space<vmem>>, vector<18x18x8xf32>
    %c0_29 = arith.constant 0 : index
    %c0_30 = arith.constant 0 : index
    %46 = vector.load %arg5[%c0_29, %c0_30] : memref<72x128xbf16, #tpu.memory_space<vmem>>, vector<72x128xbf16>
    %c0_31 = arith.constant 0 : index
    %c0_32 = arith.constant 0 : index
    %47 = vector.load %arg6[%c0_31, %c0_32] : memref<1x128xf32, #tpu.memory_space<vmem>>, vector<1x128xf32>
    %48 = vector.shape_cast %47 : vector<1x128xf32> to vector<128xf32>
    %c0_33 = arith.constant 0 : index
    %c0_34 = arith.constant 0 : index
    %49 = vector.load %arg7[%c0_33, %c0_34] : memref<1x128xf32, #tpu.memory_space<vmem>>, vector<1x128xf32>
    %50 = vector.shape_cast %49 : vector<1x128xf32> to vector<128xf32>
    %51 = vector.extract_strided_slice %45 {offsets = [0, 0, 0], sizes = [16, 16, 8], strides = [1, 1, 1]} : vector<18x18x8xf32> to vector<16x16x8xf32>
    %52 = vector.shape_cast %51 : vector<16x16x8xf32> to vector<256x8xf32>
    %53 = vector.extract_strided_slice %45 {offsets = [0, 1, 0], sizes = [16, 16, 8], strides = [1, 1, 1]} : vector<18x18x8xf32> to vector<16x16x8xf32>
    %54 = vector.shape_cast %53 : vector<16x16x8xf32> to vector<256x8xf32>
    %55 = vector.extract_strided_slice %45 {offsets = [0, 2, 0], sizes = [16, 16, 8], strides = [1, 1, 1]} : vector<18x18x8xf32> to vector<16x16x8xf32>
    %56 = vector.shape_cast %55 : vector<16x16x8xf32> to vector<256x8xf32>
    %57 = vector.extract_strided_slice %45 {offsets = [1, 0, 0], sizes = [16, 16, 8], strides = [1, 1, 1]} : vector<18x18x8xf32> to vector<16x16x8xf32>
    %58 = vector.shape_cast %57 : vector<16x16x8xf32> to vector<256x8xf32>
    %59 = vector.extract_strided_slice %45 {offsets = [1, 1, 0], sizes = [16, 16, 8], strides = [1, 1, 1]} : vector<18x18x8xf32> to vector<16x16x8xf32>
    %60 = vector.shape_cast %59 : vector<16x16x8xf32> to vector<256x8xf32>
    %61 = vector.extract_strided_slice %45 {offsets = [1, 2, 0], sizes = [16, 16, 8], strides = [1, 1, 1]} : vector<18x18x8xf32> to vector<16x16x8xf32>
    %62 = vector.shape_cast %61 : vector<16x16x8xf32> to vector<256x8xf32>
    %63 = vector.extract_strided_slice %45 {offsets = [2, 0, 0], sizes = [16, 16, 8], strides = [1, 1, 1]} : vector<18x18x8xf32> to vector<16x16x8xf32>
    %64 = vector.shape_cast %63 : vector<16x16x8xf32> to vector<256x8xf32>
    %65 = vector.extract_strided_slice %45 {offsets = [2, 1, 0], sizes = [16, 16, 8], strides = [1, 1, 1]} : vector<18x18x8xf32> to vector<16x16x8xf32>
    %66 = vector.shape_cast %65 : vector<16x16x8xf32> to vector<256x8xf32>
    %67 = vector.extract_strided_slice %45 {offsets = [2, 2, 0], sizes = [16, 16, 8], strides = [1, 1, 1]} : vector<18x18x8xf32> to vector<16x16x8xf32>
    %68 = vector.shape_cast %67 : vector<16x16x8xf32> to vector<256x8xf32>
    %69 = tpu.concatenate %52, %54, %56, %58, %60, %62, %64, %66, %68 in 1 : vector<256x8xf32>, vector<256x8xf32>, vector<256x8xf32>, vector<256x8xf32>, vector<256x8xf32>, vector<256x8xf32>, vector<256x8xf32>, vector<256x8xf32>, vector<256x8xf32> -> vector<256x72xf32>
    %70 = arith.truncf %69 : vector<256x72xf32> to vector<256x72xbf16>
    %cst_35 = arith.constant dense<0.000000e+00> : vector<256x128xf32>
    %71 = tpu.matmul %70, %46, %cst_35 {dimension_numbers = #tpu.dot_dimension_numbers<[1], [0], [0], [1], [0, 0, 1, 1], [], []>} : vector<256x72xbf16>, vector<72x128xbf16>, vector<256x128xf32> -> vector<256x128xf32>
    %72 = vector.shape_cast %48 : vector<128xf32> to vector<1x128xf32>
    %73 = vector.broadcast %72 : vector<1x128xf32> to vector<256x128xf32>
    %74 = arith.mulf %71, %73 : vector<256x128xf32>
    %75 = vector.shape_cast %50 : vector<128xf32> to vector<1x128xf32>
    %76 = vector.broadcast %75 : vector<1x128xf32> to vector<256x128xf32>
    %77 = arith.addf %74, %76 : vector<256x128xf32>
    %cst_36 = arith.constant 0.000000e+00 : f32
    %78 = vector.broadcast %cst_36 : f32 to vector<256x128xf32>
    %79 = arith.maximumf %77, %78 : vector<256x128xf32>
    %c0_37 = arith.constant 0 : index
    %c0_38 = arith.constant 0 : index
    %c0_39 = arith.constant 0 : index
    %80 = vector.load %arg8[%c0_37, %c0_38, %c0_39] : memref<1x256x128xf32, #tpu.memory_space<vmem>>, vector<1x256x128xf32>
    %81 = vector.shape_cast %80 : vector<1x256x128xf32> to vector<256x128xf32>
    %82 = vector.shape_cast %79 : vector<256x128xf32> to vector<1x256x128xf32>
    tpu.vector_store %arg8[%c0_37, %c0_38, %c0_39], %82 {strides = array<i32>} : memref<1x256x128xf32, #tpu.memory_space<vmem>>, vector<1x256x128xf32>,
    return
  }
  func.func @transform_0(%arg0: i32) -> (i32, i32, i32, i32) {
    %c0_i32 = arith.constant 0 : i32
    %c0_i32_0 = arith.constant 0 : i32
    %c0_i32_1 = arith.constant 0 : i32
    %c0_i32_2 = arith.constant 0 : i32
    return %arg0, %c0_i32, %c0_i32_0, %c0_i32_1 : i32, i32, i32, i32
  }
  func.func @transform_1(%arg0: i32) -> (i32, i32) {
    %c0_i32 = arith.constant 0 : i32
    %c0_i32_0 = arith.constant 0 : i32
    %c0_i32_1 = arith.constant 0 : i32
    return %c0_i32, %c0_i32_0 : i32, i32
  }
  func.func @transform_2(%arg0: i32) -> (i32, i32) {
    %c0_i32 = arith.constant 0 : i32
    %c0_i32_0 = arith.constant 0 : i32
    %c0_i32_1 = arith.constant 0 : i32
    return %c0_i32, %c0_i32_0 : i32, i32
  }
  func.func @transform_3(%arg0: i32) -> (i32, i32) {
    %c0_i32 = arith.constant 0 : i32
    %c0_i32_0 = arith.constant 0 : i32
    %c0_i32_1 = arith.constant 0 : i32
    return %c0_i32, %c0_i32_0 : i32, i32
  }
  func.func @transform_4(%arg0: i32) -> (i32, i32) {
    %c0_i32 = arith.constant 0 : i32
    %c0_i32_0 = arith.constant 0 : i32
    %c0_i32_1 = arith.constant 0 : i32
    return %c0_i32, %c0_i32_0 : i32, i32
  }
  func.func @transform_5(%arg0: i32) -> (i32, i32) {
    %c0_i32 = arith.constant 0 : i32
    %c0_i32_0 = arith.constant 0 : i32
    %c0_i32_1 = arith.constant 0 : i32
    return %c0_i32, %c0_i32_0 : i32, i32
  }
  func.func @transform_6(%arg0: i32) -> (i32, i32) {
    %c0_i32 = arith.constant 0 : i32
    %c0_i32_0 = arith.constant 0 : i32
    %c0_i32_1 = arith.constant 0 : i32
    return %c0_i32, %c0_i32_0 : i32, i32
  }
  func.func @transform_7(%arg0: i32) -> (i32, i32, i32) {
    %c0_i32 = arith.constant 0 : i32
    %c0_i32_0 = arith.constant 0 : i32
    %c0_i32_1 = arith.constant 0 : i32
    return %arg0, %c0_i32, %c0_i32_0 : i32, i32, i32
  }
}

</mosaic_0001>

<bundles_post_ra>
// kernel: tpu_custom_call.1
= control target key start
LH: loop header
LB: loop body
LE: loop exit
PB: predicated region body
PF: predicated region fallthrough
CT: control target
= control target key end

     0   :  { %12 = vsyncpa [#allocation5], 0  ;;  %s9071_s0 = inlined_call_operand.vmem [shape: bf16[2,16,16,4], index: 0, kind: input, shape index: {}]   ;;  %s9072_s1 = inlined_call_operand.vmem [shape: bf16[36,8], index: 1, kind: input, shape index: {}]   ;;  %s9073_s2 = inlined_call_operand.vmem [shape: f32[1,8], index: 2, kind: input, shape index: {}]   ;;  %s9074_s3 = inlined_call_operand.vmem [shape: f32[1,8], index: 3, kind: input, shape index: {}]   ;;  %s9075_s4 = inlined_call_operand.vmem [shape: bf16[72,128], index: 4, kind: input, shape index: {}]   ;;  %s9076_s5 = inlined_call_operand.vmem [shape: f32[1,128], index: 5, kind: input, shape index: {}]   ;;  %s9077_s6 = inlined_call_operand.vmem [shape: f32[1,128], index: 6, kind: input, shape index: {}]   ;;  %s9078_s7 = inlined_call_operand.hbm [shape: f32[2,256,128], index: 7, kind: output, shape index: {}]  }
   0x1   :  { %14 = vsyncpa [#allocation5 + $0x1], 0  ;;  %s5778_s24 = smov 0   ;;  %s5780_s25 = smov 0  }
   0x2   :  { %s5782_s26 = smov 0   ;;  %s5784_s27 = smov 0  }
   0x3 LB: > { %s5799_s28 = sadd.s32 4294967295, %s5721_s27   ;;  %s4000_s29 = sadd.s32 4294967294, %s5721_s27   ;;  %s5721_s27 = sphi %s5784_s27, %s9333_s27   ;;  %s5717_s26 = sphi %s5782_s26, %s9332_s26   ;;  %s5713_s25 = sphi %s5780_s25, %s9331_s25   ;;  %s5709_s24 = sphi %s5778_s24, %s9330_s24  }
   0x4   : > { %s5803_s30 = sadd.s32 1, %s5721_s27   ;;  %s179_s8 = sadd.s32 1, %s5717_s26 }
   0x5   : > { %s176_s9 = ssub.s32 %s5721_s27, %s5803_s30  ;;  %p189_p0 = scmp.ne.s32.totalorder %s5717_s26, %s5713_s25 }
   0x6   : > { %p177_p1 = scmp.eq.s32.totalorder %s176_s9, 0  ;;  %p190_p2 = scmp.eq.s32.totalorder %s5799_s28, 1 }
   0x7   : > { %p195_p3 = scmp.ne.s32.totalorder %s5713_s25, %s5709_s24  ;;  %p196_p4 = scmp.eq.s32.totalorder %s4000_s29, 1 }
   0x8   : > { %s5814_s10 = scalar_select %p177_p1, %s5717_s26, %s179_s8  }
   0x9   : > { %p5816_p5 = por %p190_p2, %p189_p0  ;;  %p5820_p6 = por %p196_p4, %p195_p3 }
   0xa   : > { %p4003_p7 = scmp.ge.s32.totalorder %s5721_s27, 1  ;;  %p240_p8 = scmp.lt.s32.totalorder %s5721_s27, 3 }
   0xc   : > { %p241_p9 = pnand %p4003_p7, %p240_p8 }
   0xe   : > { %244 = sbr.rel (%p241_p9) target bundleno = 1221 (0x4c5), region = 48 }
  0x15   : > { %vm278_vm0 = vcmask 31744   ;;  %vm281_vm1 = vcmask 25600   ;;  %p272_p10 = scmp.lt.s32.totalorder %s5799_s28, 1  ;;  %v9079_v0 = vmov 0.0   ;;  %vm540_vm2 = vcmask 1046528   ;;  %s5724_s18 = smov 4  }
  0x16   : > { %279 = vst.msk [vmem:[#allocation2] sm:$0xff] %vm278_vm0, %v9079_v0  ;;  %280 = vst.msk [vmem:[#allocation2 + $0x8] sm:$0xff] %vm278_vm0, %v9079_v0  ;;  %vm621_vm3 = vcmask 1045504   ;;  %s5725_s19 = smov 8   ;;  %vm1528_vm4 = vcmask 64512   ;;  %s5726_s20 = smov 12  }
  0x17   : > { %282 = vst.msk [vmem:[#allocation2 + $0x10] sm:$0x3] %vm281_vm1, %v9079_v0  ;;  %285 = vst.msk [vmem:[#allocation2 + $0x28] sm:$0x3] %vm281_vm1, %v9079_v0  ;;  %s273_s13 = scalar_select %p272_p10, %s5799_s28, 1  ;;  %vm1839_vm5 = vcmask 1041408  }
  0x18   : > { %283 = vst.msk [vmem:[#allocation2 + $0x18] sm:$0xff] %vm278_vm0, %v9079_v0  ;;  %284 = vst.msk [vmem:[#allocation2 + $0x20] sm:$0xff] %vm278_vm0, %v9079_v0  ;;  %s5727_s21 = smov 16   ;;  %s5728_s22 = smov 20   ;;  %vm1561_vm6 = vcmask 97280   ;;  %vm1594_vm7 = vcmask 130048  }
  0x19   : > { %286 = vst.msk [vmem:[#allocation2 + $0x30] sm:$0xff] %vm278_vm0, %v9079_v0  ;;  %287 = vst.msk [vmem:[#allocation2 + $0x38] sm:$0xff] %vm278_vm0, %v9079_v0  ;;  %s4056_s14 = sshll.u32 %s273_s13, 7  ;;  %s5729_s23 = smov 24   ;;  %vm1627_vm8 = vcmask 162816   ;;  %vm1660_vm9 = vcmask 195584  }
  0x1a   : > { %288 = vst.msk [vmem:[#allocation2 + $0x40] sm:$0x3] %vm281_vm1, %v9079_v0  ;;  %291 = vst.msk [vmem:[#allocation2 + $0x58] sm:$0x3] %vm281_vm1, %v9079_v0  ;;  %s5941_s17 = scalar_lea.vmem %s9071_s0, %s4056_s14  ;;  %s5730_s16 = smov 28   ;;  %vm1693_vm10 = vcmask 228352  }
  0x1b   : > { %289 = vst.msk [vmem:[#allocation2 + $0x48] sm:$0xff] %vm278_vm0, %v9079_v0  ;;  %290 = vst.msk [vmem:[#allocation2 + $0x50] sm:$0xff] %vm278_vm0, %v9079_v0  ;;  %v4122_v1 = vld [vmem:[%s5941_s17 + $0x8] sm:$0xff]   ;;  %v4059_v2 = vld [vmem:[%s5941_s17] sm:$0xff]   ;;  %vm1726_vm11 = vcmask 261120   ;;  %vm1790_vm12 = vcmask 293888  }
  0x1c   : > { %292 = vst.msk [vmem:[#allocation2 + $0x60] sm:$0xff] %vm278_vm0, %v9079_v0  ;;  %293 = vst.msk [vmem:[#allocation2 + $0x68] sm:$0xff] %vm278_vm0, %v9079_v0  ;;  %v4123_v3 = vld [vmem:[%s5941_s17 + $0x10] sm:$0xff]   ;;  %v4064_v4 = vunpack.c.l.bf16 %v4122_v1  ;;  %v4065_v5 = vunpack.c.h.bf16 %v4122_v1  ;;  %v4060_v6 = vunpack.c.l.bf16 %v4059_v2  ;;  %v4061_v7 = vunpack.c.h.bf16 %v4059_v2  ;;  %v4124_v8 = vld [vmem:[%s5941_s17 + $0x18] sm:$0xff]   ;;  %s5732_s8 = smov 48   ;;  %s5733_s9 = smov 40  }
  0x1d   : > { %294 = vst.msk [vmem:[#allocation2 + $0x70] sm:$0x3] %vm281_vm1, %v9079_v0  ;;  %297 = vst.msk [vmem:[#allocation2 + $0x88] sm:$0x3] %vm281_vm1, %v9079_v0  ;;  %v4125_v9 = vld [vmem:[%s5941_s17 + $0x20] sm:$0xff]   ;;  %v4126_v10 = vld [vmem:[%s5941_s17 + $0x28] sm:$0xff]   ;;  %v4068_v14 = vunpack.c.l.bf16 %v4123_v3  ;;  %v4069_v15 = vunpack.c.h.bf16 %v4123_v3  ;;  %v4072_v16 = vunpack.c.l.bf16 %v4124_v8  ;;  %v4073_v17 = vunpack.c.h.bf16 %v4124_v8 }
  0x1e   : > { %295 = vst.msk [vmem:[#allocation2 + $0x78] sm:$0xff] %vm278_vm0, %v9079_v0  ;;  %296 = vst.msk [vmem:[#allocation2 + $0x80] sm:$0xff] %vm278_vm0, %v9079_v0  ;;  %v5949_v11 = vld [vmem:[#allocation2] sm:$0xff]  ;;  %v5951_v12 = vld [vmem:[#allocation2 + $0x8] sm:$0xff]  ;;  %v4076_v23 = vunpack.c.l.bf16 %v4125_v9  ;;  %v4077_v24 = vunpack.c.h.bf16 %v4125_v9  ;;  %v4080_v25 = vunpack.c.l.bf16 %v4126_v10  ;;  %v4081_v26 = vunpack.c.h.bf16 %v4126_v10  ;;  %s5734_s13 = smov 56  }
  0x1f   : > { %298 = vst.msk [vmem:[#allocation2 + $0x90] sm:$0xff] %vm278_vm0, %v9079_v0  ;;  %299 = vst.msk [vmem:[#allocation2 + $0x98] sm:$0xff] %vm278_vm0, %v9079_v0  ;;  %v5953_v13 = vld [vmem:[#allocation2 + $0x10] sm:$0x3]  ;;  %v541_v18 = vrot.slane %v5949_v11, 1  ;;  %v542_v19 = vrot.slane %v5951_v12, 1 }
  0x20   : > { %300 = vst.msk [vmem:[#allocation2 + $0xa0] sm:$0x3] %vm281_vm1, %v9079_v0  ;;  %303 = vst.msk [vmem:[#allocation2 + $0xb8] sm:$0x3] %vm281_vm1, %v9079_v0  ;;  %v544_v20 = vrot.slane %v5953_v13, 1  ;;  %v4127_v21 = vld [vmem:[%s5941_s17 + $0x30] sm:$0xff]  }
  0x21   : > { %301 = vst.msk [vmem:[#allocation2 + $0xa8] sm:$0xff] %vm278_vm0, %v9079_v0  ;;  %302 = vst.msk [vmem:[#allocation2 + $0xb0] sm:$0xff] %vm278_vm0, %v9079_v0  ;;  %v4128_v22 = vld [vmem:[%s5941_s17 + $0x38] sm:$0xff]   ;;  %v4129_v27 = vld [vmem:[%s5941_s17 + $0x40] sm:$0xff]   ;;  %v543_v30 = vsel %vm540_vm2, %v541_v18, %v542_v19  ;;  %v4084_v32 = vunpack.c.l.bf16 %v4127_v21  ;;  %v4085_v33 = vunpack.c.h.bf16 %v4127_v21  ;;  %vm2114_vm13 = vcmask 58368  }
  0x22   : > { %304 = vst.msk [vmem:[#allocation2 + $0xc0] sm:$0xff] %vm278_vm0, %v9079_v0  ;;  %305 = vst.msk [vmem:[#allocation2 + $0xc8] sm:$0xff] %vm278_vm0, %v9079_v0  ;;  %v4130_v28 = vld [vmem:[%s5941_s17 + $0x48] sm:$0xff]   ;;  %v4131_v29 = vld [vmem:[%s5941_s17 + $0x50] sm:$0xff]   ;;  %v545_v31 = vsel %vm540_vm2, %v542_v19, %v544_v20  ;;  %v4088_v38 = vunpack.c.l.bf16 %v4128_v22  ;;  %v4089_v39 = vunpack.c.h.bf16 %v4128_v22  ;;  %v4092_v40 = vunpack.c.l.bf16 %v4129_v27 }
  0x23   : > { %306 = vst.msk [vmem:[#allocation2 + $0xd0] sm:$0x3] %vm281_vm1, %v9079_v0  ;;  %309 = vst.msk [vmem:[#allocation2 + $0xe8] sm:$0x3] %vm281_vm1, %v9079_v0  ;;  %v4132_v34 = vld [vmem:[%s5941_s17 + $0x58] sm:$0xff]   ;;  %v4133_v35 = vld [vmem:[%s5941_s17 + $0x60] sm:$0xff]   ;;  %v4312_v37 = vpack.i.bf16 %v545_v31, %v543_v30  ;;  %v4093_v43 = vunpack.c.h.bf16 %v4129_v27  ;;  %v4096_v44 = vunpack.c.l.bf16 %v4130_v28  ;;  %v4097_v45 = vunpack.c.h.bf16 %v4130_v28 }
  0x24   : > { %307 = vst.msk [vmem:[#allocation2 + $0xd8] sm:$0xff] %vm278_vm0, %v9079_v0  ;;  %308 = vst.msk [vmem:[#allocation2 + $0xe0] sm:$0xff] %vm278_vm0, %v9079_v0  ;;  %v4134_v36 = vld [vmem:[%s5941_s17 + $0x68] sm:$0xff]   ;;  %v4135_v41 = vld [vmem:[%s5941_s17 + $0x70] sm:$0xff]   ;;  %v4100_v46 = vunpack.c.l.bf16 %v4131_v29  ;;  %v4101_v47 = vunpack.c.h.bf16 %v4131_v29  ;;  %v4104_v48 = vunpack.c.l.bf16 %v4132_v34  ;;  %v4105_v49 = vunpack.c.h.bf16 %v4132_v34 }
  0x25   : > { %310 = vst.msk [vmem:[#allocation2 + $0xf0] sm:$0xff] %vm278_vm0, %v9079_v0  ;;  %311 = vst.msk [vmem:[#allocation2 + $0xf8] sm:$0xff] %vm278_vm0, %v9079_v0  ;;  %v5982_v42 = vld [vmem:[%s5941_s17 + $0x78] sm:$0xff]   ;;  %4313 = vrot.lane.b32.xlu0 %v4312_v37, %s5724_s18  ;;  %v4108_v50 = vunpack.c.l.bf16 %v4133_v35  ;;  %v4109_v51 = vunpack.c.h.bf16 %v4133_v35  ;;  %v4112_v52 = vunpack.c.l.bf16 %v4134_v36  ;;  %v4113_v53 = vunpack.c.h.bf16 %v4134_v36  ;;  %s5731_s17 = smov 32  }
  0x26   : > { %312 = vst.msk [vmem:[#allocation2 + $0x100] sm:$0x3] %vm281_vm1, %v9079_v0  ;;  %315 = vst.msk [vmem:[#allocation2 + $0x118] sm:$0x3] %vm281_vm1, %v9079_v0  ;;  %v4116_v54 = vunpack.c.l.bf16 %v4135_v41  ;;  %v4117_v58 = vunpack.c.h.bf16 %v4135_v41  ;;  %v4120_v59 = vunpack.c.l.bf16 %v5982_v42  ;;  %vm3619_vm14 = vcmask 1043456  }
  0x27   : > { %313 = vst.msk [vmem:[#allocation2 + $0x108] sm:$0xff] %vm278_vm0, %v9079_v0  ;;  %314 = vst.msk [vmem:[#allocation2 + $0x110] sm:$0xff] %vm278_vm0, %v9079_v0  ;;  %vm3395_vm15 = vcmask 326656  }
  0x28   : > { %316 = vst.msk [vmem:[#allocation2 + $0x120] sm:$0xff] %vm278_vm0, %v9079_v0  ;;  %317 = vst.msk [vmem:[#allocation2 + $0x128] sm:$0xff] %vm278_vm0, %v9079_v0 }
  0x29   : > { %318 = vst.msk [vmem:[#allocation2 + $0x130] sm:$0x3] %vm281_vm1, %v9079_v0  ;;  %321 = vst.msk [vmem:[#allocation2 + $0x148] sm:$0x3] %vm281_vm1, %v9079_v0 }
  0x2a   : > { %319 = vst.msk [vmem:[#allocation2 + $0x138] sm:$0xff] %vm278_vm0, %v9079_v0  ;;  %320 = vst.msk [vmem:[#allocation2 + $0x140] sm:$0xff] %vm278_vm0, %v9079_v0 }
  0x2b   : > { %322 = vst.msk [vmem:[#allocation2 + $0x150] sm:$0xff] %vm278_vm0, %v9079_v0  ;;  %323 = vst.msk [vmem:[#allocation2 + $0x158] sm:$0xff] %vm278_vm0, %v9079_v0 }
  0x2c   : > { %324 = vst.msk [vmem:[#allocation2 + $0x160] sm:$0x3] %vm281_vm1, %v9079_v0  ;;  %327 = vst.msk [vmem:[#allocation2 + $0x178] sm:$0x3] %vm281_vm1, %v9079_v0 }
  0x2d   : > { %325 = vst.msk [vmem:[#allocation2 + $0x168] sm:$0xff] %vm278_vm0, %v9079_v0  ;;  %326 = vst.msk [vmem:[#allocation2 + $0x170] sm:$0xff] %vm278_vm0, %v9079_v0 }
  0x2e   : > { %328 = vst.msk [vmem:[#allocation2 + $0x180] sm:$0xff] %vm278_vm0, %v9079_v0  ;;  %329 = vst.msk [vmem:[#allocation2 + $0x188] sm:$0xff] %vm278_vm0, %v9079_v0 }
  0x2f   : > { %330 = vst.msk [vmem:[#allocation2 + $0x190] sm:$0x3] %vm281_vm1, %v9079_v0  ;;  %333 = vst.msk [vmem:[#allocation2 + $0x1a8] sm:$0x3] %vm281_vm1, %v9079_v0  ;;  %vm3461_vm1 = vcmask 457728  }
  0x30   : > { %331 = vst.msk [vmem:[#allocation2 + $0x198] sm:$0xff] %vm278_vm0, %v9079_v0  ;;  %332 = vst.msk [vmem:[#allocation2 + $0x1a0] sm:$0xff] %vm278_vm0, %v9079_v0 }
  0x31   : > { %401 = vst.msk [vmem:[#allocation2 + $0x31] sm:$0xff] %vm278_vm0, %v4064_v4  ;;  %402 = vst.msk [vmem:[#allocation2 + $0x39] sm:$0xff] %vm278_vm0, %v4065_v5 }
  0x32   : > { %399 = vst.msk [vmem:[#allocation2 + $0x19] sm:$0xff] %vm278_vm0, %v4060_v6  ;;  %400 = vst.msk [vmem:[#allocation2 + $0x21] sm:$0xff] %vm278_vm0, %v4061_v7 }
  0x33   : > { %403 = vst.msk [vmem:[#allocation2 + $0x49] sm:$0xff] %vm278_vm0, %v4068_v14  ;;  %404 = vst.msk [vmem:[#allocation2 + $0x51] sm:$0xff] %vm278_vm0, %v4069_v15 }
  0x34   : > { %405 = vst.msk [vmem:[#allocation2 + $0x61] sm:$0xff] %vm278_vm0, %v4072_v16  ;;  %406 = vst.msk [vmem:[#allocation2 + $0x69] sm:$0xff] %vm278_vm0, %v4073_v17 }
  0x35   : > { %407 = vst.msk [vmem:[#allocation2 + $0x79] sm:$0xff] %vm278_vm0, %v4076_v23  ;;  %408 = vst.msk [vmem:[#allocation2 + $0x81] sm:$0xff] %vm278_vm0, %v4077_v24 }
  0x36   : > { %409 = vst.msk [vmem:[#allocation2 + $0x91] sm:$0xff] %vm278_vm0, %v4080_v25  ;;  %410 = vst.msk [vmem:[#allocation2 + $0x99] sm:$0xff] %vm278_vm0, %v4081_v26 }
  0x37   : > { %9169 = vst [vmem:[#allocation7_spill] sm:$0xff] %v5982_v42  ;;  %411 = vst.msk [vmem:[#allocation2 + $0xa9] sm:$0xff] %vm278_vm0, %v4084_v32 }
  0x38   : > { %412 = vst.msk [vmem:[#allocation2 + $0xb1] sm:$0xff] %vm278_vm0, %v4085_v33  ;;  %413 = vst.msk [vmem:[#allocation2 + $0xc1] sm:$0xff] %vm278_vm0, %v4088_v38  ;;  %v5994_v55 = vld [vmem:[#allocation2 + $0x30] sm:$0xff]  ;;  %v5996_v56 = vld [vmem:[#allocation2 + $0x38] sm:$0xff] }
  0x39   : > { %414 = vst.msk [vmem:[#allocation2 + $0xc9] sm:$0xff] %vm278_vm0, %v4089_v39  ;;  %415 = vst.msk [vmem:[#allocation2 + $0xd9] sm:$0xff] %vm278_vm0, %v4092_v40  ;;  %v5998_v57 = vld [vmem:[#allocation2 + $0x40] sm:$0x3]  ;;  %v551_v60 = vrot.slane %v5994_v55, 1  ;;  %v552_v61 = vrot.slane %v5996_v56, 1 }
  0x3a   : > { %416 = vst.msk [vmem:[#allocation2 + $0xe1] sm:$0xff] %vm278_vm0, %v4093_v43  ;;  %417 = vst.msk [vmem:[#allocation2 + $0xf1] sm:$0xff] %vm278_vm0, %v4096_v44  ;;  %v554_v62 = vrot.slane %v5998_v57, 1  ;;  %v6008_v63 = vld [vmem:[#allocation2 + $0x18] sm:$0xff]  ;;  %v6010_v1 = vld [vmem:[#allocation2 + $0x20] sm:$0xff] }
  0x3b   : > { %418 = vst.msk [vmem:[#allocation2 + $0xf9] sm:$0xff] %vm278_vm0, %v4097_v45  ;;  %419 = vst.msk [vmem:[#allocation2 + $0x109] sm:$0xff] %vm278_vm0, %v4100_v46  ;;  %v6016_v2 = vld [vmem:[#allocation2 + $0x28] sm:$0x3]  ;;  %v546_v3 = vrot.slane %v6008_v63, 1  ;;  %v547_v4 = vrot.slane %v6010_v1, 1  ;;  %v553_v7 = vsel %vm540_vm2, %v551_v60, %v552_v61 }
  0x3c   : > { %420 = vst.msk [vmem:[#allocation2 + $0x111] sm:$0xff] %vm278_vm0, %v4101_v47  ;;  %421 = vst.msk [vmem:[#allocation2 + $0x121] sm:$0xff] %vm278_vm0, %v4104_v48  ;;  %v6020_v5 = vld [vmem:[#allocation2 + $0x48] sm:$0xff]  ;;  %v6022_v6 = vld [vmem:[#allocation2 + $0x50] sm:$0xff]  ;;  %v555_v8 = vsel %vm540_vm2, %v552_v61, %v554_v62  ;;  %v549_v9 = vrot.slane %v6016_v2, 1 }
  0x3d   : > { %422 = vst.msk [vmem:[#allocation2 + $0x129] sm:$0xff] %vm278_vm0, %v4105_v49  ;;  %423 = vst.msk [vmem:[#allocation2 + $0x139] sm:$0xff] %vm278_vm0, %v4108_v50  ;;  %v6029_v10 = vld [vmem:[#allocation2 + $0x58] sm:$0x3]  ;;  %v556_v14 = vrot.slane %v6020_v5, 1  ;;  %v6032_v15 = vld [vmem:[#allocation2 + $0x60] sm:$0xff]  ;;  %v6036_v17 = vpack.i.bf16 %v555_v8, %v553_v7  ;;  %v548_v18 = vsel %vm540_vm2, %v546_v3, %v547_v4 }
  0x3e   : > { %424 = vst.msk [vmem:[#allocation2 + $0x141] sm:$0xff] %vm278_vm0, %v4109_v51  ;;  %425 = vst.msk [vmem:[#allocation2 + $0x151] sm:$0xff] %vm278_vm0, %v4112_v52  ;;  %v6034_v16 = vld [vmem:[#allocation2 + $0x68] sm:$0xff]  ;;  %v557_v19 = vrot.slane %v6022_v6, 1  ;;  %v559_v20 = vrot.slane %v6029_v10, 1  ;;  %v6043_v22 = vld [vmem:[#allocation2 + $0x78] sm:$0xff]  ;;  %v550_v24 = vsel %vm540_vm2, %v547_v4, %v549_v9 }
  0x3f   : > { %426 = vst.msk [vmem:[#allocation2 + $0x159] sm:$0xff] %vm278_vm0, %v4113_v53  ;;  %427 = vst.msk [vmem:[#allocation2 + $0x169] sm:$0xff] %vm278_vm0, %v4116_v54  ;;  %v6041_v21 = vld [vmem:[#allocation2 + $0x70] sm:$0x3]  ;;  %v6045_v23 = vld [vmem:[#allocation2 + $0x80] sm:$0xff]  ;;  %v561_v25 = vrot.slane %v6032_v15, 1  ;;  %4323 = vrot.lane.b32.xlu1 %v6036_v17, %s5724_s18  ;;  %v6057_v30 = vpack.i.bf16 %v550_v24, %v548_v18 }
  0x40   : > { %428 = vst.msk [vmem:[#allocation2 + $0x171] sm:$0xff] %vm278_vm0, %v4117_v58  ;;  %429 = vst.msk [vmem:[#allocation2 + $0x181] sm:$0xff] %vm278_vm0, %v4120_v59  ;;  %v562_v26 = vrot.slane %v6034_v16, 1  ;;  %v564_v27 = vrot.slane %v6041_v21, 1  ;;  %v6051_v28 = vld [vmem:[#allocation2 + $0x88] sm:$0x3]  ;;  %v558_v31 = vsel %vm540_vm2, %v556_v14, %v557_v19  ;;  %v560_v32 = vsel %vm540_vm2, %v557_v19, %v559_v20 }
  0x41   : > { %9170 = vst [vmem:[#allocation8_spill] sm:$0xff] %v6036_v17  ;;  %v6053_v29 = vld [vmem:[#allocation2 + $0x90] sm:$0xff]  ;;  %9171 = vst [vmem:[#allocation9_spill] sm:$0xff] %v6057_v30  ;;  %v566_v33 = vrot.slane %v6043_v22, 1  ;;  %v6062_v34 = vld [vmem:[#allocation2 + $0x98] sm:$0xff]  ;;  %v6068_v37 = vpack.i.bf16 %v560_v32, %v558_v31  ;;  %v567_v40 = vrot.slane %v6045_v23, 1  ;;  %4318 = vrot.lane.b32.xlu0 %v6057_v30, %s5724_s18 }
  0x42   : > { %v6064_v35 = vld [vmem:[#allocation2 + $0xa0] sm:$0x3]  ;;  %v6066_v36 = vld [vmem:[#allocation2 + $0xa8] sm:$0xff]  ;;  %v563_v38 = vsel %vm540_vm2, %v561_v25, %v562_v26  ;;  %v565_v39 = vsel %vm540_vm2, %v562_v26, %v564_v27  ;;  %v6073_v41 = vld [vmem:[#allocation2 + $0xb0] sm:$0xff]  ;;  %v569_v46 = vrot.slane %v6051_v28, 1  ;;  %v571_v47 = vrot.slane %v6053_v29, 1 }
  0x43   : > { %9172 = vst [vmem:[#allocation10_spill] sm:$0xff] %v6068_v37  ;;  %v6075_v43 = vld [vmem:[#allocation2 + $0xb8] sm:$0x3]  ;;  %v6077_v44 = vld [vmem:[#allocation2 + $0xc0] sm:$0xff]  ;;  %v6081_v45 = vpack.i.bf16 %v565_v39, %v563_v38  ;;  %v572_v48 = vrot.slane %v6062_v34, 1  ;;  %v6086_v49 = vld [vmem:[#allocation2 + $0xc8] sm:$0xff]  ;;  %v568_v50 = vsel %vm540_vm2, %v566_v33, %v567_v40  ;;  %4328 = vrot.lane.b32.xlu1 %v6068_v37, %s5724_s18 }
  0x44   : > { %v574_v51 = vrot.slane %v6064_v35, 1  ;;  %v576_v52 = vrot.slane %v6066_v36, 1  ;;  %v577_v53 = vrot.slane %v6073_v41, 1  ;;  %v6092_v54 = vld [vmem:[#allocation2 + $0xd0] sm:$0x3]  ;;  %v6094_v58 = vld [vmem:[#allocation2 + $0xd8] sm:$0xff]  ;;  %v570_v59 = vsel %vm540_vm2, %v567_v40, %v569_v46 }
  0x45   : > { %9173 = vst [vmem:[#allocation11_spill] sm:$0xff] %v6081_v45  ;;  %v573_v60 = vsel %vm540_vm2, %v571_v47, %v572_v48  ;;  %v579_v61 = vrot.slane %v6075_v43, 1  ;;  %v581_v62 = vrot.slane %v6077_v44, 1  ;;  %v6102_v3 = vld [vmem:[#allocation2 + $0xe0] sm:$0xff]  ;;  %v6104_v4 = vld [vmem:[#allocation2 + $0xe8] sm:$0x3]  ;;  %v6106_v7 = vpack.i.bf16 %v570_v59, %v568_v50  ;;  %4333 = vrot.lane.b32.xlu0 %v6081_v45, %s5724_s18 }
  0x46   : > { %v575_v8 = vsel %vm540_vm2, %v572_v48, %v574_v51  ;;  %v578_v9 = vsel %vm540_vm2, %v576_v52, %v577_v53  ;;  %v582_v14 = vrot.slane %v6086_v49, 1  ;;  %v6111_v18 = vld [vmem:[#allocation2 + $0xf0] sm:$0xff]  ;;  %v6113_v19 = vld [vmem:[#allocation2 + $0xf8] sm:$0xff]  ;;  %v6115_v20 = vld [vmem:[#allocation2 + $0x100] sm:$0x3]  ;;  %v584_v26 = vrot.slane %v6092_v54, 1 }
  0x47   : > { %9174 = vst [vmem:[#allocation12_spill] sm:$0xff] %v6106_v7  ;;  %v6119_v24 = vpack.i.bf16 %v575_v8, %v573_v60  ;;  %v580_v25 = vsel %vm540_vm2, %v577_v53, %v579_v61  ;;  %v586_v27 = vrot.slane %v6094_v58, 1  ;;  %v6124_v31 = vld [vmem:[#allocation2 + $0x108] sm:$0xff]  ;;  %v587_v38 = vrot.slane %v6102_v3, 1  ;;  %v6131_v40 = vld [vmem:[#allocation2 + $0x110] sm:$0xff]  ;;  %4338 = vrot.lane.b32.xlu1 %v6106_v7, %s5724_s18  ;;  %v6141_v52 = vld [vmem:[#allocation2 + $0x120] sm:$0xff] }
  0x48   : > { %v6126_v32 = vpack.i.bf16 %v580_v25, %v578_v9  ;;  %v583_v33 = vsel %vm540_vm2, %v581_v62, %v582_v14  ;;  %v589_v39 = vrot.slane %v6104_v4, 1  ;;  %v6133_v46 = vld [vmem:[#allocation2 + $0x118] sm:$0x3]  ;;  %v585_v47 = vsel %vm540_vm2, %v582_v14, %v584_v26  ;;  %v6143_v53 = vld [vmem:[#allocation2 + $0x128] sm:$0xff]  ;;  %v6149_v8 = vld [vmem:[#allocation2 + $0x130] sm:$0x3] }
  0x49   : > { %9175 = vst [vmem:[#allocation13_spill] sm:$0xff] %v6119_v24  ;;  %v591_v48 = vrot.slane %v6111_v18, 1  ;;  %v592_v50 = vrot.slane %v6113_v19, 1  ;;  %v594_v51 = vrot.slane %v6115_v20, 1  ;;  %v625_v59 = vrot.slane %v5953_v13, 2  ;;  %9177 = vst [vmem:[#allocation15_spill] sm:$0xff] %v6149_v8  ;;  %4343 = vrot.lane.b32.xlu0 %v6119_v24, %s5724_s18 }
  0x4a   : > { %9176 = vst [vmem:[#allocation14_spill] sm:$0xff] %v6126_v32  ;;  %v588_v60 = vsel %vm540_vm2, %v586_v27, %v587_v38  ;;  %v590_v61 = vsel %vm540_vm2, %v587_v38, %v589_v39  ;;  %v596_v62 = vrot.slane %v6124_v31, 1  ;;  %v6151_v9 = vld [vmem:[#allocation2 + $0x138] sm:$0xff]  ;;  %v6153_v14 = vld [vmem:[#allocation2 + $0x140] sm:$0xff]  ;;  %v6157_v25 = vpack.i.bf16 %v585_v47, %v583_v33  ;;  %v6161_v27 = vld [vmem:[#allocation2 + $0x148] sm:$0x3] }
  0x4b   : > { %9178 = vst [vmem:[#allocation16_spill] sm:$0xff] %v6151_v9  ;;  %9179 = vst [vmem:[#allocation17_spill] sm:$0xff] %v6153_v14  ;;  %v593_v26 = vsel %vm540_vm2, %v591_v48, %v592_v50  ;;  %v597_v13 = vrot.slane %v6131_v40, 1  ;;  %v622_v38 = vrot.slane %v5949_v11, 2  ;;  %v595_v39 = vsel %vm540_vm2, %v592_v50, %v594_v51  ;;  %v6168_v37 = vld [vmem:[#allocation2 + $0x150] sm:$0xff]  ;;  %4348 = vrot.lane.b32.xlu1 %v6126_v32, %s5724_s18  ;;  %v6177_v50 = vld [vmem:[#allocation2 + $0x158] sm:$0xff] }
  0x4c   : > { %9180 = vst [vmem:[#allocation18_spill] sm:$0xff] %v6157_v25  ;;  %9181 = vst [vmem:[#allocation19_spill] sm:$0xff] %v6161_v27  ;;  %v599_v0 = vrot.slane %v6133_v46, 1  ;;  %v601_v7 = vrot.slane %v6141_v52, 1  ;;  %v602_v45 = vrot.slane %v6143_v53, 1  ;;  %v6172_v33 = vpack.i.bf16 %v590_v61, %v588_v60  ;;  %v6184_v42 = vld [vmem:[#allocation2 + $0x168] sm:$0xff] }
  0x4d   : > { %v604_v47 = vrot.slane %v6149_v8, 1  ;;  %v606_v48 = vrot.slane %v6151_v9, 1  ;;  %v607_v11 = vrot.slane %v6153_v14, 1  ;;  %v6179_v51 = vld [vmem:[#allocation2 + $0x160] sm:$0x3]  ;;  %v598_v24 = vsel %vm540_vm2, %v596_v62, %v597_v13  ;;  %v6186_v60 = vld [vmem:[#allocation2 + $0x170] sm:$0xff]  ;;  %4353 = vrot.lane.b32.xlu0 %v6157_v25, %s5724_s18 }
  0x4e   : > { %9182 = vst [vmem:[#allocation20_spill] sm:$0xff] %v6172_v33  ;;  %v600_v17 = vsel %vm540_vm2, %v597_v13, %v599_v0  ;;  %v609_v30 = vrot.slane %v6161_v27, 1  ;;  %v623_v61 = vrot.slane %v5951_v12, 2  ;;  %v6191_v32 = vpack.i.bf16 %v595_v39, %v593_v26  ;;  %v6196_v0 = vld [vmem:[#allocation2 + $0x178] sm:$0x3] }
  0x4f   : > { %v603_v14 = vsel %vm540_vm2, %v601_v7, %v602_v45  ;;  %v605_v9 = vsel %vm540_vm2, %v602_v45, %v604_v47  ;;  %v611_v62 = vrot.slane %v6168_v37, 1  ;;  %v608_v13 = vsel %vm540_vm2, %v606_v48, %v607_v11  ;;  %4358 = vrot.lane.b32.xlu1 %v6172_v33, %s5724_s18 }
  0x50   : > { %v610_v27 = vsel %vm540_vm2, %v607_v11, %v609_v30  ;;  %v612_v8 = vrot.slane %v6177_v50, 1  ;;  %v614_v12 = vrot.slane %v6179_v51, 1  ;;  %v6204_v26 = vpack.i.bf16 %v600_v17, %v598_v24 }
  0x51   : > { %v616_v7 = vrot.slane %v6184_v42, 1  ;;  %v617_v45 = vrot.slane %v6186_v60, 1  ;;  %v635_v39 = vrot.slane %v5998_v57, 2  ;;  %v619_v47 = vrot.slane %v6196_v0, 1  ;;  %4363 = vrot.lane.b32.xlu0 %v6191_v32, %s5724_s18 }
  0x52   : > { %9183 = vst [vmem:[#allocation21_spill] sm:$0xff] %v6204_v26  ;;  %v6212_v30 = vpack.i.bf16 %v605_v9, %v603_v14  ;;  %v6214_v48 = vpack.i.bf16 %v610_v27, %v608_v13  ;;  %v624_v11 = vsel %vm621_vm3, %v622_v38, %v623_v61  ;;  %v626_v17 = vsel %vm621_vm3, %v623_v61, %v625_v59 }
  0x53   : > { %v613_v24 = vsel %vm540_vm2, %v611_v62, %v612_v8  ;;  %v615_v33 = vsel %vm540_vm2, %v612_v8, %v614_v12  ;;  %v627_v25 = vrot.slane %v6008_v63, 2  ;;  %v628_v57 = vrot.slane %v6010_v1, 2  ;;  %4368 = vrot.lane.b32.xlu1 %v6204_v26, %s5724_s18 }
  0x54   : > { %9184 = vst [vmem:[#allocation22_spill] sm:$0xff] %v6212_v30  ;;  %v618_v9 = vsel %vm540_vm2, %v616_v7, %v617_v45  ;;  %v630_v14 = vrot.slane %v6016_v2, 2  ;;  %v632_v27 = vrot.slane %v5994_v55, 2  ;;  %v633_v38 = vrot.slane %v5996_v56, 2 }
  0x55   : > { %v620_v59 = vsel %vm540_vm2, %v617_v45, %v619_v47  ;;  %v637_v61 = vrot.slane %v6020_v5, 2  ;;  %v638_v8 = vrot.slane %v6022_v6, 2  ;;  %v640_v62 = vrot.slane %v6029_v10, 2  ;;  %4373 = vrot.lane.b32.xlu0 %v6212_v30, %s5724_s18 }
  0x56   : > { %v6234_v13 = vpack.i.bf16 %v615_v33, %v613_v24  ;;  %v4392_v12 = vpack.i.bf16 %v626_v17, %v624_v11  ;;  %v6238_v2 = vpack.i.bf16 %v620_v59, %v618_v9  ;;  %v629_v7 = vsel %vm621_vm3, %v627_v25, %v628_v57 }
  0x57   : > { %4378 = vrot.lane.b32.xlu1 %v6214_v48, %s5724_s18  ;;  %v631_v45 = vsel %vm621_vm3, %v628_v57, %v630_v14  ;;  %v634_v47 = vsel %vm621_vm3, %v632_v27, %v633_v38  ;;  %v636_v26 = vsel %vm621_vm3, %v633_v38, %v635_v39  ;;  %v639_v10 = vsel %vm621_vm3, %v637_v61, %v638_v8 }
  0x58   : > { %v641_v30 = vsel %vm621_vm3, %v638_v8, %v640_v62  ;;  %v642_v33 = vrot.slane %v6032_v15, 2  ;;  %v643_v11 = vrot.slane %v6034_v16, 2  ;;  %v645_v17 = vrot.slane %v6041_v21, 2 }
  0x59   : > { %4383 = vrot.lane.b32.xlu0 %v6234_v13, %s5724_s18  ;;  %v647_v25 = vrot.slane %v6043_v22, 2  ;;  %v648_v24 = vrot.slane %v6045_v23, 2  ;;  %v650_v57 = vrot.slane %v6051_v28, 2  ;;  %v652_v39 = vrot.slane %v6053_v29, 2 }
  0x5a   : > { %v653_v9 = vrot.slane %v6062_v34, 2  ;;  %v655_v14 = vrot.slane %v6064_v35, 2  ;;  %v6259_v27 = vpack.i.bf16 %v631_v45, %v629_v7  ;;  %v6261_v38 = vpack.i.bf16 %v636_v26, %v634_v47 }
  0x5b   : > { %4388 = vrot.lane.b32.xlu1 %v6238_v2, %s5724_s18  ;;  %v6263_v21 = vpack.i.bf16 %v641_v30, %v639_v10  ;;  %v644_v28 = vsel %vm621_vm3, %v642_v33, %v643_v11  ;;  %v646_v59 = vsel %vm621_vm3, %v643_v11, %v645_v17  ;;  %v649_v61 = vsel %vm621_vm3, %v647_v25, %v648_v24 }
  0x5c   : > { %v657_v35 = vrot.slane %v6066_v36, 2  ;;  %v651_v8 = vsel %vm621_vm3, %v648_v24, %v650_v57  ;;  %v654_v62 = vsel %vm621_vm3, %v652_v39, %v653_v9  ;;  %v656_v26 = vsel %vm621_vm3, %v653_v9, %v655_v14 }
  0x5d   : > { %4393 = vrot.lane.b32.xlu0 %v4392_v12, %s5725_s19  ;;  %v658_v30 = vrot.slane %v6073_v41, 2  ;;  %v660_v12 = vrot.slane %v6075_v43, 2  ;;  %v662_v7 = vrot.slane %v6077_v44, 2  ;;  %v663_v45 = vrot.slane %v6086_v49, 2 }
  0x5e   : > { %v665_v47 = vrot.slane %v6092_v54, 2  ;;  %v667_v10 = vrot.slane %v6094_v58, 2  ;;  %v668_v33 = vrot.slane %v6102_v3, 2  ;;  %v670_v11 = vrot.slane %v6104_v4, 2 }
  0x5f   : > { %4398 = vrot.lane.b32.xlu1 %v6259_v27, %s5725_s19  ;;  %v6285_v17 = vpack.i.bf16 %v646_v59, %v644_v28  ;;  %v6287_v25 = vpack.i.bf16 %v651_v8, %v649_v61  ;;  %v6289_v43 = vpack.i.bf16 %v656_v26, %v654_v62  ;;  %v659_v54 = vsel %vm621_vm3, %v657_v35, %v658_v30 }
  0x60   : > { %v661_v24 = vsel %vm621_vm3, %v658_v30, %v660_v12  ;;  %v664_v57 = vsel %vm621_vm3, %v662_v7, %v663_v45  ;;  %v666_v4 = vsel %vm621_vm3, %v663_v45, %v665_v47  ;;  %v669_v39 = vsel %vm621_vm3, %v667_v10, %v668_v33  ;;  %v9185_v30 = vld [vmem:[#allocation15_spill] sm:$0xff] }
  0x61   : > { %4403 = vrot.lane.b32.xlu0 %v6261_v38, %s5725_s19  ;;  %v671_v9 = vsel %vm621_vm3, %v668_v33, %v670_v11  ;;  %v672_v14 = vrot.slane %v6111_v18, 2  ;;  %v673_v28 = vrot.slane %v6113_v19, 2  ;;  %v675_v59 = vrot.slane %v6115_v20, 2  ;;  %v9187_v11 = vld [vmem:[#allocation16_spill] sm:$0xff] }
  0x62   : > { %v677_v61 = vrot.slane %v6124_v31, 2  ;;  %v678_v35 = vrot.slane %v6131_v40, 2  ;;  %v680_v8 = vrot.slane %v6133_v46, 2  ;;  %v682_v62 = vrot.slane %v6141_v52, 2 }
  0x63   : > { %4408 = vrot.lane.b32.xlu1 %v6263_v21, %s5725_s19  ;;  %v683_v26 = vrot.slane %v6143_v53, 2  ;;  %v685_v12 = vrot.slane %v9185_v30, 2  ;;  %v6312_v7 = vpack.i.bf16 %v661_v24, %v659_v54  ;;  %v6314_v45 = vpack.i.bf16 %v666_v4, %v664_v57  ;;  %v9188_v57 = vld [vmem:[#allocation17_spill] sm:$0xff] }
  0x64   : > { %v6316_v20 = vpack.i.bf16 %v671_v9, %v669_v39  ;;  %v674_v47 = vsel %vm621_vm3, %v672_v14, %v673_v28  ;;  %v676_v46 = vsel %vm621_vm3, %v673_v28, %v675_v59  ;;  %v679_v10 = vsel %vm621_vm3, %v677_v61, %v678_v35  ;;  %v9189_v39 = vld [vmem:[#allocation19_spill] sm:$0xff] }
  0x65   : > { %4413 = vrot.lane.b32.xlu0 %v6285_v17, %s5725_s19  ;;  %9186 = vst [vmem:[#allocation15_spill] sm:$0xff] %v6312_v7  ;;  %v681_v33 = vsel %vm621_vm3, %v678_v35, %v680_v8  ;;  %v687_v30 = vrot.slane %v9187_v11, 2  ;;  %v684_v54 = vsel %vm621_vm3, %v682_v62, %v683_v26  ;;  %v686_v24 = vsel %vm621_vm3, %v683_v26, %v685_v12  ;;  %v9190_v59 = vld [vmem:[#allocation7_spill] sm:$0xff] }
  0x66   : > { %v688_v4 = vrot.slane %v9188_v57, 2  ;;  %v690_v9 = vrot.slane %v9189_v39, 2  ;;  %v692_v14 = vrot.slane %v6168_v37, 2  ;;  %v693_v28 = vrot.slane %v6177_v50, 2 }
  0x67   : > { %4418 = vrot.lane.b32.xlu1 %v6287_v25, %s5725_s19  ;;  %v4121_v61 = vunpack.c.h.bf16 %v9190_v59  ;;  %v6336_v35 = vpack.i.bf16 %v676_v46, %v674_v47  ;;  %v6338_v8 = vpack.i.bf16 %v681_v33, %v679_v10  ;;  %v6340_v62 = vpack.i.bf16 %v686_v24, %v684_v54 }
  0x68   : > { %v689_v26 = vsel %vm621_vm3, %v687_v30, %v688_v4  ;;  %v691_v12 = vsel %vm621_vm3, %v688_v4, %v690_v9  ;;  %v695_v39 = vrot.slane %v6179_v51, 2  ;;  %v694_v47 = vsel %vm621_vm3, %v692_v14, %v693_v28  ;;  %v6355_v30 = vld [vmem:[#allocation2 + $0x180] sm:$0xff] }
  0x69   : > { %4423 = vrot.lane.b32.xlu0 %v6289_v43, %s5725_s19  ;;  %9191 = vst [vmem:[#allocation16_spill] sm:$0xff] %v6338_v8  ;;  %430 = vst.msk [vmem:[#allocation2 + $0x189] sm:$0xff] %vm278_vm0, %v4121_v61  ;;  %v698_v46 = vrot.slane %v6186_v60, 2  ;;  %v700_v10 = vrot.slane %v6196_v0, 2  ;;  %v6359_v51 = vpack.i.bf16 %v691_v12, %v689_v26  ;;  %v705_v54 = vrot.slane %v6355_v30, 1 }
  0x6a   : > { %v696_v33 = vsel %vm621_vm3, %v693_v28, %v695_v39  ;;  %v9192_v24 = vmov 0.0   ;;  %v710_v28 = vrot.slane %v6355_v30, 2 }
  0x6b   : > { %4428 = vrot.lane.b32.xlu1 %v6312_v7, %s5725_s19  ;;  %v697_v7 = vrot.slane %v6184_v42, 2  ;;  %2112 = vst.msk [vmem:[#allocation3] sm:$0xff] %vm1528_vm4, %v9192_v24  ;;  %2113 = vst.msk [vmem:[#allocation3 + $0x8] sm:$0xff] %vm1528_vm4, %v9192_v24  ;;  %v701_v4 = vsel %vm621_vm3, %v698_v46, %v700_v10  ;;  %v6439_v59 = vpack.i.bf16 %v696_v33, %v694_v47 }
  0x6c   : > { %2116 = vst.msk [vmem:[#allocation3 + $0x18] sm:$0xff] %vm1528_vm4, %v9192_v24  ;;  %2117 = vst.msk [vmem:[#allocation3 + $0x20] sm:$0xff] %vm1528_vm4, %v9192_v24  ;;  %v4472_v33 = vpack.i.bf16 %v6010_v1, %v6008_v63  ;;  %v6473_v63 = vpack.i.bf16 %v6034_v16, %v6032_v15  ;;  %v6488_v1 = vpack.i.bf16 %v6073_v41, %v6066_v36  ;;  %v9193_v36 = vld [vmem:[#allocation9_spill] sm:$0xff]  ;;  %v9194_v41 = vld [vmem:[#allocation8_spill] sm:$0xff] }
  0x6d   : > { %4433 = vrot.lane.b32.xlu0 %v6314_v45, %s5725_s19  ;;  %2119 = vst.msk [vmem:[#allocation3 + $0x30] sm:$0xff] %vm1528_vm4, %v9192_v24  ;;  %2120 = vst.msk [vmem:[#allocation3 + $0x38] sm:$0xff] %vm1528_vm4, %v9192_v24  ;;  %v699_v0 = vsel %vm621_vm3, %v697_v7, %v698_v46  ;;  %v6503_v15 = vpack.i.bf16 %v6113_v19, %v6111_v18  ;;  %v6508_v16 = vpack.i.bf16 %v6131_v40, %v6124_v31  ;;  %v9201_v18 = vld [vmem:[#allocation20_spill] sm:$0xff]  ;;  %v9202_v31 = vld [vmem:[#allocation21_spill] sm:$0xff] }
  0x6e   : > { %2122 = vst.msk [vmem:[#allocation3 + $0x48] sm:$0xff] %vm1528_vm4, %v9192_v24  ;;  %2123 = vst.msk [vmem:[#allocation3 + $0x50] sm:$0xff] %vm1528_vm4, %v9192_v24 }
  0x6f   : > { %4438 = vrot.lane.b32.xlu1 %v6316_v20, %s5725_s19  ;;  %2125 = vst.msk [vmem:[#allocation3 + $0x60] sm:$0xff] %vm1528_vm4, %v9192_v24  ;;  %2126 = vst.msk [vmem:[#allocation3 + $0x68] sm:$0xff] %vm1528_vm4, %v9192_v24 }
  0x70   : > { %2128 = vst.msk [vmem:[#allocation3 + $0x78] sm:$0xff] %vm1528_vm4, %v9192_v24  ;;  %2129 = vst.msk [vmem:[#allocation3 + $0x80] sm:$0xff] %vm1528_vm4, %v9192_v24  ;;  %v480_v9 = vld [vmem:[#allocation2 + $0x188] sm:$0xff]  ;;  %v481_v14 = vld [vmem:[#allocation2 + $0x190] sm:$0x3] }
  0x71   : > { %4443 = vrot.lane.b32.xlu0 %v6336_v35, %s5725_s19  ;;  %2131 = vst.msk [vmem:[#allocation3 + $0x90] sm:$0xff] %vm1528_vm4, %v9192_v24  ;;  %2132 = vst.msk [vmem:[#allocation3 + $0x98] sm:$0xff] %vm1528_vm4, %v9192_v24  ;;  %v706_v61 = vrot.slane %v480_v9, 1  ;;  %v708_v26 = vrot.slane %v481_v14, 1  ;;  %v711_v12 = vrot.slane %v480_v9, 2  ;;  %v713_v39 = vrot.slane %v481_v14, 2 }
  0x72   : > { %2134 = vst.msk [vmem:[#allocation3 + $0xa8] sm:$0xff] %vm1528_vm4, %v9192_v24  ;;  %2135 = vst.msk [vmem:[#allocation3 + $0xb0] sm:$0xff] %vm1528_vm4, %v9192_v24 }
  0x73   : > { %4448 = vrot.lane.b32.xlu1 %v6338_v8, %s5725_s19  ;;  %2137 = vst.msk [vmem:[#allocation3 + $0xc0] sm:$0xff] %vm1528_vm4, %v9192_v24  ;;  %2138 = vst.msk [vmem:[#allocation3 + $0xc8] sm:$0xff] %vm1528_vm4, %v9192_v24  ;;  %v707_v7 = vsel %vm540_vm2, %v705_v54, %v706_v61  ;;  %v709_v46 = vsel %vm540_vm2, %v706_v61, %v708_v26  ;;  %v712_v8 = vsel %vm621_vm3, %v710_v28, %v711_v12  ;;  %v9204_v26 = vld [vmem:[#allocation15_spill] sm:$0xff] }
  0x74   : > { %2140 = vst.msk [vmem:[#allocation3 + $0xd8] sm:$0xff] %vm1528_vm4, %v9192_v24  ;;  %2141 = vst.msk [vmem:[#allocation3 + $0xe0] sm:$0xff] %vm1528_vm4, %v9192_v24  ;;  %v6447_v10 = vpack.i.bf16 %v709_v46, %v707_v7  ;;  %v714_v47 = vsel %vm621_vm3, %v711_v12, %v713_v39  ;;  %v6461_v54 = vpack.i.bf16 %v5996_v56, %v5994_v55 }
  0x75   : > { %2143 = vst.msk [vmem:[#allocation3 + $0xf0] sm:$0xff] %vm1528_vm4, %v9192_v24  ;;  %2144 = vst.msk [vmem:[#allocation3 + $0xf8] sm:$0xff] %vm1528_vm4, %v9192_v24  ;;  %4453 = vrot.lane.b32.xlu0 %v6340_v62, %s5725_s19  ;;  %v6455_v14 = vpack.i.bf16 %v714_v47, %v712_v8  ;;  %v6478_v55 = vpack.i.bf16 %v6045_v23, %v6043_v22  ;;  %v6483_v56 = vpack.i.bf16 %v6062_v34, %v6053_v29  ;;  %v9208_v47 = vld [vmem:[#allocation16_spill] sm:$0xff] }
  0x76   : > { %2146 = vst.msk [vmem:[#allocation3 + $0x108] sm:$0xff] %vm1528_vm4, %v9192_v24  ;;  %2147 = vst.msk [vmem:[#allocation3 + $0x110] sm:$0xff] %vm1528_vm4, %v9192_v24  ;;  %v6513_v22 = vpack.i.bf16 %v6143_v53, %v6141_v52  ;;  %v6518_v23 = vpack.i.bf16 %v9188_v57, %v9187_v11  ;;  %v6523_v29 = vpack.i.bf16 %v6177_v50, %v6168_v37  ;;  %v9195_v37 = vld [vmem:[#allocation10_spill] sm:$0xff] }
  0x77   : > { %2149 = vst.msk [vmem:[#allocation3 + $0x120] sm:$0xff] %vm1528_vm4, %v9192_v24  ;;  %2150 = vst.msk [vmem:[#allocation3 + $0x128] sm:$0xff] %vm1528_vm4, %v9192_v24  ;;  %4458 = vrot.lane.b32.xlu1 %v6359_v51, %s5725_s19  ;;  %v6528_v34 = vpack.i.bf16 %v6186_v60, %v6184_v42  ;;  %v9197_v42 = vld [vmem:[#allocation12_spill] sm:$0xff]  ;;  %v9203_v53 = vld [vmem:[#allocation22_spill] sm:$0xff] }
  0x78   : > { %2152 = vst.msk [vmem:[#allocation3 + $0x138] sm:$0xff] %vm1528_vm4, %v9192_v24  ;;  %2153 = vst.msk [vmem:[#allocation3 + $0x140] sm:$0xff] %vm1528_vm4, %v9192_v24 }
  0x79   : > { %2155 = vst.msk [vmem:[#allocation3 + $0x150] sm:$0xff] %vm1528_vm4, %v9192_v24  ;;  %2156 = vst.msk [vmem:[#allocation3 + $0x158] sm:$0xff] %vm1528_vm4, %v9192_v24  ;;  %4463 = vrot.lane.b32.xlu0 %v6439_v59, %s5725_s19 }
  0x7a   : > { %2158 = vst.msk [vmem:[#allocation3 + $0x168] sm:$0xff] %vm1528_vm4, %v9192_v24  ;;  %2159 = vst.msk [vmem:[#allocation3 + $0x170] sm:$0xff] %vm1528_vm4, %v9192_v24 }
  0x7b   : > { %2161 = vst.msk [vmem:[#allocation3 + $0x180] sm:$0xff] %vm1528_vm4, %v9192_v24  ;;  %2162 = vst.msk [vmem:[#allocation3 + $0x188] sm:$0xff] %vm1528_vm4, %v9192_v24 }
  0x7c   : > { %2164 = vst.msk [vmem:[#allocation3 + $0x198] sm:$0xff] %vm1528_vm4, %v9192_v24  ;;  %2165 = vst.msk [vmem:[#allocation3 + $0x1a0] sm:$0xff] %vm1528_vm4, %v9192_v24  ;;  %v6443_v24 = vpack.i.bf16 %v701_v4, %v699_v0  ;;  %v6464_v0 = vpack.i.bf16 %v480_v9, %v6355_v30  ;;  %v6468_v4 = vpack.i.bf16 %v6022_v6, %v6020_v5 }
  0x7d   : > { %4473 = vrot.lane.b32.xlu0 %v4472_v33, %s5726_s20  ;;  %v6493_v5 = vpack.i.bf16 %v6086_v49, %v6077_v44  ;;  %v6498_v6 = vpack.i.bf16 %v6102_v3, %v6094_v58  ;;  %v9196_v44 = vld [vmem:[#allocation11_spill] sm:$0xff]  ;;  %v9198_v49 = vld [vmem:[#allocation13_spill] sm:$0xff]  ;;  %v9199_v58 = vld [vmem:[#allocation14_spill] sm:$0xff] }
  0x7e   : > { %4468 = vrot.lane.b32.xlu1 %v6443_v24, %s5725_s19  ;;  %v9200_v3 = vld [vmem:[#allocation18_spill] sm:$0xff] }
  0x81   : > { %4483 = vrot.lane.b32.xlu0 %v6468_v4, %s5726_s20 }
  0x82   : > { %4478 = vrot.lane.b32.xlu1 %v6461_v54, %s5726_s20 }
  0x85   : > { %4493 = vrot.lane.b32.xlu0 %v6478_v55, %s5726_s20 }
  0x86   : > { %4488 = vrot.lane.b32.xlu1 %v6473_v63, %s5726_s20 }
  0x89   : > { %4503 = vrot.lane.b32.xlu0 %v6488_v1, %s5726_s20 }
  0x8a   : > { %4498 = vrot.lane.b32.xlu1 %v6483_v56, %s5726_s20 }
  0x8d   : > { %4513 = vrot.lane.b32.xlu0 %v6498_v6, %s5726_s20 }
  0x8e   : > { %4508 = vrot.lane.b32.xlu1 %v6493_v5, %s5726_s20 }
  0x91   : > { %4523 = vrot.lane.b32.xlu0 %v6508_v16, %s5726_s20 }
  0x92   : > { %4518 = vrot.lane.b32.xlu1 %v6503_v15, %s5726_s20 }
  0x95   : > { %4533 = vrot.lane.b32.xlu0 %v6518_v23, %s5726_s20 }
  0x96   : > { %4528 = vrot.lane.b32.xlu1 %v6513_v22, %s5726_s20 }
  0x97   : > { %v6551_v19 = vpop.permute.xlu0 %4313 }
  0x99   : > { %4543 = vrot.lane.b32.xlu0 %v6528_v34, %s5726_s20 }
  0x9a   : > { %4538 = vrot.lane.b32.xlu1 %v6523_v29, %s5726_s20 }
  0x9d   : > { %4553 = vrot.lane.b32.xlu0 %v9193_v36, %s5727_s21 }
  0x9e   : > { %4548 = vrot.lane.b32.xlu1 %v6464_v0, %s5726_s20 }
  0xa1   : > { %4563 = vrot.lane.b32.xlu0 %v9195_v37, %s5727_s21 }
  0xa2   : > { %4558 = vrot.lane.b32.xlu1 %v9194_v41, %s5727_s21 }
  0xa5   : > { %4573 = vrot.lane.b32.xlu0 %v9197_v42, %s5727_s21 }
  0xa6   : > { %4568 = vrot.lane.b32.xlu1 %v9196_v44, %s5727_s21 }
  0xa9   : > { %4583 = vrot.lane.b32.xlu0 %v9199_v58, %s5727_s21 }
  0xaa   : > { %4578 = vrot.lane.b32.xlu1 %v9198_v49, %s5727_s21 }
  0xad   : > { %4593 = vrot.lane.b32.xlu0 %v9201_v18, %s5727_s21 }
  0xae   : > { %4588 = vrot.lane.b32.xlu1 %v9200_v3, %s5727_s21 }
  0xb1   : > { %4603 = vrot.lane.b32.xlu0 %v9202_v31, %s5727_s21  ;;  %v6557_v40 = vpop.permute.xlu1 %4323 }
  0xb2   : > { %4598 = vrot.lane.b32.xlu1 %v6191_v32, %s5727_s21 }
  0xb3   : > { %v6559_v52 = vpop.permute.xlu0 %4318 }
  0xb5   : > { %4613 = vrot.lane.b32.xlu0 %v6214_v48, %s5727_s21  ;;  %v6565_v50 = vpop.permute.xlu1 %4328 }
  0xb6   : > { %4608 = vrot.lane.b32.xlu1 %v9203_v53, %s5727_s21 }
  0xb7   : > { %v6567_v60 = vpop.permute.xlu0 %4333 }
  0xb9   : > { %4623 = vrot.lane.b32.xlu0 %v6238_v2, %s5727_s21  ;;  %v6573_v11 = vpop.permute.xlu1 %4338 }
  0xba   : > { %4618 = vrot.lane.b32.xlu1 %v6234_v13, %s5727_s21 }
  0xbb   : > { %v6575_v57 = vpop.permute.xlu0 %4343 }
  0xbd   : > { %4633 = vrot.lane.b32.xlu0 %v6259_v27, %s5728_s22  ;;  %v6581_v8 = vpop.permute.xlu1 %4348 }
  0xbe   : > { %4628 = vrot.lane.b32.xlu1 %v6447_v10, %s5727_s21 }
  0xbf   : > { %v6583_v30 = vpop.permute.xlu0 %4353 }
  0xc1   : > { %4643 = vrot.lane.b32.xlu0 %v6263_v21, %s5728_s22  ;;  %v6589_v9 = vpop.permute.xlu1 %4358 }
  0xc2   : > { %4638 = vrot.lane.b32.xlu1 %v6261_v38, %s5728_s22 }
  0xc3   : > { %v6591_v28 = vpop.permute.xlu0 %4363 }
  0xc5   : > { %4653 = vrot.lane.b32.xlu0 %v6287_v25, %s5728_s22  ;;  %v6597_v27 = vpop.permute.xlu1 %4368 }
  0xc6   : > { %4648 = vrot.lane.b32.xlu1 %v6285_v17, %s5728_s22 }
  0xc7   : > { %v6599_v61 = vpop.permute.xlu0 %4373 }
  0xc9   : > { %4663 = vrot.lane.b32.xlu0 %v9204_v26, %s5728_s22  ;;  %v6605_v12 = vpop.permute.xlu1 %4378 }
  0xca   : > { %4658 = vrot.lane.b32.xlu1 %v6289_v43, %s5728_s22 }
  0xcb   : > { %v6607_v39 = vpop.permute.xlu0 %4383 }
  0xcc   : > { %9205 = vst [vmem:[#allocation17_spill] sm:$0xff] %v6607_v39 }
  0xcd   : > { %4673 = vrot.lane.b32.xlu0 %v6316_v20, %s5728_s22  ;;  %v6613_v7 = vpop.permute.xlu1 %4388 }
  0xce   : > { %4668 = vrot.lane.b32.xlu1 %v6314_v45, %s5728_s22  ;;  %9206 = vst [vmem:[#allocation19_spill] sm:$0xff] %v6613_v7 }
  0xcf   : > { %v6615_v46 = vpop.permute.xlu0 %4393 }
  0xd0   : > { %9207 = vst [vmem:[#allocation7_spill] sm:$0xff] %v6615_v46 }
  0xd1   : > { %4683 = vrot.lane.b32.xlu0 %v9208_v47, %s5728_s22  ;;  %v6621_v33 = vpop.permute.xlu1 %4398 }
  0xd2   : > { %4678 = vrot.lane.b32.xlu1 %v6336_v35, %s5728_s22  ;;  %9209 = vst [vmem:[#allocation9_spill] sm:$0xff] %v6621_v33 }
  0xd3   : > { %v6623_v36 = vpop.permute.xlu0 %4403 }
  0xd5   : > { %4693 = vrot.lane.b32.xlu0 %v6359_v51, %s5728_s22  ;;  %v6629_v39 = vpop.permute.xlu1 %4408 }
  0xd6   : > { %4688 = vrot.lane.b32.xlu1 %v6340_v62, %s5728_s22  ;;  %9210 = vst [vmem:[#allocation8_spill] sm:$0xff] %v6629_v39 }
  0xd7   : > { %v6631_v7 = vpop.permute.xlu0 %4413 }
  0xd8   : > { %9211 = vst [vmem:[#allocation10_spill] sm:$0xff] %v6631_v7 }
  0xd9   : > { %4703 = vrot.lane.b32.xlu0 %v6443_v24, %s5728_s22  ;;  %v6637_v46 = vpop.permute.xlu1 %4418 }
  0xda   : > { %4698 = vrot.lane.b32.xlu1 %v6439_v59, %s5728_s22  ;;  %9212 = vst [vmem:[#allocation11_spill] sm:$0xff] %v6637_v46 }
  0xdb   : > { %v6639_v33 = vpop.permute.xlu0 %4423 }
  0xdc   : > { %9213 = vst [vmem:[#allocation12_spill] sm:$0xff] %v6639_v33 }
  0xdd   : > { %4713 = vrot.lane.b32.xlu0 %v6461_v54, %s5729_s23  ;;  %v6645_v39 = vpop.permute.xlu1 %4428 }
  0xde   : > { %4708 = vrot.lane.b32.xlu1 %v6455_v14, %s5728_s22  ;;  %9214 = vst [vmem:[#allocation13_spill] sm:$0xff] %v6645_v39  ;;  %s4057_s22 = sshll.u32 %s5799_s28, 12 }
  0xdf   : > { %v6647_v7 = vpop.permute.xlu0 %4433  ;;  %s9020_s18 = scalar_lea.hbm %s9078_s7, %s4057_s22 }
  0xe1   : > { %4723 = vrot.lane.b32.xlu0 %v6473_v63, %s5729_s23  ;;  %v6653_v46 = vpop.permute.xlu1 %4438 }
  0xe2   : > { %4718 = vrot.lane.b32.xlu1 %v6468_v4, %s5729_s23 }
  0xe3   : > { %v6655_v33 = vpop.permute.xlu0 %4443 }
  0xe5   : > { %4733 = vrot.lane.b32.xlu0 %v6483_v56, %s5729_s23  ;;  %v6661_v54 = vpop.permute.xlu1 %4448 }
  0xe6   : > { %4728 = vrot.lane.b32.xlu1 %v6478_v55, %s5729_s23 }
  0xe7   : > { %v6663_v39 = vpop.permute.xlu0 %4453 }
  0xe9   : > { %4743 = vrot.lane.b32.xlu0 %v6493_v5, %s5729_s23  ;;  %v6669_v4 = vpop.permute.xlu1 %4458 }
  0xea   : > { %4738 = vrot.lane.b32.xlu1 %v6488_v1, %s5729_s23  ;;  %v5592_v1 = vld [vmem:[%s9072_s1] sm:$0xff]  }
  0xeb   : > { %v6671_v63 = vpop.permute.xlu0 %4463  ;;  %4177 = vmatprep.subr.bf16.mxu0 %v5592_v1 }
  0xec   : > { %4178 = vmatpush3.bf16.msra.mxu0 %v5592_v1 }
  0xed   : > { %4753 = vrot.lane.b32.xlu0 %v6503_v15, %s5729_s23  ;;  %v5593_v15 = vld [vmem:[%s9072_s1 + $0x8] sm:$0xff]  }
  0xee   : > { %4748 = vrot.lane.b32.xlu1 %v6498_v6, %s5729_s23  ;;  %4179 = vmatprep.subr.bf16.mxu0 %v5593_v15 }
  0xef   : > { %v6679_v56 = vpop.permute.xlu0 %4473 }
  0xf0   : > { %v6677_v55 = vpop.permute.xlu1 %4468  ;;  %9215 = vst [vmem:[#allocation14_spill] sm:$0xff] %v6679_v56  ;;  %v6699_v56 = vld [vmem:[#allocation2 + $0x1a0] sm:$0xff]  ;;  %4180 = vmatpush3.bf16.msra.mxu0 %v5593_v15 }
  0xf1   : > { %4763 = vrot.lane.b32.xlu0 %v6513_v22, %s5729_s23 }
  0xf2   : > { %4758 = vrot.lane.b32.xlu1 %v6508_v16, %s5729_s23  ;;  %v6697_v16 = vld [vmem:[#allocation2 + $0x198] sm:$0xff] }
  0xf3   : > { %v6690_v6 = vpop.permute.xlu0 %4483 }
  0xf4   : > { %v6688_v5 = vpop.permute.xlu1 %4478  ;;  %9216 = vst [vmem:[#allocation18_spill] sm:$0xff] %v6690_v6  ;;  %v5594_v6 = vld [vmem:[%s9072_s1 + $0x10] ss:$0 sps:$4 sm:$0x33]  }
  0xf5   : > { %4773 = vrot.lane.b32.xlu0 %v6523_v29, %s5729_s23  ;;  %4257 = vmatprep.subr.msk.bf16.mxu0 %vm1839_vm5, %v5594_v6 }
  0xf6   : > { %4768 = vrot.lane.b32.xlu1 %v6518_v23, %s5729_s23  ;;  %v4787_v23 = vpack.i.bf16 %v6699_v56, %v6697_v16 }
  0xf7   : > { %v6705_v1 = vpop.permute.xlu0 %4493 }
  0xf8   : > { %v6703_v22 = vpop.permute.xlu1 %4488  ;;  %9218 = vst [vmem:[#allocation21_spill] sm:$0xff] %v6705_v1  ;;  %v1841_v1 = vsel %vm1839_vm5, %v5594_v6, 0  ;;  %vm3494_vm5 = vcmask 523264  }
  0xf9   : > { %9217 = vst [vmem:[#allocation20_spill] sm:$0xff] %v6703_v22  ;;  %4783 = vrot.lane.b32.xlu0 %v6464_v0, %s5729_s23  ;;  %4182 = vmatpush3.bf16.msra.mxu0 %v1841_v1 }
  0xfa   : > { %4778 = vrot.lane.b32.xlu1 %v6528_v34, %s5729_s23 }
  0xfb   : > { %v6718_v15 = vpop.permute.xlu0 %4503 }
  0xfc   : > { %v6716_v29 = vpop.permute.xlu1 %4498 }
  0xfd   : > { %4793 = vrot.lane.b32.xlu0 %v9194_v41, %s5730_s16 }
  0xfe   : > { %4788 = vrot.lane.b32.xlu1 %v4787_v23, %s5729_s23 }
  0xff   : > { %v6725_v22 = vpop.permute.xlu0 %4513 }
 0x100   : > { %v6723_v34 = vpop.permute.xlu1 %4508 }
 0x101   : > { %4803 = vrot.lane.b32.xlu0 %v6261_v38, %s5731_s17 }
 0x102   : > { %4798 = vrot.lane.b32.xlu1 %v9195_v37, %s5730_s16 }
 0x103   : > { %v6733_v23 = vpop.permute.xlu0 %4523 }
 0x104   : > { %v6731_v0 = vpop.permute.xlu1 %4518  ;;  %9220 = vst [vmem:[#allocation15_spill] sm:$0xff] %v6733_v23  ;;  %v5631_v23 = vld [vmem:[#allocation2 + $0x168] sm:$0xff] }
 0x105   : > { %9219 = vst [vmem:[#allocation22_spill] sm:$0xff] %v6731_v0  ;;  %4813 = vrot.lane.b32.xlu0 %v9196_v44, %s5730_s16 }
 0x106   : > { %4808 = vrot.lane.b32.xlu1 %v6263_v21, %s5731_s17 }
 0x107   : > { %v6741_v6 = vpop.permute.xlu0 %4533 }
 0x108   : > { %v6739_v41 = vpop.permute.xlu1 %4528  ;;  %9222 = vst [vmem:[#allocation23_spill] sm:$0xff] %v6741_v6 }
 0x109   : > { %9221 = vst [vmem:[#allocation16_spill] sm:$0xff] %v6739_v41  ;;  %4823 = vrot.lane.b32.xlu0 %v6285_v17, %s5731_s17 }
 0x10a   : > { %4818 = vrot.lane.b32.xlu1 %v9197_v42, %s5730_s16 }
 0x10b   : > { %v6749_v37 = vpop.permute.xlu0 %4543 }
 0x10c   : > { %v6747_v38 = vpop.permute.xlu1 %4538  ;;  %9224 = vst [vmem:[#allocation25_spill] sm:$0xff] %v6749_v37 }
 0x10d   : > { %9223 = vst [vmem:[#allocation24_spill] sm:$0xff] %v6747_v38  ;;  %4833 = vrot.lane.b32.xlu0 %v9198_v49, %s5730_s16  ;;  %v5628_v38 = vld [vmem:[#allocation2 + $0x158] sm:$0xff] }
 0x10e   : > { %4828 = vrot.lane.b32.xlu1 %v6287_v25, %s5731_s17 }
 0x10f   : > { %v6757_v44 = vpop.permute.xlu0 %4553 }
 0x110   : > { %v6755_v21 = vpop.permute.xlu1 %4548  ;;  %9226 = vst [vmem:[#allocation27_spill] sm:$0xff] %v6757_v44 }
 0x111   : > { %9225 = vst [vmem:[#allocation26_spill] sm:$0xff] %v6755_v21  ;;  %4843 = vrot.lane.b32.xlu0 %v6289_v43, %s5731_s17  ;;  %v9251_v21 = vld [vmem:[#allocation9_spill] sm:$0xff] }
 0x112   : > { %4838 = vrot.lane.b32.xlu1 %v9199_v58, %s5730_s16 }
 0x113   : > { %v6765_v42 = vpop.permute.xlu0 %4563 }
 0x114   : > { %v6763_v17 = vpop.permute.xlu1 %4558  ;;  %9228 = vst [vmem:[#allocation29_spill] sm:$0xff] %v6765_v42  ;;  %v5605_v42 = vld [vmem:[#allocation2 + $0x18] sm:$0xff] }
 0x115   : > { %9227 = vst [vmem:[#allocation28_spill] sm:$0xff] %v6763_v17  ;;  %4853 = vrot.lane.b32.xlu0 %v9200_v3, %s5730_s16  ;;  %v9250_v17 = vld [vmem:[#allocation7_spill] sm:$0xff] }
 0x116   : > { %4848 = vrot.lane.b32.xlu1 %v9204_v26, %s5731_s17  ;;  %v4396_v44 = vunpack.i.h.bf16 %v9250_v17 }
 0x117   : > { %v6773_v49 = vpop.permute.xlu0 %4573 }
 0x118   : > { %v6771_v25 = vpop.permute.xlu1 %4568  ;;  %9230 = vst [vmem:[#allocation31_spill] sm:$0xff] %v6773_v49  ;;  %v4336_v49 = vunpack.i.h.bf16 %v6567_v60 }
 0x119   : > { %9229 = vst [vmem:[#allocation30_spill] sm:$0xff] %v6771_v25  ;;  %4863 = vrot.lane.b32.xlu0 %v6314_v45, %s5731_s17  ;;  %v5603_v25 = vld [vmem:[#allocation2 + $0x30] sm:$0xff] }
 0x11a   : > { %4858 = vrot.lane.b32.xlu1 %v9201_v18, %s5730_s16 }
 0x11b   : > { %v6781_v58 = vpop.permute.xlu0 %4583 }
 0x11c   : > { %v6779_v43 = vpop.permute.xlu1 %4578  ;;  %9232 = vst [vmem:[#allocation33_spill] sm:$0xff] %v6781_v58  ;;  %v4331_v58 = vunpack.i.h.bf16 %v6565_v50 }
 0x11d   : > { %9231 = vst [vmem:[#allocation32_spill] sm:$0xff] %v6779_v43  ;;  %4873 = vrot.lane.b32.xlu0 %v6191_v32, %s5730_s16 }
 0x11e   : > { %4868 = vrot.lane.b32.xlu1 %v6316_v20, %s5731_s17  ;;  %v484_v20 = vld [vmem:[#allocation2 + $0x1a8] sm:$0x3] }
 0x11f   : > { %v6789_v26 = vpop.permute.xlu0 %4593 }
 0x120   : > { %v6787_v3 = vpop.permute.xlu1 %4588  ;;  %9234 = vst [vmem:[#allocation35_spill] sm:$0xff] %v6789_v26  ;;  %v4325_v26 = vunpack.i.l.bf16 %v6557_v40 }
 0x121   : > { %9233 = vst [vmem:[#allocation34_spill] sm:$0xff] %v6787_v3  ;;  %4883 = vrot.lane.b32.xlu0 %v6336_v35, %s5731_s17  ;;  %v4316_v35 = vunpack.i.h.bf16 %v6551_v19  ;;  %v4320_v3 = vunpack.i.l.bf16 %v6559_v52 }
 0x122   : > { %4878 = vrot.lane.b32.xlu1 %v9202_v31, %s5730_s16  ;;  %v4315_v31 = vunpack.i.l.bf16 %v6551_v19  ;;  %v4321_v19 = vunpack.i.h.bf16 %v6559_v52 }
 0x123   : > { %v6797_v18 = vpop.permute.xlu0 %4603 }
 0x124   : > { %v6795_v45 = vpop.permute.xlu1 %4598  ;;  %9236 = vst [vmem:[#allocation37_spill] sm:$0xff] %v6797_v18  ;;  %v719_v18 = vrot.slane %v6699_v56, 1 }
 0x125   : > { %9235 = vst [vmem:[#allocation36_spill] sm:$0xff] %v6795_v45  ;;  %4893 = vrot.lane.b32.xlu0 %v9203_v53, %s5730_s16  ;;  %v718_v45 = vrot.slane %v6697_v16, 1 }
 0x126   : > { %4888 = vrot.lane.b32.xlu1 %v9208_v47, %s5731_s17  ;;  %v721_v47 = vrot.slane %v484_v20, 1 }
 0x127   : > { %v6805_v1 = vpop.permute.xlu0 %4613 }
 0x128   : > { %v6803_v32 = vpop.permute.xlu1 %4608  ;;  %9238 = vst [vmem:[#allocation39_spill] sm:$0xff] %v6805_v1  ;;  %v724_v1 = vrot.slane %v6699_v56, 2  ;;  %v5601_v56 = vld [vmem:[#allocation2] sm:$0xff] }
 0x129   : > { %9237 = vst [vmem:[#allocation38_spill] sm:$0xff] %v6803_v32  ;;  %4903 = vrot.lane.b32.xlu0 %v6340_v62, %s5731_s17  ;;  %v4326_v32 = vunpack.i.h.bf16 %v6557_v40  ;;  %v5600_v62 = vld [vmem:[#allocation2 + $0x8] sm:$0xff]  ;;  %v4330_v40 = vunpack.i.l.bf16 %v6565_v50  ;;  %v4335_v50 = vunpack.i.l.bf16 %v6567_v60 }
 0x12a   : > { %4898 = vrot.lane.b32.xlu1 %v6214_v48, %s5730_s16  ;;  %v723_v48 = vrot.slane %v6697_v16, 2  ;;  %v6832_v16 = vsel %vm278_vm0, %v5601_v56, %v4315_v31  ;;  %v4341_v56 = vunpack.i.h.bf16 %v6573_v11  ;;  %v5607_v60 = vld [vmem:[#allocation2 + $0x48] sm:$0xff] }
 0x12b   : > { %v6824_v43 = vpop.permute.xlu0 %4623 }
 0x12c   : > { %v6815_v53 = vpop.permute.xlu1 %4618  ;;  %9240 = vst [vmem:[#allocation41_spill] sm:$0xff] %v6824_v43  ;;  %v6841_v43 = vsel %vm540_vm2, %v718_v45, %v719_v18 }
 0x12d   : > { %9239 = vst [vmem:[#allocation40_spill] sm:$0xff] %v6815_v53  ;;  %v6829_v53 = vsel %vm278_vm0, %v5600_v62, %v4316_v35  ;;  %4913 = vrot.lane.b32.xlu0 %v6234_v13, %s5730_s16  ;;  %v726_v35 = vrot.slane %v484_v20, 2  ;;  %v5602_v62 = vld [vmem:[#allocation2 + $0x38] sm:$0xff]  ;;  %v6852_v13 = vsel %vm278_vm0, %v5603_v25, %v4325_v26  ;;  %v5606_v20 = vld [vmem:[#allocation2 + $0x50] sm:$0xff]  ;;  %v6868_v25 = vsel %vm278_vm0, %v5607_v60, %v4330_v40  ;;  %v5608_v26 = vld [vmem:[#allocation2 + $0x68] sm:$0xff] }
 0x12e   : > { %4908 = vrot.lane.b32.xlu1 %v6359_v51, %s5731_s17  ;;  %v6844_v51 = vsel %vm540_vm2, %v719_v18, %v721_v47  ;;  %v6847_v31 = vsel %vm278_vm0, %v5602_v62, %v4326_v32  ;;  %v6858_v18 = vsel %vm278_vm0, %v5605_v42, %v4320_v3  ;;  %v6861_v32 = vsel %vm278_vm0, %v5606_v20, %v4331_v58  ;;  %v5609_v62 = vld [vmem:[#allocation2 + $0x60] sm:$0xff] }
 0x12f   : > { %v6863_v47 = vpop.permute.xlu0 %4633  ;;  %v4340_v42 = vunpack.i.l.bf16 %v6573_v11  ;;  %v4937_v3 = vpack.i.bf16 %v6844_v51, %v6841_v43  ;;  %v4346_v58 = vunpack.i.h.bf16 %v6575_v57  ;;  %v6883_v40 = vsel %vm621_vm3, %v723_v48, %v724_v1  ;;  %v5610_v43 = vld [vmem:[#allocation2 + $0x80] sm:$0xff] }
 0x130   : > { %v6838_v52 = vpop.permute.xlu1 %4628  ;;  %9242 = vst [vmem:[#allocation43_spill] sm:$0xff] %v6863_v47  ;;  %v6889_v11 = vsel %vm278_vm0, %v5609_v62, %v4335_v50  ;;  %v6892_v51 = vsel %vm278_vm0, %v5610_v43, %v4341_v56  ;;  %v4356_v20 = vunpack.i.h.bf16 %v6583_v30  ;;  %v4355_v48 = vunpack.i.l.bf16 %v6583_v30  ;;  %v5611_v50 = vld [vmem:[#allocation2 + $0x78] sm:$0xff] }
 0x131   : > { %9241 = vst [vmem:[#allocation42_spill] sm:$0xff] %v6838_v52  ;;  %v5604_v52 = vld [vmem:[#allocation2 + $0x20] sm:$0xff]  ;;  %4923 = vrot.lane.b32.xlu0 %v6439_v59, %s5731_s17  ;;  %v4350_v59 = vunpack.i.l.bf16 %v6581_v8  ;;  %v4361_v60 = vunpack.i.h.bf16 %v6589_v9  ;;  %v6905_v56 = vsel %vm278_vm0, %v5611_v50, %v4340_v42  ;;  %v5612_v62 = vld [vmem:[#allocation2 + $0x98] sm:$0xff]  ;;  %v4370_v42 = vunpack.i.l.bf16 %v6597_v27 }
 0x132   : > { %v6855_v45 = vsel %vm278_vm0, %v5604_v52, %v4321_v19  ;;  %4918 = vrot.lane.b32.xlu1 %v6238_v2, %s5730_s16  ;;  %v6871_v19 = vsel %vm278_vm0, %v5608_v26, %v4336_v49  ;;  %v4345_v52 = vunpack.i.l.bf16 %v6575_v57  ;;  %v6886_v49 = vsel %vm621_vm3, %v724_v1, %v726_v35 }
 0x133   : > { %v4351_v57 = vunpack.i.h.bf16 %v6581_v8  ;;  %v4360_v1 = vunpack.i.l.bf16 %v6589_v9  ;;  %v6900_v35 = vpop.permute.xlu0 %4643  ;;  %v4366_v26 = vunpack.i.h.bf16 %v6591_v28  ;;  %v4365_v8 = vunpack.i.l.bf16 %v6591_v28  ;;  %v5613_v9 = vld [vmem:[#allocation2 + $0x90] sm:$0xff] }
 0x134   : > { %v6880_v2 = vpop.permute.xlu1 %4638  ;;  %9244 = vst [vmem:[#allocation45_spill] sm:$0xff] %v6900_v35  ;;  %v4947_v30 = vpack.i.bf16 %v6886_v49, %v6883_v40  ;;  %v6912_v43 = vsel %vm278_vm0, %v5612_v62, %v4346_v58  ;;  %v6915_v35 = vsel %vm278_vm0, %v5613_v9, %v4345_v52  ;;  %v5614_v28 = vld [vmem:[#allocation2 + $0xb0] sm:$0xff]  ;;  %v5615_v49 = vld [vmem:[#allocation2 + $0xa8] sm:$0xff]  ;;  %v4376_v52 = vunpack.i.h.bf16 %v6599_v61 }
 0x135   : > { %9243 = vst [vmem:[#allocation44_spill] sm:$0xff] %v6880_v2  ;;  %4933 = vrot.lane.b32.xlu0 %v6447_v10, %s5730_s16  ;;  %v6924_v40 = vsel %vm278_vm0, %v5614_v28, %v4351_v57  ;;  %v6927_v58 = vsel %vm278_vm0, %v5615_v49, %v4350_v59  ;;  %v4375_v62 = vunpack.i.l.bf16 %v6599_v61  ;;  %v5616_v9 = vld [vmem:[#allocation2 + $0xc8] sm:$0xff]  ;;  %v5617_v2 = vld [vmem:[#allocation2 + $0xc0] sm:$0xff]  ;;  %v5619_v28 = vld [vmem:[#allocation2 + $0xd8] sm:$0xff] }
 0x136   : > { %4928 = vrot.lane.b32.xlu1 %v6443_v24, %s5731_s17  ;;  %v4371_v24 = vunpack.i.h.bf16 %v6597_v27  ;;  %v6932_v27 = vsel %vm278_vm0, %v5616_v9, %v4356_v20  ;;  %v6935_v10 = vsel %vm278_vm0, %v5617_v2, %v4355_v48  ;;  %v6941_v59 = vsel %vm278_vm0, %v5619_v28, %v4360_v1  ;;  %v5620_v61 = vld [vmem:[#allocation2 + $0xf8] sm:$0xff]  ;;  %v5621_v9 = vld [vmem:[#allocation2 + $0xf0] sm:$0xff]  ;;  %v5623_v28 = vld [vmem:[#allocation2 + $0x108] sm:$0xff] }
 0x137   : > { %v6943_v49 = vpop.permute.xlu0 %4653  ;;  %v6947_v20 = vsel %vm278_vm0, %v5620_v61, %v4366_v26  ;;  %v6950_v2 = vsel %vm278_vm0, %v5621_v9, %v4365_v8  ;;  %v4381_v48 = vunpack.i.h.bf16 %v6605_v12  ;;  %v5624_v61 = vld [vmem:[#allocation2 + $0x128] sm:$0xff]  ;;  %v5625_v9 = vld [vmem:[#allocation2 + $0x120] sm:$0xff] }
 0x138   : > { %v6921_v50 = vpop.permute.xlu1 %4648  ;;  %9246 = vst [vmem:[#allocation47_spill] sm:$0xff] %v6943_v49  ;;  %v6958_v49 = vsel %vm278_vm0, %v5623_v28, %v4370_v42 }
 0x139   : > { %9245 = vst [vmem:[#allocation46_spill] sm:$0xff] %v6921_v50  ;;  %v5618_v50 = vld [vmem:[#allocation2 + $0xe0] sm:$0xff]  ;;  %4943 = vrot.lane.b32.xlu0 %v6455_v14, %s5731_s17  ;;  %v4401_v14 = vunpack.i.h.bf16 %v9251_v21 }
 0x13a   : > { %v6938_v57 = vsel %vm278_vm0, %v5618_v50, %v4361_v60  ;;  %4938 = vrot.lane.b32.xlu1 %v4937_v3, %s5730_s16  ;;  %v4380_v60 = vunpack.i.l.bf16 %v6605_v12  ;;  %v5622_v50 = vld [vmem:[#allocation2 + $0x110] sm:$0xff]  ;;  %v6967_v12 = vsel %vm278_vm0, %v5624_v61, %v4376_v52  ;;  %v5626_v52 = vld [vmem:[#allocation2 + $0x140] sm:$0xff]  ;;  %v5627_v61 = vld [vmem:[#allocation2 + $0x138] sm:$0xff]  ;;  %s5735_s16 = smov 64  }
 0x13b   : > { %v6955_v1 = vsel %vm278_vm0, %v5622_v50, %v4371_v24  ;;  %v9247_v3 = vld [vmem:[#allocation17_spill] sm:$0xff]  ;;  %v6970_v24 = vsel %vm278_vm0, %v5625_v9, %v4375_v62  ;;  %v9249_v50 = vld [vmem:[#allocation19_spill] sm:$0xff]  ;;  %v6978_v37 = vpop.permute.xlu0 %4663  ;;  %v6982_v62 = vsel %vm278_vm0, %v5626_v52, %v4381_v48 }
 0x13c   : > { %v4386_v47 = vunpack.i.h.bf16 %v9247_v3  ;;  %v4385_v26 = vunpack.i.l.bf16 %v9247_v3  ;;  %v6964_v8 = vpop.permute.xlu1 %4658  ;;  %v4391_v42 = vunpack.i.h.bf16 %v9249_v50  ;;  %v4390_v28 = vunpack.i.l.bf16 %v9249_v50  ;;  %9252 = vst [vmem:[#allocation19_spill] sm:$0xff] %v6978_v37 }
 0x13d   : > { %9248 = vst [vmem:[#allocation17_spill] sm:$0xff] %v6964_v8  ;;  %v4395_v3 = vunpack.i.l.bf16 %v9250_v17  ;;  %v4400_v8 = vunpack.i.l.bf16 %v9251_v21  ;;  %v6985_v9 = vsel %vm278_vm0, %v5627_v61, %v4380_v60  ;;  %v4406_v50 = vunpack.i.h.bf16 %v6623_v36  ;;  %v5629_v21 = vld [vmem:[#allocation2 + $0x150] sm:$0xff] }
 0x13e   : > { %4948 = vrot.lane.b32.xlu1 %v4947_v30, %s5731_s17  ;;  %v4405_v17 = vunpack.i.l.bf16 %v6623_v36  ;;  %v6990_v6 = vsel %vm278_vm0, %v5628_v38, %v4386_v47  ;;  %v6993_v37 = vsel %vm278_vm0, %v5629_v21, %v4385_v26  ;;  %v9253_v30 = vld [vmem:[#allocation8_spill] sm:$0xff]  ;;  %v5630_v60 = vld [vmem:[#allocation2 + $0x170] sm:$0xff]  ;;  %v7003_v36 = vsel %vm278_vm0, %v5631_v23, %v4390_v28  ;;  %v9254_v38 = vld [vmem:[#allocation10_spill] sm:$0xff] }
 0x13f   : > { %v4411_v41 = vunpack.i.h.bf16 %v9253_v30  ;;  %v4410_v48 = vunpack.i.l.bf16 %v9253_v30  ;;  %v7000_v61 = vsel %vm278_vm0, %v5630_v60, %v4391_v42  ;;  %v4416_v47 = vunpack.i.h.bf16 %v9254_v38  ;;  %v7023_v28 = vpop.permute.xlu0 %4673 }
 0x140   : > { %v6997_v52 = vpop.permute.xlu1 %4668  ;;  %v4415_v0 = vunpack.i.l.bf16 %v9254_v38  ;;  %v7009_v26 = vsel %vm1528_vm4, %v6829_v53, %v4396_v44  ;;  %v7013_v21 = vsel %vm1528_vm4, %v6832_v16, %v4395_v3  ;;  %v7017_v42 = vsel %vm1528_vm4, %v6858_v18, %v4400_v8  ;;  %v9255_v53 = vld [vmem:[#allocation11_spill] sm:$0xff]  ;;  %v9256_v8 = vld [vmem:[#allocation12_spill] sm:$0xff] }
 0x141   : > { %v7021_v23 = vsel %vm1528_vm4, %v6855_v45, %v4401_v14  ;;  %v7027_v30 = vsel %vm1528_vm4, %v6847_v31, %v4406_v50  ;;  %v7031_v44 = vsel %vm1528_vm4, %v6852_v13, %v4405_v17  ;;  %v4421_v16 = vunpack.i.h.bf16 %v9255_v53 }
 0x142   : > { %v4420_v3 = vunpack.i.l.bf16 %v9255_v53  ;;  %v7037_v18 = vsel %vm1528_vm4, %v6861_v32, %v4411_v41  ;;  %v7041_v45 = vsel %vm1528_vm4, %v6868_v25, %v4410_v48  ;;  %v4426_v14 = vunpack.i.h.bf16 %v9256_v8  ;;  %v9257_v41 = vld [vmem:[#allocation13_spill] sm:$0xff] }
 0x143   : > { %v4425_v31 = vunpack.i.l.bf16 %v9256_v8  ;;  %v7049_v13 = vsel %vm1528_vm4, %v6889_v11, %v4415_v0  ;;  %v7053_v17 = vsel %vm1528_vm4, %v6871_v19, %v4416_v47  ;;  %v4431_v32 = vunpack.i.h.bf16 %v9257_v41  ;;  %v7061_v8 = vpop.permute.xlu0 %4683 }
 0x144   : > { %v7045_v50 = vpop.permute.xlu1 %4678  ;;  %v4430_v60 = vunpack.i.l.bf16 %v9257_v41  ;;  %v4436_v25 = vunpack.i.h.bf16 %v6647_v7  ;;  %v4435_v48 = vunpack.i.l.bf16 %v6647_v7  ;;  %v4441_v38 = vunpack.i.h.bf16 %v6653_v46 }
 0x145   : > { %v4440_v53 = vunpack.i.l.bf16 %v6653_v46  ;;  %v7065_v0 = vsel %vm1528_vm4, %v6892_v51, %v4421_v16  ;;  %v7069_v19 = vsel %vm1528_vm4, %v6905_v56, %v4420_v3  ;;  %v4446_v11 = vunpack.i.h.bf16 %v6655_v33 }
 0x146   : > { %v4445_v47 = vunpack.i.l.bf16 %v6655_v33  ;;  %v7075_v7 = vsel %vm1528_vm4, %v6915_v35, %v4425_v31  ;;  %v7079_v46 = vsel %vm1528_vm4, %v6912_v43, %v4426_v14  ;;  %v4451_v51 = vunpack.i.h.bf16 %v6661_v54 }
 0x147   : > { %v4450_v16 = vunpack.i.l.bf16 %v6661_v54  ;;  %v7087_v56 = vsel %vm1528_vm4, %v6924_v40, %v4431_v32  ;;  %v7091_v33 = vsel %vm1528_vm4, %v6927_v58, %v4430_v60  ;;  %v4456_v35 = vunpack.i.h.bf16 %v6663_v39  ;;  %v7111_v14 = vpop.permute.xlu0 %4693 }
 0x148   : > { %v7083_v41 = vpop.permute.xlu1 %4688  ;;  %v4455_v3 = vunpack.i.l.bf16 %v6663_v39  ;;  %v7097_v43 = vsel %vm1528_vm4, %v6935_v10, %v4435_v48  ;;  %v7101_v54 = vsel %vm1528_vm4, %v6932_v27, %v4436_v25  ;;  %v7105_v40 = vsel %vm1528_vm4, %v6938_v57, %v4441_v38  ;;  %9258 = vst [vmem:[#allocation7_spill] sm:$0xff] %v7111_v14 }
 0x149   : > { %v7109_v58 = vsel %vm1528_vm4, %v6941_v59, %v4440_v53  ;;  %v7115_v39 = vsel %vm1528_vm4, %v6950_v2, %v4445_v47  ;;  %v7119_v10 = vsel %vm1528_vm4, %v6947_v20, %v4446_v11  ;;  %v4461_v27 = vunpack.i.h.bf16 %v6669_v4  ;;  %v9262_v47 = vld [vmem:[#allocation18_spill] sm:$0xff] }
 0x14a   : > { %v4460_v31 = vunpack.i.l.bf16 %v6669_v4  ;;  %v7125_v57 = vsel %vm1528_vm4, %v6955_v1, %v4451_v51  ;;  %v7129_v59 = vsel %vm1528_vm4, %v6958_v49, %v4450_v16  ;;  %v4466_v32 = vunpack.i.h.bf16 %v6671_v63  ;;  %v9260_v49 = vld [vmem:[#allocation14_spill] sm:$0xff] }
 0x14b   : > { %v4465_v2 = vunpack.i.l.bf16 %v6671_v63  ;;  %v7137_v20 = vsel %vm1528_vm4, %v6970_v24, %v4455_v3  ;;  %v7141_v4 = vsel %vm1528_vm4, %v6967_v12, %v4456_v35  ;;  %v4471_v1 = vunpack.i.h.bf16 %v6677_v55  ;;  %v7149_v11 = vpop.permute.xlu0 %4703  ;;  %v9263_v35 = vld [vmem:[#allocation20_spill] sm:$0xff] }
 0x14c   : > { %v7133_v60 = vpop.permute.xlu1 %4698  ;;  %v4470_v25 = vunpack.i.l.bf16 %v6677_v55  ;;  %v4476_v48 = vunpack.i.h.bf16 %v9260_v49  ;;  %v4475_v38 = vunpack.i.l.bf16 %v9260_v49  ;;  %v4481_v63 = vunpack.i.h.bf16 %v6688_v5  ;;  %9261 = vst [vmem:[#allocation8_spill] sm:$0xff] %v7149_v11  ;;  %v9276_v11 = vld [vmem:[#allocation30_spill] sm:$0xff] }
 0x14d   : > { %9259 = vst [vmem:[#allocation9_spill] sm:$0xff] %v7133_v60  ;;  %v4480_v53 = vunpack.i.l.bf16 %v6688_v5  ;;  %v7153_v24 = vsel %vm1528_vm4, %v6982_v62, %v4461_v27  ;;  %v7157_v12 = vsel %vm1528_vm4, %v6985_v9, %v4460_v31  ;;  %v4486_v55 = vunpack.i.h.bf16 %v9262_v47 }
 0x14e   : > { %v4485_v51 = vunpack.i.l.bf16 %v9262_v47  ;;  %v7163_v16 = vsel %vm1528_vm4, %v6993_v37, %v4465_v2  ;;  %v7167_v5 = vsel %vm1528_vm4, %v6990_v6, %v4466_v32  ;;  %v4491_v3 = vunpack.i.h.bf16 %v9263_v35  ;;  %v9265_v37 = vld [vmem:[#allocation21_spill] sm:$0xff] }
 0x14f   : > { %v4490_v62 = vunpack.i.l.bf16 %v9263_v35  ;;  %v7175_v9 = vsel %vm1528_vm4, %v7000_v61, %v4471_v1  ;;  %v7179_v31 = vsel %vm1528_vm4, %v7003_v36, %v4470_v25  ;;  %v4496_v2 = vunpack.i.h.bf16 %v9265_v37  ;;  %v7199_v1 = vpop.permute.xlu0 %4713 }
 0x150   : > { %v7171_v27 = vpop.permute.xlu1 %4708  ;;  %v4495_v49 = vunpack.i.l.bf16 %v9265_v37  ;;  %v7185_v6 = vsel %vm1561_vm6, %v7013_v21, %v4475_v38  ;;  %v7189_v32 = vsel %vm1561_vm6, %v7009_v26, %v4476_v48  ;;  %v7193_v61 = vsel %vm1561_vm6, %v7017_v42, %v4480_v53 }
 0x151   : > { %9264 = vst [vmem:[#allocation10_spill] sm:$0xff] %v7171_v27  ;;  %v7197_v36 = vsel %vm1561_vm6, %v7021_v23, %v4481_v63  ;;  %v7203_v25 = vsel %vm1561_vm6, %v7031_v44, %v4485_v51  ;;  %v7207_v21 = vsel %vm1561_vm6, %v7027_v30, %v4486_v55  ;;  %v4501_v26 = vunpack.i.h.bf16 %v6716_v29  ;;  %v9266_v55 = vld [vmem:[#allocation22_spill] sm:$0xff] }
 0x152   : > { %v4500_v48 = vunpack.i.l.bf16 %v6716_v29  ;;  %v7213_v42 = vsel %vm1561_vm6, %v7041_v45, %v4490_v62  ;;  %v7217_v23 = vsel %vm1561_vm6, %v7037_v18, %v4491_v3  ;;  %v4506_v38 = vunpack.i.h.bf16 %v6718_v15  ;;  %v9267_v3 = vld [vmem:[#allocation15_spill] sm:$0xff] }
 0x153   : > { %v4505_v44 = vunpack.i.l.bf16 %v6718_v15  ;;  %v7225_v30 = vsel %vm1561_vm6, %v7049_v13, %v4495_v49  ;;  %v7229_v29 = vsel %vm1561_vm6, %v7053_v17, %v4496_v2  ;;  %v4511_v45 = vunpack.i.h.bf16 %v6723_v34  ;;  %v7237_v35 = vpop.permute.xlu0 %4723  ;;  %v9268_v2 = vld [vmem:[#allocation16_spill] sm:$0xff] }
 0x154   : > { %v7221_v63 = vpop.permute.xlu1 %4718  ;;  %v4510_v53 = vunpack.i.l.bf16 %v6723_v34  ;;  %v4516_v18 = vunpack.i.h.bf16 %v6725_v22  ;;  %v4515_v47 = vunpack.i.l.bf16 %v6725_v22  ;;  %v4521_v15 = vunpack.i.h.bf16 %v9266_v55 }
 0x155   : > { %v4520_v51 = vunpack.i.l.bf16 %v9266_v55  ;;  %v7241_v13 = vsel %vm1561_vm6, %v7069_v19, %v4500_v48  ;;  %v7245_v17 = vsel %vm1561_vm6, %v7065_v0, %v4501_v26  ;;  %v4526_v34 = vunpack.i.h.bf16 %v9267_v3 }
 0x156   : > { %v4525_v62 = vunpack.i.l.bf16 %v9267_v3  ;;  %v7251_v22 = vsel %vm1561_vm6, %v7075_v7, %v4505_v44  ;;  %v7255_v37 = vsel %vm1561_vm6, %v7079_v46, %v4506_v38  ;;  %v4531_v19 = vunpack.i.h.bf16 %v9268_v2  ;;  %v9269_v7 = vld [vmem:[#allocation23_spill] sm:$0xff] }
 0x157   : > { %v4530_v49 = vunpack.i.l.bf16 %v9268_v2  ;;  %v7263_v0 = vsel %vm1561_vm6, %v7091_v33, %v4510_v53  ;;  %v7267_v26 = vsel %vm1561_vm6, %v7087_v56, %v4511_v45  ;;  %v4536_v44 = vunpack.i.h.bf16 %v9269_v7  ;;  %v7287_v45 = vpop.permute.xlu0 %4733 }
 0x158   : > { %v7259_v48 = vpop.permute.xlu1 %4728  ;;  %v4535_v55 = vunpack.i.l.bf16 %v9269_v7  ;;  %v7273_v46 = vsel %vm1561_vm6, %v7097_v43, %v4515_v47  ;;  %v7277_v38 = vsel %vm1561_vm6, %v7101_v54, %v4516_v18  ;;  %v7281_v33 = vsel %vm1561_vm6, %v7109_v58, %v4520_v51  ;;  %v9270_v54 = vld [vmem:[#allocation24_spill] sm:$0xff] }
 0x159   : > { %v7285_v56 = vsel %vm1561_vm6, %v7105_v40, %v4521_v15  ;;  %v7291_v53 = vsel %vm1561_vm6, %v7115_v39, %v4525_v62  ;;  %v7295_v43 = vsel %vm1561_vm6, %v7119_v10, %v4526_v34  ;;  %v4541_v18 = vunpack.i.h.bf16 %v9270_v54  ;;  %v9271_v15 = vld [vmem:[#allocation25_spill] sm:$0xff]  ;;  %v9274_v7 = vld [vmem:[#allocation28_spill] sm:$0xff] }
 0x15a   : > { %v4540_v47 = vunpack.i.l.bf16 %v9270_v54  ;;  %v7301_v58 = vsel %vm1561_vm6, %v7129_v59, %v4530_v49  ;;  %v7305_v40 = vsel %vm1561_vm6, %v7125_v57, %v4531_v19  ;;  %v4546_v51 = vunpack.i.h.bf16 %v9271_v15  ;;  %v9272_v59 = vld [vmem:[#allocation26_spill] sm:$0xff]  ;;  %v9273_v57 = vld [vmem:[#allocation27_spill] sm:$0xff] }
 0x15b   : > { %v4545_v39 = vunpack.i.l.bf16 %v9271_v15  ;;  %v7313_v10 = vsel %vm1561_vm6, %v7137_v20, %v4535_v55  ;;  %v7317_v34 = vsel %vm1561_vm6, %v7141_v4, %v4536_v44  ;;  %v4551_v62 = vunpack.i.h.bf16 %v9272_v59  ;;  %v7325_v27 = vpop.permute.xlu0 %4743  ;;  %v9275_v44 = vld [vmem:[#allocation29_spill] sm:$0xff] }
 0x15c   : > { %v7309_v3 = vpop.permute.xlu1 %4738  ;;  %v4550_v2 = vunpack.i.l.bf16 %v9272_v59  ;;  %v4556_v19 = vunpack.i.h.bf16 %v9273_v57  ;;  %v4555_v49 = vunpack.i.l.bf16 %v9273_v57  ;;  %v4561_v54 = vunpack.i.h.bf16 %v9274_v7 }
 0x15d   : > { %v4560_v15 = vunpack.i.l.bf16 %v9274_v7  ;;  %v7329_v20 = vsel %vm1561_vm6, %v7157_v12, %v4540_v47  ;;  %v7333_v4 = vsel %vm1561_vm6, %v7153_v24, %v4541_v18  ;;  %v4566_v55 = vunpack.i.h.bf16 %v9275_v44 }
 0x15e   : > { %v4565_v59 = vunpack.i.l.bf16 %v9275_v44  ;;  %v7339_v57 = vsel %vm1561_vm6, %v7163_v16, %v4545_v39  ;;  %v7343_v7 = vsel %vm1561_vm6, %v7167_v5, %v4546_v51  ;;  %v4571_v60 = vunpack.i.h.bf16 %v9276_v11  ;;  %v9279_v16 = vld [vmem:[#allocation31_spill] sm:$0xff] }
 0x15f   : > { %v4570_v12 = vunpack.i.l.bf16 %v9276_v11  ;;  %v7351_v24 = vsel %vm1561_vm6, %v7179_v31, %v4550_v2  ;;  %v7355_v18 = vsel %vm1561_vm6, %v7175_v9, %v4551_v62  ;;  %v4576_v39 = vunpack.i.h.bf16 %v9279_v16  ;;  %v7375_v51 = vpop.permute.xlu0 %4753 }
 0x160   : > { %v7347_v47 = vpop.permute.xlu1 %4748  ;;  %9277 = vst [vmem:[#allocation11_spill] sm:$0xff] %v7351_v24  ;;  %9278 = vst [vmem:[#allocation12_spill] sm:$0xff] %v7355_v18  ;;  %v4575_v44 = vunpack.i.l.bf16 %v9279_v16  ;;  %v7361_v5 = vsel %vm1594_vm7, %v7185_v6, %v4555_v49  ;;  %v7365_v11 = vsel %vm1594_vm7, %v7189_v32, %v4556_v19  ;;  %v7369_v31 = vsel %vm1594_vm7, %v7193_v61, %v4560_v15  ;;  %v9280_v32 = vld [vmem:[#allocation32_spill] sm:$0xff]  ;;  %v9281_v49 = vld [vmem:[#allocation33_spill] sm:$0xff] }
 0x161   : > { %v7373_v9 = vsel %vm1594_vm7, %v7197_v36, %v4561_v54  ;;  %v7379_v62 = vsel %vm1594_vm7, %v7203_v25, %v4565_v59  ;;  %v7383_v6 = vsel %vm1594_vm7, %v7207_v21, %v4566_v55  ;;  %v4581_v2 = vunpack.i.h.bf16 %v9280_v32 }
 0x162   : > { %v4580_v19 = vunpack.i.l.bf16 %v9280_v32  ;;  %v7389_v61 = vsel %vm1594_vm7, %v7213_v42, %v4570_v12  ;;  %v7393_v36 = vsel %vm1594_vm7, %v7217_v23, %v4571_v60  ;;  %v4586_v54 = vunpack.i.h.bf16 %v9281_v49  ;;  %v9282_v42 = vld [vmem:[#allocation34_spill] sm:$0xff]  ;;  %v9283_v60 = vld [vmem:[#allocation35_spill] sm:$0xff]  ;;  %v9284_v32 = vld [vmem:[#allocation36_spill] sm:$0xff] }
 0x163   : > { %v4585_v25 = vunpack.i.l.bf16 %v9281_v49  ;;  %v7401_v21 = vsel %vm1594_vm7, %v7225_v30, %v4575_v44  ;;  %v7405_v55 = vsel %vm1594_vm7, %v7229_v29, %v4576_v39  ;;  %v4591_v59 = vunpack.i.h.bf16 %v9282_v42  ;;  %v7413_v24 = vpop.permute.xlu0 %4763  ;;  %v9286_v39 = vld [vmem:[#allocation37_spill] sm:$0xff] }
 0x164   : > { %v7397_v15 = vpop.permute.xlu1 %4758  ;;  %v4590_v12 = vunpack.i.l.bf16 %v9282_v42  ;;  %v4596_v23 = vunpack.i.h.bf16 %v9283_v60  ;;  %v4595_v16 = vunpack.i.l.bf16 %v9283_v60  ;;  %v4601_v49 = vunpack.i.h.bf16 %v9284_v32  ;;  %9285 = vst [vmem:[#allocation13_spill] sm:$0xff] %v7413_v24  ;;  %v9287_v24 = vld [vmem:[#allocation38_spill] sm:$0xff] }
 0x165   : > { %v4600_v18 = vunpack.i.l.bf16 %v9284_v32  ;;  %v7417_v30 = vsel %vm1594_vm7, %v7241_v13, %v4580_v19  ;;  %v7421_v29 = vsel %vm1594_vm7, %v7245_v17, %v4581_v2  ;;  %v4606_v44 = vunpack.i.h.bf16 %v9286_v39 }
 0x166   : > { %v4605_v42 = vunpack.i.l.bf16 %v9286_v39  ;;  %v7427_v60 = vsel %vm1594_vm7, %v7251_v22, %v4585_v25  ;;  %v7431_v32 = vsel %vm1594_vm7, %v7255_v37, %v4586_v54  ;;  %v4611_v14 = vunpack.i.h.bf16 %v9287_v24  ;;  %v9288_v22 = vld [vmem:[#allocation39_spill] sm:$0xff] }
 0x167   : > { %v4610_v13 = vunpack.i.l.bf16 %v9287_v24  ;;  %v7439_v17 = vsel %vm1594_vm7, %v7263_v0, %v4590_v12  ;;  %v7443_v2 = vsel %vm1594_vm7, %v7267_v26, %v4591_v59  ;;  %v4616_v25 = vunpack.i.h.bf16 %v9288_v22  ;;  %v7463_v54 = vpop.permute.xlu0 %4773 }
 0x168   : > { %v7435_v19 = vpop.permute.xlu1 %4768  ;;  %v4615_v39 = vunpack.i.l.bf16 %v9288_v22  ;;  %v7449_v37 = vsel %vm1594_vm7, %v7273_v46, %v4595_v16  ;;  %v7453_v24 = vsel %vm1594_vm7, %v7277_v38, %v4596_v23  ;;  %v7457_v0 = vsel %vm1594_vm7, %v7281_v33, %v4600_v18  ;;  %9289 = vst [vmem:[#allocation14_spill] sm:$0xff] %v7463_v54  ;;  %v9290_v38 = vld [vmem:[#allocation40_spill] sm:$0xff]  ;;  %v9291_v18 = vld [vmem:[#allocation41_spill] sm:$0xff] }
 0x169   : > { %v7461_v26 = vsel %vm1594_vm7, %v7285_v56, %v4601_v49  ;;  %v7467_v59 = vsel %vm1594_vm7, %v7291_v53, %v4605_v42  ;;  %v7471_v46 = vsel %vm1594_vm7, %v7295_v43, %v4606_v44  ;;  %v4621_v12 = vunpack.i.h.bf16 %v9290_v38 }
 0x16a   : > { %v4620_v23 = vunpack.i.l.bf16 %v9290_v38  ;;  %v7477_v33 = vsel %vm1594_vm7, %v7301_v58, %v4610_v13  ;;  %v7481_v56 = vsel %vm1594_vm7, %v7305_v40, %v4611_v14  ;;  %v4626_v16 = vunpack.i.h.bf16 %v9291_v18  ;;  %v9295_v58 = vld [vmem:[#allocation43_spill] sm:$0xff]  ;;  %v9296_v40 = vld [vmem:[#allocation44_spill] sm:$0xff]  ;;  %v9297_v38 = vld [vmem:[#allocation45_spill] sm:$0xff] }
 0x16b   : > { %v4625_v53 = vunpack.i.l.bf16 %v9291_v18  ;;  %v7489_v43 = vsel %vm1594_vm7, %v7313_v10, %v4615_v39  ;;  %v7493_v44 = vsel %vm1594_vm7, %v7317_v34, %v4616_v25  ;;  %v4636_v42 = vunpack.i.h.bf16 %v9295_v58  ;;  %v7501_v54 = vpop.permute.xlu0 %4783  ;;  %v9301_v25 = vld [vmem:[#allocation46_spill] sm:$0xff] }
 0x16c   : > { %v7485_v49 = vpop.permute.xlu1 %4778  ;;  %9293 = vst [vmem:[#allocation20_spill] sm:$0xff] %v7489_v43  ;;  %9294 = vst [vmem:[#allocation21_spill] sm:$0xff] %v7493_v44  ;;  %v4635_v14 = vunpack.i.l.bf16 %v9295_v58  ;;  %v4641_v13 = vunpack.i.h.bf16 %v9296_v40  ;;  %v4640_v22 = vunpack.i.l.bf16 %v9296_v40  ;;  %v4646_v18 = vunpack.i.h.bf16 %v9297_v38 }
 0x16d   : > { %9292 = vst [vmem:[#allocation18_spill] sm:$0xff] %v7485_v49  ;;  %v4645_v49 = vunpack.i.l.bf16 %v9297_v38  ;;  %9298 = vst [vmem:[#allocation22_spill] sm:$0xff] %v7501_v54  ;;  %v7505_v10 = vsel %vm1594_vm7, %v7329_v20, %v4620_v23  ;;  %v7509_v34 = vsel %vm1594_vm7, %v7333_v4, %v4621_v12  ;;  %v4651_v39 = vunpack.i.h.bf16 %v9301_v25 }
 0x16e   : > { %9299 = vst [vmem:[#allocation15_spill] sm:$0xff] %v7505_v10  ;;  %9300 = vst [vmem:[#allocation16_spill] sm:$0xff] %v7509_v34  ;;  %v4650_v58 = vunpack.i.l.bf16 %v9301_v25  ;;  %v7515_v40 = vsel %vm1594_vm7, %v7339_v57, %v4625_v53  ;;  %v7519_v38 = vsel %vm1594_vm7, %v7343_v7, %v4626_v16  ;;  %v1628_v4 = vsel %vm1627_vm8, %v7361_v5, %v4635_v14  ;;  %v9306_v25 = vld [vmem:[#allocation47_spill] sm:$0xff] }
 0x16f   : > { %9302 = vst [vmem:[#allocation23_spill] sm:$0xff] %v7515_v40  ;;  %9303 = vst [vmem:[#allocation24_spill] sm:$0xff] %v7519_v38  ;;  %v1629_v12 = vsel %vm1627_vm8, %v7365_v11, %v4636_v42  ;;  %v4656_v34 = vunpack.i.h.bf16 %v9306_v25  ;;  %v4655_v57 = vunpack.i.l.bf16 %v9306_v25  ;;  %v1630_v7 = vsel %vm1627_vm8, %v7369_v31, %v4640_v22  ;;  %v4794_v14 = vpop.permute.xlu0 %4793 }
 0x170   : > { %v7523_v23 = vpop.permute.xlu1 %4788  ;;  %v1631_v16 = vsel %vm1627_vm8, %v7373_v9, %v4641_v13  ;;  %v1632_v53 = vsel %vm1627_vm8, %v7379_v62, %v4645_v49  ;;  %v1633_v5 = vsel %vm1627_vm8, %v7383_v6, %v4646_v18  ;;  %v1634_v11 = vsel %vm1627_vm8, %v7389_v61, %v4650_v58 }
 0x171   : > { %9305 = vst [vmem:[#allocation25_spill] sm:$0xff] %v7523_v23  ;;  %v1635_v42 = vsel %vm1627_vm8, %v7393_v36, %v4651_v39  ;;  %v4716_v25 = vunpack.i.h.bf16 %v7199_v1  ;;  %v4715_v31 = vunpack.i.l.bf16 %v7199_v1  ;;  %v4721_v22 = vunpack.i.h.bf16 %v7221_v63  ;;  %v9307_v36 = vld [vmem:[#allocation17_spill] sm:$0xff]  ;;  %v9308_v1 = vld [vmem:[#allocation19_spill] sm:$0xff] }
 0x172   : > { %v4720_v9 = vunpack.i.l.bf16 %v7221_v63  ;;  %v4796_v13 = vunpack.i.h.bf16 %v4794_v14  ;;  %v4795_v62 = vunpack.i.l.bf16 %v4794_v14  ;;  %v7549_v6 = vsel %vm1627_vm8, %v7401_v21, %v4655_v57 }
 0x173   : > { %v7553_v61 = vsel %vm1627_vm8, %v7405_v55, %v4656_v34  ;;  %v4661_v18 = vunpack.i.h.bf16 %v9307_v36  ;;  %v4660_v39 = vunpack.i.l.bf16 %v9307_v36  ;;  %v4666_v58 = vunpack.i.h.bf16 %v9308_v1  ;;  %v4804_v14 = vpop.permute.xlu0 %4803 }
 0x174   : > { %v4799_v49 = vpop.permute.xlu1 %4798  ;;  %v4665_v44 = vunpack.i.l.bf16 %v9308_v1  ;;  %v4806_v38 = vunpack.i.h.bf16 %v4804_v14  ;;  %v4805_v40 = vunpack.i.l.bf16 %v4804_v14  ;;  %v1661_v21 = vsel %vm1660_vm9, %v1628_v4, %v4715_v31 }
 0x175   : > { %v4801_v63 = vunpack.i.h.bf16 %v4799_v49  ;;  %v4800_v20 = vunpack.i.l.bf16 %v4799_v49  ;;  %v1662_v57 = vsel %vm1660_vm9, %v1629_v12, %v4716_v25  ;;  %v1663_v55 = vsel %vm1660_vm9, %v1630_v7, %v4720_v9 }
 0x176   : > { %v1664_v34 = vsel %vm1660_vm9, %v1631_v16, %v4721_v22  ;;  %v1694_v36 = vsel %vm1693_vm10, %v1661_v21, %v4795_v62  ;;  %v1695_v23 = vsel %vm1693_vm10, %v1662_v57, %v4796_v13  ;;  %v4726_v14 = vunpack.i.h.bf16 %v7237_v35 }
 0x177   : > { %v1727_v49 = vsel %vm1726_vm11, %v1694_v36, %v4805_v40  ;;  %v1728_v43 = vsel %vm1726_vm11, %v1695_v23, %v4806_v38  ;;  %v1696_v4 = vsel %vm1693_vm10, %v1663_v55, %v4800_v20  ;;  %v1697_v12 = vsel %vm1693_vm10, %v1664_v34, %v4801_v63  ;;  %v4814_v7 = vpop.permute.xlu0 %4813 }
 0x178   : > { %v4809_v54 = vpop.permute.xlu1 %4808  ;;  %v1759_v25 = vpack.c.bf16 %v1728_v43, %v1727_v49  ;;  %v4725_v16 = vunpack.i.l.bf16 %v7237_v35  ;;  %v4731_v31 = vunpack.i.h.bf16 %v7259_v48  ;;  %v4730_v40 = vunpack.i.l.bf16 %v7259_v48 }
 0x179   : > { %v4811_v10 = vunpack.i.h.bf16 %v4809_v54  ;;  %v4810_v1 = vunpack.i.l.bf16 %v4809_v54  ;;  %v4816_v9 = vunpack.i.h.bf16 %v4814_v7  ;;  %v4815_v38 = vunpack.i.l.bf16 %v4814_v7 }
 0x17a   : > { %4183 = vmatprep.mubr.msk.bf16.mxu0 %vm1790_vm12, %v1759_v25  ;;  %v1638_v13 = vsel %vm1627_vm8, %v7417_v30, %v4660_v39  ;;  %v1639_v35 = vsel %vm1627_vm8, %v7421_v29, %v4661_v18  ;;  %v7582_v43 = vsel %vm1627_vm8, %v7427_v60, %v4665_v44  ;;  %v4671_v48 = vunpack.i.h.bf16 %v6997_v52 }
 0x17b   : > { %v1729_v22 = vsel %vm1726_vm11, %v1696_v4, %v4810_v1  ;;  %v1730_v54 = vsel %vm1726_vm11, %v1697_v12, %v4811_v10  ;;  %v7586_v10 = vsel %vm1627_vm8, %v7431_v32, %v4666_v58  ;;  %v4670_v62 = vunpack.i.l.bf16 %v6997_v52  ;;  %v4824_v57 = vpop.permute.xlu0 %4823 }
 0x17c   : > { %v4819_v23 = vpop.permute.xlu1 %4818  ;;  %v1760_v20 = vpack.c.bf16 %v1730_v54, %v1729_v22  ;;  %v1665_v30 = vsel %vm1660_vm9, %v1632_v53, %v4725_v16  ;;  %v1666_v29 = vsel %vm1660_vm9, %v1633_v5, %v4726_v14  ;;  %v4826_v18 = vunpack.i.h.bf16 %v4824_v57 }
 0x17d   : > { %v4821_v63 = vunpack.i.h.bf16 %v4819_v23  ;;  %v4820_v21 = vunpack.i.l.bf16 %v4819_v23  ;;  %v4825_v60 = vunpack.i.l.bf16 %v4824_v57  ;;  %v1667_v44 = vsel %vm1660_vm9, %v1634_v11, %v4730_v40 }
 0x17e   : > { %4184 = vmatmul.mubr.msk.bf16.vlgmr.msra.gmra.mrb[0].mxu0 %vm1790_vm12, %v1760_v20  ;;  %v1668_v32 = vsel %vm1660_vm9, %v1635_v42, %v4731_v31  ;;  %v1698_v39 = vsel %vm1693_vm10, %v1665_v30, %v4815_v38  ;;  %v1699_v58 = vsel %vm1693_vm10, %v1666_v29, %v4816_v9  ;;  %v4736_v53 = vunpack.i.h.bf16 %v7287_v45 }
 0x17f   : > { %v1731_v55 = vsel %vm1726_vm11, %v1698_v39, %v4825_v60  ;;  %v1732_v34 = vsel %vm1726_vm11, %v1699_v58, %v4826_v18  ;;  %v1700_v5 = vsel %vm1693_vm10, %v1667_v44, %v4820_v21  ;;  %v1701_v49 = vsel %vm1693_vm10, %v1668_v32, %v4821_v63  ;;  %v4834_v11 = vpop.permute.xlu0 %4833 }
 0x180   : > { %v4829_v52 = vpop.permute.xlu1 %4828  ;;  %v1761_v14 = vpack.c.bf16 %v1732_v34, %v1731_v55  ;;  %v4735_v42 = vunpack.i.l.bf16 %v7287_v45  ;;  %v4741_v4 = vunpack.i.h.bf16 %v7309_v3  ;;  %v4740_v25 = vunpack.i.l.bf16 %v7309_v3 }
 0x181   : > { %v4831_v36 = vunpack.i.h.bf16 %v4829_v52  ;;  %v4830_v1 = vunpack.i.l.bf16 %v4829_v52  ;;  %v4836_v16 = vunpack.i.h.bf16 %v4834_v11  ;;  %v4835_v31 = vunpack.i.l.bf16 %v4834_v11 }
 0x182   : > { %4187 = vmatprep.mubr.msk.bf16.mxu0 %vm1790_vm12, %v1761_v14  ;;  %v1642_v40 = vsel %vm1627_vm8, %v7439_v17, %v4670_v62  ;;  %v1643_v45 = vsel %vm1627_vm8, %v7443_v2, %v4671_v48  ;;  %v4676_v9 = vunpack.i.h.bf16 %v7023_v28  ;;  %v4675_v38 = vunpack.i.l.bf16 %v7023_v28 }
 0x183   : > { %v1733_v12 = vsel %vm1726_vm11, %v1700_v5, %v4830_v1  ;;  %v1734_v7 = vsel %vm1726_vm11, %v1701_v49, %v4831_v36  ;;  %v4681_v23 = vunpack.i.h.bf16 %v7045_v50  ;;  %v4680_v3 = vunpack.i.l.bf16 %v7045_v50  ;;  %v4844_v21 = vpop.permute.xlu0 %4843 }
 0x184   : > { %v4839_v22 = vpop.permute.xlu1 %4838  ;;  %v1762_v54 = vpack.c.bf16 %v1734_v7, %v1733_v12  ;;  %v1669_v57 = vsel %vm1660_vm9, %v7549_v6, %v4735_v42  ;;  %v1670_v17 = vsel %vm1660_vm9, %v7553_v61, %v4736_v53  ;;  %v4846_v2 = vunpack.i.h.bf16 %v4844_v21 }
 0x185   : > { %v4841_v20 = vunpack.i.h.bf16 %v4839_v22  ;;  %v4840_v63 = vunpack.i.l.bf16 %v4839_v22  ;;  %v4845_v48 = vunpack.i.l.bf16 %v4844_v21  ;;  %v1671_v62 = vsel %vm1660_vm9, %v1638_v13, %v4740_v25 }
 0x186   : > { %4188 = vmatmul.mubr.msk.bf16.gmra.mrb[4].mxu0 %vm1790_vm12, %v1762_v54  ;;  %v1672_v28 = vsel %vm1660_vm9, %v1639_v35, %v4741_v4  ;;  %v1702_v30 = vsel %vm1693_vm10, %v1669_v57, %v4835_v31  ;;  %v1703_v50 = vsel %vm1693_vm10, %v1670_v17, %v4836_v16  ;;  %v4746_v32 = vunpack.i.h.bf16 %v7325_v27 }
 0x187   : > { %v1735_v18 = vsel %vm1726_vm11, %v1702_v30, %v4845_v48  ;;  %v1736_v60 = vsel %vm1726_vm11, %v1703_v50, %v4846_v2  ;;  %v1704_v61 = vsel %vm1693_vm10, %v1671_v62, %v4840_v63  ;;  %v1705_v39 = vsel %vm1693_vm10, %v1672_v28, %v4841_v20  ;;  %v4854_v13 = vpop.permute.xlu0 %4853 }
 0x188   : > { %v4849_v29 = vpop.permute.xlu1 %4848  ;;  %v1763_v58 = vpack.c.bf16 %v1736_v60, %v1735_v18  ;;  %v4745_v35 = vunpack.i.l.bf16 %v7325_v27  ;;  %v4751_v52 = vunpack.i.h.bf16 %v7347_v47  ;;  %v4750_v36 = vunpack.i.l.bf16 %v7347_v47  ;;  %v9309_v60 = vld [vmem:[#allocation7_spill] sm:$0xff] }
 0x189   : > { %v4851_v44 = vunpack.i.h.bf16 %v4849_v29  ;;  %v4850_v6 = vunpack.i.l.bf16 %v4849_v29  ;;  %v4856_v1 = vunpack.i.h.bf16 %v4854_v13  ;;  %v4855_v53 = vunpack.i.l.bf16 %v4854_v13 }
 0x18a   : > { %4191 = vmatprep.mubr.msk.bf16.mxu0 %vm1790_vm12, %v1763_v58  ;;  %v1644_v11 = vsel %vm1627_vm8, %v7449_v37, %v4675_v38  ;;  %v1645_v27 = vsel %vm1627_vm8, %v7453_v24, %v4676_v9  ;;  %v1646_v14 = vsel %vm1627_vm8, %v7457_v0, %v4680_v3  ;;  %v1647_v42 = vsel %vm1627_vm8, %v7461_v26, %v4681_v23 }
 0x18b   : > { %v1737_v55 = vsel %vm1726_vm11, %v1704_v61, %v4850_v6  ;;  %v1738_v34 = vsel %vm1726_vm11, %v1705_v39, %v4851_v44  ;;  %v4686_v47 = vunpack.i.h.bf16 %v7061_v8  ;;  %v4685_v4 = vunpack.i.l.bf16 %v7061_v8  ;;  %v4864_v25 = vpop.permute.xlu0 %4863 }
 0x18c   : > { %v4859_v5 = vpop.permute.xlu1 %4858  ;;  %v1764_v49 = vpack.c.bf16 %v1738_v34, %v1737_v55  ;;  %v1673_v37 = vsel %vm1660_vm9, %v7582_v43, %v4745_v35  ;;  %v1674_v24 = vsel %vm1660_vm9, %v7586_v10, %v4746_v32  ;;  %v4866_v16 = vunpack.i.h.bf16 %v4864_v25 }
 0x18d   : > { %v4861_v12 = vunpack.i.h.bf16 %v4859_v5  ;;  %v4860_v7 = vunpack.i.l.bf16 %v4859_v5  ;;  %v4865_v0 = vunpack.i.l.bf16 %v4864_v25  ;;  %v1675_v31 = vsel %vm1660_vm9, %v1642_v40, %v4750_v36  ;;  %v9310_v5 = vld [vmem:[#allocation13_spill] sm:$0xff] }
 0x18e   : > { %4192 = vmatmul.mubr.msk.bf16.gmra.mrb[8].mxu0 %vm1790_vm12, %v1764_v49  ;;  %v1676_v26 = vsel %vm1660_vm9, %v1643_v45, %v4751_v52  ;;  %v1706_v22 = vsel %vm1693_vm10, %v1673_v37, %v4855_v53  ;;  %v1707_v8 = vsel %vm1693_vm10, %v1674_v24, %v4856_v1  ;;  %v4756_v3 = vunpack.i.h.bf16 %v7375_v51 }
 0x18f   : > { %v1739_v9 = vsel %vm1726_vm11, %v1706_v22, %v4865_v0  ;;  %v1740_v38 = vsel %vm1726_vm11, %v1707_v8, %v4866_v16  ;;  %v1708_v10 = vsel %vm1693_vm10, %v1675_v31, %v4860_v7  ;;  %v1709_v20 = vsel %vm1693_vm10, %v1676_v26, %v4861_v12  ;;  %v4874_v40 = vpop.permute.xlu0 %4873  ;;  %v9311_v22 = vld [vmem:[#allocation20_spill] sm:$0xff] }
 0x190   : > { %v4869_v54 = vpop.permute.xlu1 %4868  ;;  %v1765_v63 = vpack.c.bf16 %v1740_v38, %v1739_v9  ;;  %v4755_v45 = vunpack.i.l.bf16 %v7375_v51  ;;  %v4761_v21 = vunpack.i.h.bf16 %v7397_v15  ;;  %v4760_v2 = vunpack.i.l.bf16 %v7397_v15  ;;  %v9313_v38 = vld [vmem:[#allocation9_spill] sm:$0xff] }
 0x191   : > { %v4871_v23 = vunpack.i.h.bf16 %v4869_v54  ;;  %v4870_v43 = vunpack.i.l.bf16 %v4869_v54  ;;  %v4876_v48 = vunpack.i.h.bf16 %v4874_v40  ;;  %v4875_v62 = vunpack.i.l.bf16 %v4874_v40  ;;  %v9312_v54 = vld [vmem:[#allocation21_spill] sm:$0xff] }
 0x192   : > { %4195 = vmatprep.mubr.msk.bf16.mxu0 %vm1790_vm12, %v1765_v63  ;;  %v1648_v50 = vsel %vm1627_vm8, %v7467_v59, %v4685_v4  ;;  %v1649_v51 = vsel %vm1627_vm8, %v7471_v46, %v4686_v47  ;;  %v4691_v29 = vunpack.i.h.bf16 %v7083_v41  ;;  %v4690_v18 = vunpack.i.l.bf16 %v7083_v41 }
 0x193   : > { %v1741_v57 = vsel %vm1726_vm11, %v1708_v10, %v4870_v43  ;;  %v1742_v17 = vsel %vm1726_vm11, %v1709_v20, %v4871_v23  ;;  %v4696_v44 = vunpack.i.h.bf16 %v9309_v60  ;;  %v4695_v15 = vunpack.i.l.bf16 %v9309_v60  ;;  %v4884_v61 = vpop.permute.xlu0 %4883 }
 0x194   : > { %v4879_v28 = vpop.permute.xlu1 %4878  ;;  %v1766_v30 = vpack.c.bf16 %v1742_v17, %v1741_v57  ;;  %v1677_v39 = vsel %vm1660_vm9, %v1644_v11, %v4755_v45  ;;  %v1678_v59 = vsel %vm1660_vm9, %v1645_v27, %v4756_v3  ;;  %v4886_v13 = vunpack.i.h.bf16 %v4884_v61 }
 0x195   : > { %v4881_v6 = vunpack.i.h.bf16 %v4879_v28  ;;  %v4880_v32 = vunpack.i.l.bf16 %v4879_v28  ;;  %v4885_v58 = vunpack.i.l.bf16 %v4884_v61  ;;  %v1679_v46 = vsel %vm1660_vm9, %v1646_v14, %v4760_v2 }
 0x196   : > { %4196 = vmatmul.mubr.msk.bf16.gmra.mrb[12].mxu0 %vm1790_vm12, %v1766_v30  ;;  %v1680_v35 = vsel %vm1660_vm9, %v1647_v42, %v4761_v21  ;;  %v1710_v41 = vsel %vm1693_vm10, %v1677_v39, %v4875_v62  ;;  %v1711_v52 = vsel %vm1693_vm10, %v1678_v59, %v4876_v48  ;;  %v4766_v49 = vunpack.i.h.bf16 %v9310_v5  ;;  %v9314_v30 = vld [vmem:[#allocation14_spill] sm:$0xff] }
 0x197   : > { %v1743_v34 = vsel %vm1726_vm11, %v1710_v41, %v4885_v58  ;;  %v1744_v36 = vsel %vm1726_vm11, %v1711_v52, %v4886_v13  ;;  %v1712_v11 = vsel %vm1693_vm10, %v1679_v46, %v4880_v32  ;;  %v1713_v27 = vsel %vm1693_vm10, %v1680_v35, %v4881_v6  ;;  %v4894_v14 = vpop.permute.xlu0 %4893  ;;  %v9316_v35 = vld [vmem:[#allocation15_spill] sm:$0xff]  ;;  %v9317_v52 = vld [vmem:[#allocation16_spill] sm:$0xff] }
 0x198   : > { %v4889_v55 = vpop.permute.xlu1 %4888  ;;  %v1767_v47 = vpack.c.bf16 %v1744_v36, %v1743_v34  ;;  %v4765_v42 = vunpack.i.l.bf16 %v9310_v5  ;;  %v4771_v4 = vunpack.i.h.bf16 %v7435_v19  ;;  %v4770_v25 = vunpack.i.l.bf16 %v7435_v19  ;;  %v9318_v34 = vld [vmem:[#allocation8_spill] sm:$0xff] }
 0x199   : > { %v4891_v1 = vunpack.i.h.bf16 %v4889_v55  ;;  %v4890_v53 = vunpack.i.l.bf16 %v4889_v55  ;;  %v4896_v37 = vunpack.i.h.bf16 %v4894_v14  ;;  %v4895_v24 = vunpack.i.l.bf16 %v4894_v14 }
 0x19a   : > { %4199 = vmatprep.mubr.msk.bf16.mxu0 %vm1790_vm12, %v1767_v47  ;;  %v1650_v31 = vsel %vm1627_vm8, %v7477_v33, %v4690_v18  ;;  %v1651_v26 = vsel %vm1627_vm8, %v7481_v56, %v4691_v29  ;;  %v1652_v8 = vsel %vm1627_vm8, %v9311_v22, %v4695_v15  ;;  %v1653_v9 = vsel %vm1627_vm8, %v9312_v54, %v4696_v44  ;;  %v9315_v15 = vld [vmem:[#allocation18_spill] sm:$0xff] }
 0x19b   : > { %v1745_v12 = vsel %vm1726_vm11, %v1712_v11, %v4890_v53  ;;  %v1746_v7 = vsel %vm1726_vm11, %v1713_v27, %v4891_v1  ;;  %v4701_v19 = vunpack.i.h.bf16 %v9313_v38  ;;  %v4700_v23 = vunpack.i.l.bf16 %v9313_v38  ;;  %v4904_v10 = vpop.permute.xlu0 %4903  ;;  %v9319_v53 = vld [vmem:[#allocation10_spill] sm:$0xff] }
 0x19c   : > { %v4899_v16 = vpop.permute.xlu1 %4898  ;;  %v1768_v0 = vpack.c.bf16 %v1746_v7, %v1745_v12  ;;  %v1681_v33 = vsel %vm1660_vm9, %v1648_v50, %v4765_v42  ;;  %v1682_v20 = vsel %vm1660_vm9, %v1649_v51, %v4766_v49  ;;  %v4906_v56 = vunpack.i.h.bf16 %v4904_v10 }
 0x19d   : > { %v4901_v43 = vunpack.i.h.bf16 %v4899_v16  ;;  %v4900_v3 = vunpack.i.l.bf16 %v4899_v16  ;;  %v4905_v40 = vunpack.i.l.bf16 %v4904_v10  ;;  %v1683_v63 = vsel %vm1660_vm9, %v1650_v31, %v4770_v25 }
 0x19e   : > { %4200 = vmatmul.mubr.msk.bf16.gmra.mrb[16].mxu0 %vm1790_vm12, %v1768_v0  ;;  %v1684_v45 = vsel %vm1660_vm9, %v1651_v26, %v4771_v4  ;;  %v1714_v21 = vsel %vm1693_vm10, %v1681_v33, %v4895_v24  ;;  %v1715_v57 = vsel %vm1693_vm10, %v1682_v20, %v4896_v37  ;;  %v4776_v50 = vunpack.i.h.bf16 %v9314_v30 }
 0x19f   : > { %v1747_v2 = vsel %vm1726_vm11, %v1714_v21, %v4905_v40  ;;  %v1748_v48 = vsel %vm1726_vm11, %v1715_v57, %v4906_v56  ;;  %v1716_v51 = vsel %vm1693_vm10, %v1683_v63, %v4900_v3  ;;  %v1717_v29 = vsel %vm1693_vm10, %v1684_v45, %v4901_v43  ;;  %v4914_v18 = vpop.permute.xlu0 %4913  ;;  %v9321_v3 = vld [vmem:[#allocation25_spill] sm:$0xff]  ;;  %v9322_v57 = vld [vmem:[#allocation42_spill] sm:$0xff] }
 0x1a0   : > { %v4909_v17 = vpop.permute.xlu1 %4908  ;;  %v1769_v60 = vpack.c.bf16 %v1748_v48, %v1747_v2  ;;  %v4775_v44 = vunpack.i.l.bf16 %v9314_v30  ;;  %v4781_v6 = vunpack.i.h.bf16 %v9315_v15  ;;  %v4780_v39 = vunpack.i.l.bf16 %v9315_v15  ;;  %v9324_v2 = vld [vmem:[#allocation11_spill] sm:$0xff] }
 0x1a1   : > { %v4911_v62 = vunpack.i.h.bf16 %v4909_v17  ;;  %v4910_v28 = vunpack.i.l.bf16 %v4909_v17  ;;  %v4916_v59 = vunpack.i.h.bf16 %v4914_v18  ;;  %v4915_v13 = vunpack.i.l.bf16 %v4914_v18 }
 0x1a2   : > { %4203 = vmatprep.mubr.msk.bf16.mxu0 %vm1790_vm12, %v1769_v60  ;;  %v1654_v41 = vsel %vm1627_vm8, %v9316_v35, %v4700_v23  ;;  %v1655_v55 = vsel %vm1627_vm8, %v9317_v52, %v4701_v19  ;;  %v4706_v36 = vunpack.i.h.bf16 %v9318_v34  ;;  %v4705_v1 = vunpack.i.l.bf16 %v9318_v34 }
 0x1a3   : > { %v1749_v32 = vsel %vm1726_vm11, %v1716_v51, %v4910_v28  ;;  %v1750_v61 = vsel %vm1726_vm11, %v1717_v29, %v4911_v62  ;;  %v4711_v5 = vunpack.i.h.bf16 %v9319_v53  ;;  %v4710_v49 = vunpack.i.l.bf16 %v9319_v53  ;;  %v4924_v14 = vpop.permute.xlu0 %4923  ;;  %v9326_v28 = vld [vmem:[#allocation12_spill] sm:$0xff] }
 0x1a4   : > { %v4919_v58 = vpop.permute.xlu1 %4918  ;;  %v1770_v46 = vpack.c.bf16 %v1750_v61, %v1749_v32  ;;  %v1685_v47 = vsel %vm1660_vm9, %v1652_v8, %v4775_v44  ;;  %v1686_v42 = vsel %vm1660_vm9, %v1653_v9, %v4776_v50  ;;  %v4926_v4 = vunpack.i.h.bf16 %v4924_v14  ;;  %v9320_v8 = vld [vmem:[#allocation22_spill] sm:$0xff]  ;;  %v9327_v50 = vld [vmem:[#allocation23_spill] sm:$0xff]  ;;  %v9328_v29 = vld [vmem:[#allocation24_spill] sm:$0xff] }
 0x1a5   : > { %v4921_v11 = vunpack.i.h.bf16 %v4919_v58  ;;  %v4920_v27 = vunpack.i.l.bf16 %v4919_v58  ;;  %v4925_v12 = vunpack.i.l.bf16 %v4924_v14  ;;  %v1687_v7 = vsel %vm1660_vm9, %v1654_v41, %v4780_v39 }
 0x1a6   : > { %4204 = vmatmul.mubr.msk.bf16.gmra.mrb[20].mxu0 %vm1790_vm12, %v1770_v46  ;;  %v1688_v25 = vsel %vm1660_vm9, %v1655_v55, %v4781_v6  ;;  %v1718_v37 = vsel %vm1693_vm10, %v1685_v47, %v4915_v13  ;;  %v1719_v24 = vsel %vm1693_vm10, %v1686_v42, %v4916_v59  ;;  %v4786_v54 = vunpack.i.h.bf16 %v9320_v8  ;;  %v7811_v42 = vld [vmem:[#allocation3] sm:$0xff] }
 0x1a7   : > { %v1751_v0 = vsel %vm1726_vm11, %v1718_v37, %v4925_v12  ;;  %v1752_v31 = vsel %vm1726_vm11, %v1719_v24, %v4926_v4  ;;  %v1720_v9 = vsel %vm1693_vm10, %v1687_v7, %v4920_v27  ;;  %v1721_v38 = vsel %vm1693_vm10, %v1688_v25, %v4921_v11  ;;  %v4934_v19 = vpop.permute.xlu0 %4933  ;;  %v7813_v4 = vld [vmem:[#allocation3 + $0x8] sm:$0xff] }
 0x1a8   : > { %v4929_v16 = vpop.permute.xlu1 %4928  ;;  %v1771_v23 = vpack.c.bf16 %v1752_v31, %v1751_v0  ;;  %v4785_v43 = vunpack.i.l.bf16 %v9320_v8  ;;  %v4791_v10 = vunpack.i.h.bf16 %v9321_v3  ;;  %v4790_v56 = vunpack.i.l.bf16 %v9321_v3 }
 0x1a9   : > { %v4931_v26 = vunpack.i.h.bf16 %v4929_v16  ;;  %v4930_v22 = vunpack.i.l.bf16 %v4929_v16  ;;  %v4936_v40 = vunpack.i.h.bf16 %v4934_v19  ;;  %v4935_v63 = vunpack.i.l.bf16 %v4934_v19  ;;  %v7833_v19 = vld [vmem:[%s9074_s3] ss:$0 sm:$0xff] }
 0x1aa   : > { %4207 = vmatprep.mubr.msk.bf16.mxu0 %vm1790_vm12, %v1771_v23  ;;  %v9323_v17 = vunpack.i.l.bf16 %v9322_v57  ;;  %v9325_v62 = vunpack.i.h.bf16 %v9322_v57  ;;  %v1656_v51 = vsel %vm1627_vm8, %v9327_v50, %v4705_v1  ;;  %v1657_v18 = vsel %vm1627_vm8, %v9328_v29, %v4706_v36 }
 0x1ab   : > { %v1753_v33 = vsel %vm1726_vm11, %v1720_v9, %v4930_v22  ;;  %v1754_v20 = vsel %vm1726_vm11, %v1721_v38, %v4931_v26  ;;  %v4944_v32 = vpop.permute.xlu0 %4943  ;;  %v1689_v61 = vsel %vm1660_vm9, %v1656_v51, %v4785_v43  ;;  %v1690_v39 = vsel %vm1660_vm9, %v1657_v18, %v4786_v54  ;;  %v7828_v38 = vld [vmem:[%s9073_s2] ss:$0 sm:$0xff] }
 0x1ac   : > { %v4939_v45 = vpop.permute.xlu1 %4938  ;;  %v1772_v21 = vpack.c.bf16 %v1754_v20, %v1753_v33  ;;  %v1625_v48 = vsel %vm1594_vm7, %v9324_v2, %v9323_v17  ;;  %v1626_v30 = vsel %vm1594_vm7, %v9326_v28, %v9325_v62  ;;  %v4946_v59 = vunpack.i.h.bf16 %v4944_v32 }
 0x1ad   : > { %v1658_v60 = vsel %vm1627_vm8, %v1625_v48, %v4710_v49  ;;  %v1659_v44 = vsel %vm1627_vm8, %v1626_v30, %v4711_v5  ;;  %v4941_v15 = vunpack.i.h.bf16 %v4939_v45  ;;  %v4940_v6 = vunpack.i.l.bf16 %v4939_v45 }
 0x1ae   : > { %4208 = vmatmul.mubr.msk.bf16.gmra.mrb[24].mxu0 %vm1790_vm12, %v1772_v21  ;;  %v4945_v13 = vunpack.i.l.bf16 %v4944_v32  ;;  %v1691_v58 = vsel %vm1660_vm9, %v1658_v60, %v4790_v56  ;;  %v1692_v46 = vsel %vm1660_vm9, %v1659_v44, %v4791_v10  ;;  %v1722_v35 = vsel %vm1693_vm10, %v1689_v61, %v4935_v63 }
 0x1af   : > { %v1723_v41 = vsel %vm1693_vm10, %v1690_v39, %v4936_v40  ;;  %v1724_v53 = vsel %vm1693_vm10, %v1691_v58, %v4940_v6  ;;  %v1725_v5 = vsel %vm1693_vm10, %v1692_v46, %v4941_v15  ;;  %v9329_v47 = vmov 0.0  }
 0x1b0   : > { %v4949_v52 = vpop.permute.xlu1 %4948  ;;  %v1755_v55 = vsel %vm1726_vm11, %v1722_v35, %v4945_v13  ;;  %v1756_v34 = vsel %vm1726_vm11, %v1723_v41, %v4946_v59  ;;  %2121 = vst.msk [vmem:[#allocation3 + $0x40] sm:$0x3] %vm2114_vm13, %v9329_v47  ;;  %2115 = vst.msk [vmem:[#allocation3 + $0x10] sm:$0x3] %vm2114_vm13, %v9329_v47  ;;  %v2313_v7 = vrot.slane %v7811_v42, 1  ;;  %v2314_v25 = vrot.slane %v7813_v4, 1 }
 0x1b1   : > { %v4951_v36 = vunpack.i.h.bf16 %v4949_v52  ;;  %v4950_v1 = vunpack.i.l.bf16 %v4949_v52  ;;  %v1773_v49 = vpack.c.bf16 %v1756_v34, %v1755_v55  ;;  %2118 = vst.msk [vmem:[#allocation3 + $0x28] sm:$0x3] %vm2114_vm13, %v9329_v47  ;;  %2124 = vst.msk [vmem:[#allocation3 + $0x58] sm:$0x3] %vm2114_vm13, %v9329_v47  ;;  %v2393_v31 = vrot.slane %v7811_v42, 2 }
 0x1b2   : > { %2127 = vst.msk [vmem:[#allocation3 + $0x70] sm:$0x3] %vm2114_vm13, %v9329_v47  ;;  %2130 = vst.msk [vmem:[#allocation3 + $0x88] sm:$0x3] %vm2114_vm13, %v9329_v47  ;;  %v2315_v24 = vsel %vm540_vm2, %v2313_v7, %v2314_v25  ;;  %v2394_v26 = vrot.slane %v7813_v4, 2  ;;  %vm3428_vm0 = vcmask 392192  }
 0x1b3   : > { %v1757_v11 = vsel %vm1726_vm11, %v1724_v53, %v4950_v1  ;;  %v1758_v27 = vsel %vm1726_vm11, %v1725_v5, %v4951_v36  ;;  %4211 = vmatprep.mubr.msk.bf16.mxu0 %vm1790_vm12, %v1773_v49  ;;  %2133 = vst.msk [vmem:[#allocation3 + $0xa0] sm:$0x3] %vm2114_vm13, %v9329_v47  ;;  %2136 = vst.msk [vmem:[#allocation3 + $0xb8] sm:$0x3] %vm2114_vm13, %v9329_v47  ;;  %vm3570_vm6 = vcmask 588800  }
 0x1b4   : > { %v1774_v14 = vpack.c.bf16 %v1758_v27, %v1757_v11  ;;  %2139 = vst.msk [vmem:[#allocation3 + $0xd0] sm:$0x3] %vm2114_vm13, %v9329_v47  ;;  %2142 = vst.msk [vmem:[#allocation3 + $0xe8] sm:$0x3] %vm2114_vm13, %v9329_v47  ;;  %v2395_v8 = vsel %vm621_vm3, %v2393_v31, %v2394_v26 }
 0x1b5   : > { %2145 = vst.msk [vmem:[#allocation3 + $0x100] sm:$0x3] %vm2114_vm13, %v9329_v47  ;;  %2148 = vst.msk [vmem:[#allocation3 + $0x118] sm:$0x3] %vm2114_vm13, %v9329_v47 }
 0x1b6   : > { %4212 = vmatmul.mubr.msk.bf16.gmra.mrb[28].mxu0 %vm1790_vm12, %v1774_v14  ;;  %2151 = vst.msk [vmem:[#allocation3 + $0x130] sm:$0x3] %vm2114_vm13, %v9329_v47  ;;  %2154 = vst.msk [vmem:[#allocation3 + $0x148] sm:$0x3] %vm2114_vm13, %v9329_v47 }
 0x1b7   : > { %2157 = vst.msk [vmem:[#allocation3 + $0x160] sm:$0x3] %vm2114_vm13, %v9329_v47  ;;  %2160 = vst.msk [vmem:[#allocation3 + $0x178] sm:$0x3] %vm2114_vm13, %v9329_v47  ;;  %v2202_v12 = vld [vmem:[#allocation3 + $0x10] sm:$0x3] }
 0x1b8   : > { %2163 = vst.msk [vmem:[#allocation3 + $0x190] sm:$0x3] %vm2114_vm13, %v9329_v47  ;;  %2166 = vst.msk [vmem:[#allocation3 + $0x1a8] sm:$0x3] %vm2114_vm13, %v9329_v47  ;;  %v2316_v37 = vrot.slane %v2202_v12, 1  ;;  %v2396_v22 = vrot.slane %v2202_v12, 2 }
 0x1ba   : > { %v2317_v16 = vsel %vm540_vm2, %v2314_v25, %v2316_v37  ;;  %v2397_v54 = vsel %vm621_vm3, %v2394_v26, %v2396_v22 }
 0x1bb   : > { %v4952_v0 = vpack.i.bf16 %v2317_v16, %v2315_v24  ;;  %v4957_v9 = vpack.i.bf16 %v2397_v54, %v2395_v8 }
 0x1bd   : > { %4953 = vrot.lane.b32.xlu0 %v4952_v0, %s5725_s19 }
 0x1c1   : > { %4958 = vrot.lane.b32.xlu0 %v4957_v9, %s5727_s21 }
 0x251   : > { %v4185_v23 = vpop.f32.mrb[0].mxu0 }
 0x252   : > { %v2012_v43 = vmul.f32 %v4185_v23, %v7828_v38  ;;  %v1877_v3 = vpop.f32.mrb[1].mxu0 }
 0x253   : > { %v2010_v10 = vmul.f32 %v7828_v38, %v1877_v3  ;;  %v4186_v33 = vpop.f32.mrb[2].mxu0 }
 0x254   : > { %v2050_v20 = vadd.f32 %v7833_v19, %v2012_v43  ;;  %v2013_v56 = vmul.f32 %v4186_v33, %v7828_v38  ;;  %v1880_v40 = vpop.f32.mrb[3].mxu0 }
 0x255   : > { %v2048_v63 = vadd.f32 %v7833_v19, %v2010_v10  ;;  %v2011_v45 = vmul.f32 %v7828_v38, %v1880_v40 }
 0x256   : > { %v2082_v21 = vmax.f32 %v2050_v20, 0.0  ;;  %v2051_v57 = vadd.f32 %v7833_v19, %v2013_v56 }
 0x257   : > { %v2080_v17 = vmax.f32 %v2048_v63, 0.0  ;;  %v2049_v2 = vadd.f32 %v7833_v19, %v2011_v45 }
 0x258   : > { %2170 = vst.msk [vmem:[#allocation3 + $0x31] sm:$0xff] %vm1528_vm4, %v2082_v21  ;;  %v2083_v48 = vmax.f32 %v2051_v57, 0.0 }
 0x259   : > { %2168 = vst.msk [vmem:[#allocation3 + $0x19] sm:$0xff] %vm1528_vm4, %v2080_v17  ;;  %v2081_v62 = vmax.f32 %v2049_v2, 0.0  ;;  %v4189_v28 = vpop.f32.mrb[4].mxu0 }
 0x25a   : > { %2171 = vst.msk [vmem:[#allocation3 + $0x39] sm:$0xff] %vm1528_vm4, %v2083_v48  ;;  %v2016_v30 = vmul.f32 %v4189_v28, %v7828_v38  ;;  %v1893_v50 = vpop.f32.mrb[5].mxu0 }
 0x25b   : > { %2169 = vst.msk [vmem:[#allocation3 + $0x21] sm:$0xff] %vm1528_vm4, %v2081_v62  ;;  %v2014_v51 = vmul.f32 %v7828_v38, %v1893_v50  ;;  %v4190_v29 = vpop.f32.mrb[6].mxu0 }
 0x25c   : > { %v2054_v18 = vadd.f32 %v7833_v19, %v2016_v30  ;;  %v2017_v60 = vmul.f32 %v4190_v29, %v7828_v38  ;;  %v1896_v44 = vpop.f32.mrb[7].mxu0 }
 0x25d   : > { %v2052_v15 = vadd.f32 %v7833_v19, %v2014_v51  ;;  %v2015_v6 = vmul.f32 %v7828_v38, %v1896_v44 }
 0x25e   : > { %v2086_v32 = vmax.f32 %v2054_v18, 0.0  ;;  %v2055_v61 = vadd.f32 %v7833_v19, %v2017_v60 }
 0x25f   : > { %v2084_v39 = vmax.f32 %v2052_v15, 0.0  ;;  %v2053_v59 = vadd.f32 %v7833_v19, %v2015_v6  ;;  %v2206_v13 = vld [vmem:[#allocation3 + $0x30] sm:$0xff] }
 0x260   : > { %2174 = vst.msk [vmem:[#allocation3 + $0x61] sm:$0xff] %vm1528_vm4, %v2086_v32  ;;  %v2087_v58 = vmax.f32 %v2055_v61, 0.0  ;;  %v2323_v55 = vrot.slane %v2206_v13, 1  ;;  %v7869_v31 = vld [vmem:[#allocation3 + $0x18] sm:$0xff]  ;;  %v2403_v26 = vrot.slane %v2206_v13, 2 }
 0x261   : > { %2172 = vst.msk [vmem:[#allocation3 + $0x49] sm:$0xff] %vm1528_vm4, %v2084_v39  ;;  %v2085_v46 = vmax.f32 %v2053_v59, 0.0  ;;  %v4193_v35 = vpop.f32.mrb[8].mxu0  ;;  %v2207_v41 = vld [vmem:[#allocation3 + $0x38] sm:$0xff]  ;;  %v2208_v52 = vld [vmem:[#allocation3 + $0x40] sm:$0x3] }
 0x262   : > { %2175 = vst.msk [vmem:[#allocation3 + $0x69] sm:$0xff] %vm1528_vm4, %v2087_v58  ;;  %v2020_v34 = vmul.f32 %v4193_v35, %v7828_v38  ;;  %v1909_v36 = vpop.f32.mrb[9].mxu0  ;;  %v4967_v1 = vpack.i.bf16 %v2207_v41, %v2206_v13  ;;  %v2324_v53 = vrot.slane %v2207_v41, 1  ;;  %v2326_v11 = vrot.slane %v2208_v52, 1  ;;  %v2204_v27 = vld [vmem:[#allocation3 + $0x20] sm:$0xff] }
 0x263   : > { %2173 = vst.msk [vmem:[#allocation3 + $0x51] sm:$0xff] %vm1528_vm4, %v2085_v46  ;;  %v2018_v5 = vmul.f32 %v7828_v38, %v1909_v36  ;;  %v4194_v49 = vpop.f32.mrb[10].mxu0  ;;  %v2404_v14 = vrot.slane %v2207_v41, 2  ;;  %v2406_v37 = vrot.slane %v2208_v52, 2  ;;  %v2205_v22 = vld [vmem:[#allocation3 + $0x28] sm:$0x3]  ;;  %v4972_v23 = vpack.i.bf16 %v2204_v27, %v7869_v31 }
 0x264   : > { %v2058_v47 = vadd.f32 %v7833_v19, %v2020_v34  ;;  %v2021_v12 = vmul.f32 %v4194_v49, %v7828_v38  ;;  %4968 = vrot.lane.b32.xlu0 %v4967_v1, %s5732_s8  ;;  %4963 = vrot.lane.b32.xlu1 %v4967_v1, %s5729_s23  ;;  %v1912_v7 = vpop.f32.mrb[11].mxu0  ;;  %v2325_v25 = vsel %vm540_vm2, %v2323_v55, %v2324_v53  ;;  %v2319_v56 = vrot.slane %v2204_v27, 1 }
 0x265   : > { %v2056_v24 = vadd.f32 %v7833_v19, %v2018_v5  ;;  %v2019_v16 = vmul.f32 %v7828_v38, %v1912_v7  ;;  %v2327_v0 = vsel %vm540_vm2, %v2324_v53, %v2326_v11  ;;  %v2405_v10 = vsel %vm621_vm3, %v2403_v26, %v2404_v14 }
 0x266   : > { %v2090_v8 = vmax.f32 %v2058_v47, 0.0  ;;  %v2059_v54 = vadd.f32 %v7833_v19, %v2021_v12  ;;  %v4987_v9 = vpack.i.bf16 %v2327_v0, %v2325_v25  ;;  %v2407_v33 = vsel %vm621_vm3, %v2404_v14, %v2406_v37 }
 0x267   : > { %v2088_v43 = vmax.f32 %v2056_v24, 0.0  ;;  %v2057_v3 = vadd.f32 %v7833_v19, %v2019_v16  ;;  %v2321_v40 = vrot.slane %v2205_v22, 1  ;;  %v2318_v21 = vrot.slane %v7869_v31, 1  ;;  %v2212_v47 = vld [vmem:[#allocation3 + $0x60] sm:$0xff] }
 0x268   : > { %2178 = vst.msk [vmem:[#allocation3 + $0x91] sm:$0xff] %vm1528_vm4, %v2090_v8  ;;  %v2091_v20 = vmax.f32 %v2059_v54, 0.0  ;;  %4988 = vrot.lane.b32.xlu1 %v4987_v9, %s5731_s17  ;;  %4973 = vrot.lane.b32.xlu0 %v4972_v23, %s5729_s23  ;;  %v4992_v2 = vpack.i.bf16 %v2407_v33, %v2405_v10  ;;  %v2399_v48 = vrot.slane %v2204_v27, 2  ;;  %v2401_v51 = vrot.slane %v2205_v22, 2  ;;  %v5595_v54 = vld [vmem:[%s9075_s4] sm:$0xff]   ;;  %v7935_v23 = vld [vmem:[#allocation3 + $0x48] sm:$0xff] }
 0x269   : > { %2176 = vst.msk [vmem:[#allocation3 + $0x79] sm:$0xff] %vm1528_vm4, %v2088_v43  ;;  %v2089_v63 = vmax.f32 %v2057_v3, 0.0  ;;  %v4197_v45 = vpop.f32.mrb[12].mxu0  ;;  %v2320_v30 = vsel %vm540_vm2, %v2318_v21, %v2319_v56  ;;  %v2322_v50 = vsel %vm540_vm2, %v2319_v56, %v2321_v40  ;;  %v2398_v6 = vrot.slane %v7869_v31, 2  ;;  %v7909_v1 = vld [vmem:[#allocation3 + $0x68] sm:$0xff]  ;;  %4215 = vmatprep.subr.bf16.mxu1 %v5595_v54 }
 0x26a   : > { %2179 = vst.msk [vmem:[#allocation3 + $0x99] sm:$0xff] %vm1528_vm4, %v2091_v20  ;;  %v2024_v57 = vmul.f32 %v4197_v45, %v7828_v38  ;;  %v1925_v17 = vpop.f32.mrb[13].mxu0  ;;  %v7895_v39 = vpack.i.bf16 %v2322_v50, %v2320_v30  ;;  %v2402_v46 = vsel %vm621_vm3, %v2399_v48, %v2401_v51  ;;  %v2214_v49 = vld [vmem:[#allocation3 + $0x70] sm:$0x3]  ;;  %v7921_v25 = vpack.i.bf16 %v7909_v1, %v2212_v47  ;;  %v2211_v30 = vld [vmem:[#allocation3 + $0x58] sm:$0x3] }
 0x26b   : > { %2177 = vst.msk [vmem:[#allocation3 + $0x81] sm:$0xff] %vm1528_vm4, %v2089_v63  ;;  %v2022_v62 = vmul.f32 %v7828_v38, %v1925_v17  ;;  %v4198_v28 = vpop.f32.mrb[14].mxu0  ;;  %v2400_v58 = vsel %vm621_vm3, %v2398_v6, %v2399_v48  ;;  %v7924_v16 = vld [vmem:[#allocation3 + $0x50] sm:$0xff]  ;;  %v2334_v0 = vrot.slane %v7909_v1, 1  ;;  %v2336_v26 = vrot.slane %v2214_v49, 1  ;;  %4216 = vmatpush3.bf16.msra.mxu1 %v5595_v54 }
 0x26c   : > { %v2062_v29 = vadd.f32 %v7833_v19, %v2024_v57  ;;  %v2025_v18 = vmul.f32 %v4198_v28, %v7828_v38  ;;  %4993 = vrot.lane.b32.xlu1 %v4992_v2, %s5733_s9  ;;  %4978 = vrot.lane.b32.xlu0 %v4987_v9, %s5725_s19  ;;  %v1928_v60 = vpop.f32.mrb[15].mxu0  ;;  %v7907_v36 = vpack.i.bf16 %v2402_v46, %v2400_v58  ;;  %v2333_v43 = vrot.slane %v2212_v47, 1 }
 0x26d   : > { %v2060_v44 = vadd.f32 %v7833_v19, %v2022_v62  ;;  %v2023_v15 = vmul.f32 %v7828_v38, %v1928_v60  ;;  %v7940_v33 = vpack.i.bf16 %v7924_v16, %v7935_v23  ;;  %v2337_v63 = vsel %vm540_vm2, %v2334_v0, %v2336_v26 }
 0x26e   : > { %v2094_v32 = vmax.f32 %v2062_v29, 0.0  ;;  %v2063_v61 = vadd.f32 %v7833_v19, %v2025_v18  ;;  %v2335_v40 = vsel %vm540_vm2, %v2333_v43, %v2334_v0  ;;  %v2414_v45 = vrot.slane %v7909_v1, 2  ;;  %v5596_v18 = vld [vmem:[%s9075_s4 + $0x8] sm:$0xff]  }
 0x26f   : > { %v2092_v59 = vmax.f32 %v2060_v44, 0.0  ;;  %v2061_v13 = vadd.f32 %v7833_v19, %v2023_v15  ;;  %v2416_v17 = vrot.slane %v2214_v49, 2  ;;  %v2413_v28 = vrot.slane %v2212_v47, 2  ;;  %4217 = vmatprep.subr.bf16.mxu1 %v5596_v18 }
 0x270   : > { %2182 = vst.msk [vmem:[#allocation3 + $0xc1] sm:$0xff] %vm1528_vm4, %v2094_v32  ;;  %v2095_v35 = vmax.f32 %v2063_v61, 0.0  ;;  %4983 = vrot.lane.b32.xlu0 %v4992_v2, %s5727_s21  ;;  %5008 = vrot.lane.b32.xlu1 %v7895_v39, %s5725_s19  ;;  %v7957_v29 = vpack.i.bf16 %v2337_v63, %v2335_v40  ;;  %v2329_v6 = vrot.slane %v7924_v16, 1  ;;  %v2328_v58 = vrot.slane %v7935_v23, 1 }
 0x271   : > { %2180 = vst.msk [vmem:[#allocation3 + $0xa9] sm:$0xff] %vm1528_vm4, %v2092_v59  ;;  %v2093_v41 = vmax.f32 %v2061_v13, 0.0  ;;  %v4201_v52 = vpop.f32.mrb[16].mxu0  ;;  %v2415_v15 = vsel %vm621_vm3, %v2413_v28, %v2414_v45  ;;  %v2331_v59 = vrot.slane %v2211_v30, 1  ;;  %4218 = vmatpush3.bf16.msra.mxu1 %v5596_v18  ;;  %v2409_v49 = vrot.slane %v7924_v16, 2 }
 0x272   : > { %2183 = vst.msk [vmem:[#allocation3 + $0xc9] sm:$0xff] %vm1528_vm4, %v2095_v35  ;;  %v2028_v55 = vmul.f32 %v4201_v52, %v7828_v38  ;;  %v1941_v34 = vpop.f32.mrb[17].mxu0  ;;  %v2216_v18 = vld [vmem:[#allocation3 + $0x80] sm:$0xff] }
 0x273   : > { %2181 = vst.msk [vmem:[#allocation3 + $0xb1] sm:$0xff] %vm1528_vm4, %v2093_v41  ;;  %v2026_v53 = vmul.f32 %v7828_v38, %v1941_v34  ;;  %v4202_v5 = vpop.f32.mrb[18].mxu0  ;;  %v2330_v34 = vsel %vm540_vm2, %v2328_v58, %v2329_v6 }
 0x274   : > { %v2066_v11 = vadd.f32 %v7833_v19, %v2028_v55  ;;  %v2029_v27 = vmul.f32 %v4202_v5, %v7828_v38  ;;  %4998 = vrot.lane.b32.xlu0 %v4987_v9, %s5734_s13  ;;  %5013 = vrot.lane.b32.xlu1 %v7907_v36, %s5727_s21  ;;  %v1944_v14 = vpop.f32.mrb[19].mxu0  ;;  %v2332_v5 = vsel %vm540_vm2, %v2329_v6, %v2331_v59 }
 0x275   : > { %v2064_v12 = vadd.f32 %v7833_v19, %v2026_v53  ;;  %v2027_v7 = vmul.f32 %v7828_v38, %v1944_v14  ;;  %v5077_v26 = vpack.i.bf16 %v2332_v5, %v2330_v34  ;;  %v2419_v5 = vrot.slane %v2216_v18, 2 }
 0x276   : > { %v2098_v37 = vmax.f32 %v2066_v11, 0.0  ;;  %v2067_v24 = vadd.f32 %v7833_v19, %v2029_v27  ;;  %v2411_v11 = vrot.slane %v2211_v30, 2 }
 0x277   : > { %v2096_v22 = vmax.f32 %v2064_v12, 0.0  ;;  %v2065_v8 = vadd.f32 %v7833_v19, %v2027_v7 }
 0x278   : > { %2186 = vst.msk [vmem:[#allocation3 + $0xf1] sm:$0xff] %vm1528_vm4, %v2098_v37  ;;  %v2099_v9 = vmax.f32 %v2067_v24, 0.0  ;;  %5003 = vrot.lane.b32.xlu0 %v4992_v2, %s5735_s16  ;;  %5028 = vrot.lane.b32.xlu1 %v7921_v25, %s5729_s23  ;;  %v2408_v37 = vrot.slane %v7935_v23, 2  ;;  %v5598_v24 = vld [vmem:[%s9075_s4 + $0x18] sm:$0xff]   ;;  %v2412_v54 = vsel %vm621_vm3, %v2409_v49, %v2411_v11 }
 0x279   : > { %2184 = vst.msk [vmem:[#allocation3 + $0xd9] sm:$0xff] %vm1528_vm4, %v2096_v22  ;;  %v2097_v3 = vmax.f32 %v2065_v8, 0.0  ;;  %v4205_v10 = vpop.f32.mrb[20].mxu0 }
 0x27a   : > { %2187 = vst.msk [vmem:[#allocation3 + $0xf9] sm:$0xff] %vm1528_vm4, %v2099_v9  ;;  %v2032_v20 = vmul.f32 %v4205_v10, %v7828_v38  ;;  %v1957_v56 = vpop.f32.mrb[21].mxu0  ;;  %v2410_v8 = vsel %vm621_vm3, %v2408_v37, %v2409_v49 }
 0x27b   : > { %2185 = vst.msk [vmem:[#allocation3 + $0xe1] sm:$0xff] %vm1528_vm4, %v2097_v3  ;;  %v2030_v21 = vmul.f32 %v7828_v38, %v1957_v56  ;;  %v4206_v57 = vpop.f32.mrb[22].mxu0 }
 0x27c   : > { %v2070_v2 = vadd.f32 %v7833_v19, %v2032_v20  ;;  %v2033_v48 = vmul.f32 %v4206_v57, %v7828_v38  ;;  %5018 = vrot.lane.b32.xlu0 %v7895_v39, %s5731_s17  ;;  %5043 = vrot.lane.b32.xlu1 %v7940_v33, %s5732_s8  ;;  %v1960_v62 = vpop.f32.mrb[23].mxu0  ;;  %v2417_v39 = vsel %vm621_vm3, %v2414_v45, %v2416_v17 }
 0x27d   : > { %v2068_v50 = vadd.f32 %v7833_v19, %v2030_v21  ;;  %v2031_v51 = vmul.f32 %v7828_v38, %v1960_v62  ;;  %v7976_v55 = vpack.i.bf16 %v2417_v39, %v2415_v15  ;;  %v5082_v20 = vpack.i.bf16 %v2412_v54, %v2410_v8  ;;  %v2215_v15 = vld [vmem:[#allocation3 + $0x78] sm:$0xff]  ;;  %v2221_v54 = vld [vmem:[#allocation3 + $0xa8] sm:$0xff] }
 0x27e   : > { %v2102_v60 = vmax.f32 %v2070_v2, 0.0  ;;  %v2071_v44 = vadd.f32 %v7833_v19, %v2033_v48  ;;  %v2338_v34 = vrot.slane %v2215_v15, 1  ;;  %v2418_v11 = vrot.slane %v2215_v15, 2 }
 0x27f   : > { %v2100_v32 = vmax.f32 %v2068_v50, 0.0  ;;  %v2069_v61 = vadd.f32 %v7833_v19, %v2031_v51  ;;  %v2218_v50 = vld [vmem:[#allocation3 + $0x90] sm:$0xff] }
 0x280   : > { %2190 = vst.msk [vmem:[#allocation3 + $0x121] sm:$0xff] %vm1528_vm4, %v2102_v60  ;;  %v2103_v13 = vmax.f32 %v2071_v44, 0.0  ;;  %5023 = vrot.lane.b32.xlu0 %v7907_v36, %s5733_s9  ;;  %5058 = vrot.lane.b32.xlu1 %v7957_v29, %s5731_s17  ;;  %v5597_v36 = vld [vmem:[%s9075_s4 + $0x10] sm:$0xff]   ;;  %v2343_v6 = vrot.slane %v2218_v50, 1  ;;  %v2423_v58 = vrot.slane %v2218_v50, 2 }
 0x281   : > { %2188 = vst.msk [vmem:[#allocation3 + $0x109] sm:$0xff] %vm1528_vm4, %v2100_v32  ;;  %v2101_v46 = vmax.f32 %v2069_v61, 0.0  ;;  %v4209_v35 = vpop.f32.mrb[24].mxu0  ;;  %4219 = vmatprep.subr.bf16.mxu1 %v5597_v36  ;;  %v5122_v32 = vpack.i.bf16 %v2216_v18, %v2215_v15  ;;  %v2231_v15 = vld [vmem:[#allocation3 + $0xf8] sm:$0xff] }
 0x282   : > { %2191 = vst.msk [vmem:[#allocation3 + $0x129] sm:$0xff] %vm1528_vm4, %v2103_v13  ;;  %v2036_v41 = vmul.f32 %v4209_v35, %v7828_v38  ;;  %v1973_v52 = vpop.f32.mrb[25].mxu0  ;;  %4220 = vmatpush3.bf16.msra.mxu1 %v5597_v36  ;;  %v2217_v13 = vld [vmem:[#allocation3 + $0x88] sm:$0x3] }
 0x283   : > { %2189 = vst.msk [vmem:[#allocation3 + $0x111] sm:$0xff] %vm1528_vm4, %v2101_v46  ;;  %v2034_v1 = vmul.f32 %v7828_v38, %v1973_v52  ;;  %v4210_v53 = vpop.f32.mrb[26].mxu0  ;;  %4221 = vmatprep.subr.bf16.mxu1 %v5598_v24  ;;  %v2339_v52 = vrot.slane %v2216_v18, 1  ;;  %v2421_v49 = vrot.slane %v2217_v13, 2 }
 0x284   : > { %v2074_v27 = vadd.f32 %v7833_v19, %v2036_v41  ;;  %v2037_v14 = vmul.f32 %v4210_v53, %v7828_v38  ;;  %5033 = vrot.lane.b32.xlu0 %v7921_v25, %s5732_s8  ;;  %5063 = vrot.lane.b32.xlu1 %v7976_v55, %s5733_s9  ;;  %v1976_v47 = vpop.f32.mrb[27].mxu0 }
 0x285   : > { %v2072_v12 = vadd.f32 %v7833_v19, %v2034_v1  ;;  %v2035_v7 = vmul.f32 %v7828_v38, %v1976_v47  ;;  %v2340_v1 = vsel %vm540_vm2, %v2338_v34, %v2339_v52  ;;  %v2420_v47 = vsel %vm621_vm3, %v2418_v11, %v2419_v5 }
 0x286   : > { %v2106_v16 = vmax.f32 %v2074_v27, 0.0  ;;  %v2075_v0 = vadd.f32 %v7833_v19, %v2037_v14  ;;  %4222 = vmatpush3.bf16.msra.mxu1 %v5598_v24  ;;  %v5599_v27 = vld [vmem:[%s9075_s4 + $0x20] ss:$0 sps:$4 sm:$0xff]   ;;  %v2225_v24 = vld [vmem:[#allocation3 + $0xc8] sm:$0xff] }
 0x287   : > { %v2104_v25 = vmax.f32 %v2072_v12, 0.0  ;;  %v2073_v22 = vadd.f32 %v7833_v19, %v2035_v7  ;;  %v2422_v12 = vsel %vm621_vm3, %v2419_v5, %v2421_v49  ;;  %4258 = vmatprep.subr.msk.bf16.mxu1 %vm3619_vm14, %v5599_v27  ;;  %v3621_v37 = vsel %vm3619_vm14, %v5599_v27, 0  ;;  %v2229_v5 = vld [vmem:[#allocation3 + $0xe8] sm:$0x3] }
 0x288   : > { %2194 = vst.msk [vmem:[#allocation3 + $0x151] sm:$0xff] %vm1528_vm4, %v2106_v16  ;;  %v2107_v9 = vmax.f32 %v2075_v0, 0.0  ;;  %5038 = vrot.lane.b32.xlu0 %v7940_v33, %s5729_s23  ;;  %5078 = vrot.lane.b32.xlu1 %v5077_v26, %s5725_s19  ;;  %v5162_v7 = vpack.i.bf16 %v2422_v12, %v2420_v47  ;;  %v2226_v16 = vld [vmem:[#allocation3 + $0xd0] sm:$0x3]  ;;  %v2224_v0 = vld [vmem:[#allocation3 + $0xc0] sm:$0xff] }
 0x289   : > { %2192 = vst.msk [vmem:[#allocation3 + $0x139] sm:$0xff] %vm1528_vm4, %v2104_v25  ;;  %v2105_v23 = vmax.f32 %v2073_v22, 0.0  ;;  %v4213_v43 = vpop.f32.mrb[28].mxu0  ;;  %v2222_v25 = vld [vmem:[#allocation3 + $0xb0] sm:$0xff]  ;;  %v2354_v22 = vrot.slane %v2225_v24, 1  ;;  %v2356_v8 = vrot.slane %v2226_v16, 1 }
 0x28a   : > { %2195 = vst.msk [vmem:[#allocation3 + $0x159] sm:$0xff] %vm1528_vm4, %v2107_v9  ;;  %v2040_v3 = vmul.f32 %v4213_v43, %v7828_v38  ;;  %v1989_v10 = vpop.f32.mrb[29].mxu0  ;;  %4224 = vmatpush3.bf16.msra.mxu1 %v3621_v37  ;;  %v2353_v9 = vrot.slane %v2224_v0, 1  ;;  %v2361_v37 = vrot.slane %v2229_v5, 1 }
 0x28b   : > { %2193 = vst.msk [vmem:[#allocation3 + $0x141] sm:$0xff] %vm1528_vm4, %v2105_v23  ;;  %v2038_v56 = vmul.f32 %v7828_v38, %v1989_v10  ;;  %v4214_v40 = vpop.f32.mrb[30].mxu0  ;;  %v5202_v23 = vpack.i.bf16 %v2222_v25, %v2221_v54  ;;  %v2434_v10 = vrot.slane %v2225_v24, 2 }
 0x28c   : > { %v2078_v33 = vadd.f32 %v7833_v19, %v2040_v3  ;;  %v2041_v63 = vmul.f32 %v4214_v40, %v7828_v38  ;;  %5048 = vrot.lane.b32.xlu0 %v7957_v29, %s5725_s19  ;;  %5083 = vrot.lane.b32.xlu1 %v5082_v20, %s5727_s21  ;;  %v1992_v45 = vpop.f32.mrb[31].mxu0  ;;  %v2355_v43 = vsel %vm540_vm2, %v2353_v9, %v2354_v22  ;;  %v2433_v40 = vrot.slane %v2224_v0, 2 }
 0x28d   : > { %v2076_v21 = vadd.f32 %v7833_v19, %v2038_v56  ;;  %v2039_v57 = vmul.f32 %v7828_v38, %v1992_v45  ;;  %v2219_v38 = vld [vmem:[#allocation3 + $0x98] sm:$0xff]  ;;  %v2357_v3 = vsel %vm540_vm2, %v2354_v22, %v2356_v8 }
 0x28e   : > { %v2110_v17 = vmax.f32 %v2078_v33, 0.0  ;;  %v2079_v2 = vadd.f32 %v7833_v19, %v2041_v63  ;;  %v5107_v51 = vpack.i.bf16 %v2219_v38, %v2218_v50  ;;  %v2344_v60 = vrot.slane %v2219_v38, 1  ;;  %v2223_v56 = vld [vmem:[#allocation3 + $0xb8] sm:$0x3] }
 0x28f   : > { %v2108_v48 = vmax.f32 %v2076_v21, 0.0  ;;  %v2077_v62 = vadd.f32 %v7833_v19, %v2039_v57  ;;  %v2220_v19 = vld [vmem:[#allocation3 + $0xa0] sm:$0x3]  ;;  %v2424_v39 = vrot.slane %v2219_v38, 2  ;;  %v5217_v33 = vpack.i.bf16 %v2357_v3, %v2355_v43  ;;  %v8127_v3 = vld [vmem:[#allocation3 + $0x128] sm:$0xff] }
 0x290   : > { %2198 = vst.msk [vmem:[#allocation3 + $0x181] sm:$0xff] %vm1528_vm4, %v2110_v17  ;;  %v2111_v28 = vmax.f32 %v2079_v2, 0.0  ;;  %5053 = vrot.lane.b32.xlu0 %v7976_v55, %s5727_s21  ;;  %5088 = vrot.lane.b32.xlu1 %v5077_v26, %s5734_s13  ;;  %v2346_v44 = vrot.slane %v2220_v19, 1  ;;  %v2345_v61 = vsel %vm540_vm2, %v2343_v6, %v2344_v60  ;;  %v2426_v59 = vrot.slane %v2220_v19, 2  ;;  %v2232_v6 = vld [vmem:[#allocation3 + $0x100] sm:$0x3] }
 0x291   : > { %2196 = vst.msk [vmem:[#allocation3 + $0x169] sm:$0xff] %vm1528_vm4, %v2108_v48  ;;  %v2109_v30 = vmax.f32 %v2077_v62, 0.0  ;;  %v2425_v35 = vsel %vm621_vm3, %v2423_v58, %v2424_v39  ;;  %v2435_v63 = vsel %vm621_vm3, %v2433_v40, %v2434_v10  ;;  %v2349_v21 = vrot.slane %v2222_v25, 1 }
 0x292   : > { %2199 = vst.msk [vmem:[#allocation3 + $0x189] sm:$0xff] %vm1528_vm4, %v2111_v28  ;;  %v2427_v41 = vsel %vm621_vm3, %v2424_v39, %v2426_v59  ;;  %v2351_v57 = vrot.slane %v2223_v56, 1  ;;  %v2348_v17 = vrot.slane %v2221_v54, 1  ;;  %v2429_v28 = vrot.slane %v2222_v25, 2  ;;  %v2228_v59 = vld [vmem:[#allocation3 + $0xe0] sm:$0xff] }
 0x293   : > { %2197 = vst.msk [vmem:[#allocation3 + $0x171] sm:$0xff] %vm1528_vm4, %v2109_v30  ;;  %v5142_v36 = vpack.i.bf16 %v2427_v41, %v2425_v35  ;;  %v2431_v30 = vrot.slane %v2223_v56, 2  ;;  %v2428_v38 = vrot.slane %v2221_v54, 2  ;;  %v2366_v58 = vrot.slane %v2232_v6, 1 }
 0x294   : > { %5068 = vrot.lane.b32.xlu0 %v7957_v29, %s5734_s13  ;;  %5093 = vrot.lane.b32.xlu1 %v5082_v20, %s5735_s16  ;;  %v2347_v29 = vsel %vm540_vm2, %v2344_v60, %v2346_v44  ;;  %v2350_v48 = vsel %vm540_vm2, %v2348_v17, %v2349_v21  ;;  %v2352_v62 = vsel %vm540_vm2, %v2349_v21, %v2351_v57  ;;  %v8076_v60 = vpop.permute.xlu0 %4953  ;;  %v2439_v8 = vrot.slane %v2228_v59, 2 }
 0x295   : > { %v5137_v46 = vpack.i.bf16 %v2347_v29, %v2345_v61  ;;  %v5237_v19 = vpack.i.bf16 %v2352_v62, %v2350_v48  ;;  %v2430_v50 = vsel %vm621_vm3, %v2428_v38, %v2429_v28  ;;  %v2441_v54 = vrot.slane %v2229_v5, 2  ;;  %v8154_v38 = vld [vmem:[#allocation3 + $0x108] sm:$0xff]  ;;  %v8183_v5 = vld [vmem:[#allocation3 + $0x158] sm:$0xff] }
 0x296   : > { %v4956_v9 = vunpack.i.h.bf16 %v8076_v60 }
 0x297   : > { %v2442_v17 = vsel %vm621_vm3, %v2439_v8, %v2441_v54 }
 0x298   : > { %5073 = vrot.lane.b32.xlu0 %v7976_v55, %s5735_s16  ;;  %5108 = vrot.lane.b32.xlu1 %v5107_v51, %s5729_s23  ;;  %v2341_v55 = vrot.slane %v2217_v13, 1  ;;  %v8082_v44 = vpop.permute.xlu0 %4958  ;;  %v2364_v13 = vrot.slane %v2231_v15, 1  ;;  %v3268_v48 = vsel %vm1528_vm4, %v7813_v4, %v4956_v9 }
 0x299   : > { %v4960_v21 = vunpack.i.l.bf16 %v8082_v44 }
 0x29a   : > { %v2342_v53 = vsel %vm540_vm2, %v2339_v52, %v2341_v55 }
 0x29b   : > { %v5157_v14 = vpack.i.bf16 %v2342_v53, %v2340_v1  ;;  %v2444_v1 = vrot.slane %v2231_v15, 2  ;;  %v2446_v53 = vrot.slane %v2232_v6, 2 }
 0x29c   : > { %5098 = vrot.lane.b32.xlu0 %v5077_v26, %s5731_s17  ;;  %5123 = vrot.lane.b32.xlu1 %v5122_v32, %s5732_s8  ;;  %v5187_v26 = vpack.i.bf16 %v2225_v24, %v2224_v0 }
 0x29d   : > { %v2447_v12 = vsel %vm621_vm3, %v2444_v1, %v2446_v53 }
 0x2a0   : > { %5103 = vrot.lane.b32.xlu0 %v5082_v20, %s5733_s9  ;;  %5138 = vrot.lane.b32.xlu1 %v5137_v46, %s5731_s17  ;;  %v2436_v20 = vrot.slane %v2226_v16, 2 }
 0x2a2   : > { %v2437_v45 = vsel %vm621_vm3, %v2434_v10, %v2436_v20  ;;  %v8129_v10 = vld [vmem:[#allocation3 + $0x130] sm:$0x3] }
 0x2a3   : > { %v5222_v2 = vpack.i.bf16 %v2437_v45, %v2435_v63  ;;  %v8137_v63 = vld [vmem:[#allocation3 + $0x118] sm:$0x3]  ;;  %v4961_v45 = vunpack.i.h.bf16 %v8082_v44 }
 0x2a4   : > { %5113 = vrot.lane.b32.xlu0 %v5107_v51, %s5732_s8  ;;  %5143 = vrot.lane.b32.xlu1 %v5142_v36, %s5733_s9  ;;  %v2432_v51 = vsel %vm621_vm3, %v2429_v28, %v2431_v30  ;;  %v2374_v28 = vrot.slane %v8127_v3, 1  ;;  %v2376_v30 = vrot.slane %v8129_v10, 1 }
 0x2a5   : > { %v5242_v18 = vpack.i.bf16 %v2432_v51, %v2430_v50  ;;  %v2371_v50 = vrot.slane %v8137_v63, 1  ;;  %v3300_v44 = vsel %vm1594_vm7, %v3268_v48, %v4961_v45 }
 0x2a8   : > { %5118 = vrot.lane.b32.xlu0 %v5122_v32, %s5729_s23  ;;  %5158 = vrot.lane.b32.xlu1 %v5157_v14, %s5725_s19  ;;  %v2230_v32 = vld [vmem:[#allocation3 + $0xf0] sm:$0xff] }
 0x2a9   : > { %v8090_v39 = vpack.i.bf16 %v2231_v15, %v2230_v32  ;;  %v2363_v35 = vrot.slane %v2230_v32, 1  ;;  %v2443_v49 = vrot.slane %v2230_v32, 2  ;;  %v2368_v15 = vrot.slane %v8154_v38, 1 }
 0x2aa   : > { %v2377_v32 = vsel %vm540_vm2, %v2374_v28, %v2376_v30 }
 0x2ab   : > { %v2365_v34 = vsel %vm540_vm2, %v2363_v35, %v2364_v13  ;;  %v2445_v47 = vsel %vm621_vm3, %v2443_v49, %v2444_v1  ;;  %v2454_v35 = vrot.slane %v8127_v3, 2  ;;  %v8185_v49 = vld [vmem:[#allocation3 + $0x160] sm:$0x3] }
 0x2ac   : > { %5128 = vrot.lane.b32.xlu0 %v5137_v46, %s5725_s19  ;;  %5163 = vrot.lane.b32.xlu1 %v5162_v7, %s5727_s21 }
 0x2b0   : > { %5133 = vrot.lane.b32.xlu0 %v5142_v36, %s5727_s21  ;;  %5168 = vrot.lane.b32.xlu1 %v5157_v14, %s5734_s13 }
 0x2b4   : > { %5148 = vrot.lane.b32.xlu0 %v5137_v46, %s5734_s13  ;;  %5173 = vrot.lane.b32.xlu1 %v5162_v7, %s5735_s16  ;;  %v2227_v46 = vld [vmem:[#allocation3 + $0xd8] sm:$0xff] }
 0x2b5   : > { %v5277_v55 = vpack.i.bf16 %v2228_v59, %v2227_v46  ;;  %v2358_v24 = vrot.slane %v2227_v46, 1  ;;  %v2438_v43 = vrot.slane %v2227_v46, 2 }
 0x2b7   : > { %v2440_v57 = vsel %vm621_vm3, %v2438_v43, %v2439_v8  ;;  %v2384_v43 = vrot.slane %v8183_v5, 1 }
 0x2b8   : > { %5153 = vrot.lane.b32.xlu0 %v5142_v36, %s5735_s16  ;;  %5188 = vrot.lane.b32.xlu1 %v5187_v26, %s5729_s23  ;;  %v2367_v36 = vsel %vm540_vm2, %v2364_v13, %v2366_v58 }
 0x2bc   : > { %5178 = vrot.lane.b32.xlu0 %v5157_v14, %s5731_s17  ;;  %5203 = vrot.lane.b32.xlu1 %v5202_v23, %s5732_s8  ;;  %v8107_v14 = vpack.i.bf16 %v2367_v36, %v2365_v34  ;;  %v8177_v34 = vld [vmem:[#allocation3 + $0x150] sm:$0xff] }
 0x2c0   : > { %5183 = vrot.lane.b32.xlu0 %v5162_v7, %s5733_s9  ;;  %5218 = vrot.lane.b32.xlu1 %v5217_v33, %s5731_s17  ;;  %v2359_v7 = vrot.slane %v2228_v59, 1 }
 0x2c2   : > { %v2360_v25 = vsel %vm540_vm2, %v2358_v24, %v2359_v7  ;;  %v2362_v22 = vsel %vm540_vm2, %v2359_v7, %v2361_v37 }
 0x2c3   : > { %v5302_v40 = vpack.i.bf16 %v2362_v22, %v2360_v25  ;;  %v2451_v25 = vrot.slane %v8137_v63, 2  ;;  %v2383_v22 = vrot.slane %v8177_v34, 1 }
 0x2c4   : > { %5193 = vrot.lane.b32.xlu0 %v5187_v26, %s5732_s8  ;;  %5223 = vrot.lane.b32.xlu1 %v5222_v2, %s5733_s9  ;;  %v8118_v26 = vpack.i.bf16 %v2447_v12, %v2445_v47 }
 0x2c8   : > { %5198 = vrot.lane.b32.xlu0 %v5202_v23, %s5729_s23  ;;  %5238 = vrot.lane.b32.xlu1 %v5237_v19, %s5725_s19  ;;  %v4955_v23 = vunpack.i.l.bf16 %v8076_v60 }
 0x2ca   : > { %v3267_v62 = vsel %vm1528_vm4, %v7811_v42, %v4955_v23  ;;  %v5307_v42 = vpack.i.bf16 %v2442_v17, %v2440_v57 }
 0x2cb   : > { %v3299_v60 = vsel %vm1594_vm7, %v3267_v62, %v4960_v21 }
 0x2cc   : > { %5208 = vrot.lane.b32.xlu0 %v5217_v33, %s5725_s19  ;;  %5243 = vrot.lane.b32.xlu1 %v5242_v18, %s5727_s21 }
 0x2d0   : > { %5213 = vrot.lane.b32.xlu0 %v5222_v2, %s5727_s21  ;;  %5248 = vrot.lane.b32.xlu1 %v5237_v19, %s5734_s13 }
 0x2d4   : > { %5228 = vrot.lane.b32.xlu0 %v5217_v33, %s5734_s13  ;;  %5253 = vrot.lane.b32.xlu1 %v5242_v18, %s5735_s16  ;;  %v8135_v33 = vld [vmem:[#allocation3 + $0x110] sm:$0xff] }
 0x2d5   : > { %v2449_v24 = vrot.slane %v8135_v33, 2 }
 0x2d6   : > { %v8086_v61 = vpop.permute.xlu0 %4968  ;;  %v8088_v29 = vpop.permute.xlu1 %4963 }
 0x2d7   : > { %v4971_v63 = vunpack.i.h.bf16 %v8086_v61  ;;  %v4970_v17 = vunpack.i.l.bf16 %v8086_v61 }
 0x2d8   : > { %5233 = vrot.lane.b32.xlu0 %v5222_v2, %s5735_s16  ;;  %5268 = vrot.lane.b32.xlu1 %v8090_v39, %s5729_s23  ;;  %v8143_v2 = vld [vmem:[#allocation3 + $0x120] sm:$0xff] }
 0x2d9   : > { %v2453_v37 = vrot.slane %v8143_v2, 2 }
 0x2da   : > { %v8095_v41 = vpop.permute.xlu1 %4988  ;;  %v8097_v52 = vpop.permute.xlu0 %4973 }
 0x2db   : > { %v4976_v36 = vunpack.i.h.bf16 %v8097_v52  ;;  %v4975_v1 = vunpack.i.l.bf16 %v8097_v52  ;;  %v2448_v52 = vrot.slane %v8154_v38, 2  ;;  %v2455_v9 = vsel %vm621_vm3, %v2453_v37, %v2454_v35 }
 0x2dc   : > { %5258 = vrot.lane.b32.xlu0 %v5237_v19, %s5731_s17  ;;  %5278 = vrot.lane.b32.xlu1 %v5277_v55, %s5732_s8  ;;  %v2369_v19 = vrot.slane %v8135_v33, 1 }
 0x2dd   : > { %v3331_v45 = vsel %vm1660_vm9, %v3299_v60, %v4975_v1 }
 0x2de   : > { %v8103_v11 = vpop.permute.xlu1 %4993  ;;  %v8105_v27 = vpop.permute.xlu0 %4978  ;;  %v2370_v59 = vsel %vm540_vm2, %v2368_v15, %v2369_v19  ;;  %v2372_v13 = vsel %vm540_vm2, %v2369_v19, %v2371_v50  ;;  %v2450_v19 = vsel %vm621_vm3, %v2448_v52, %v2449_v24  ;;  %v2452_v50 = vsel %vm621_vm3, %v2449_v24, %v2451_v25 }
 0x2df   : > { %v8189_v7 = vpack.i.bf16 %v2372_v13, %v2370_v59  ;;  %v2385_v59 = vsel %vm540_vm2, %v2383_v22, %v2384_v43  ;;  %v2464_v24 = vrot.slane %v8183_v5, 2  ;;  %v2466_v25 = vrot.slane %v8185_v49, 2  ;;  %v8246_v22 = vld [vmem:[#allocation3 + $0x140] sm:$0xff] }
 0x2e0   : > { %5263 = vrot.lane.b32.xlu0 %v5242_v18, %s5733_s9  ;;  %5293 = vrot.lane.b32.xlu1 %v8107_v14, %s5731_s17  ;;  %v2373_v18 = vrot.slane %v8143_v2, 1 }
 0x2e2   : > { %v8114_v16 = vpop.permute.xlu0 %4983  ;;  %v8116_v0 = vpop.permute.xlu1 %5008  ;;  %v2375_v6 = vsel %vm540_vm2, %v2373_v18, %v2374_v28 }
 0x2e3   : > { %v8181_v53 = vpack.i.bf16 %v2377_v32, %v2375_v6 }
 0x2e4   : > { %5298 = vrot.lane.b32.xlu1 %v8118_v26, %s5733_s9  ;;  %5273 = vrot.lane.b32.xlu0 %v5277_v55, %s5729_s23  ;;  %v2456_v55 = vrot.slane %v8129_v10, 2  ;;  %v2386_v10 = vrot.slane %v8185_v49, 1  ;;  %v2463_v49 = vrot.slane %v8177_v34, 2 }
 0x2e6   : > { %v8131_v20 = vpop.permute.xlu0 %4998  ;;  %v8133_v56 = vpop.permute.xlu1 %5013  ;;  %v2457_v23 = vsel %vm621_vm3, %v2454_v35, %v2456_v55  ;;  %v2387_v13 = vsel %vm540_vm2, %v2384_v43, %v2386_v10  ;;  %v5632_v43 = vld [vmem:[#allocation3 + $0x20] sm:$0xff] }
 0x2e7   : > { %v5001_v18 = vunpack.i.h.bf16 %v8131_v20  ;;  %v5000_v61 = vunpack.i.l.bf16 %v8131_v20  ;;  %v5010_v20 = vunpack.i.l.bf16 %v8116_v0  ;;  %v8242_v52 = vpack.i.bf16 %v2457_v23, %v2455_v9 }
 0x2e8   : > { %5283 = vrot.lane.b32.xlu0 %v8107_v14, %s5725_s19  ;;  %5303 = vrot.lane.b32.xlu1 %v5302_v40, %s5725_s19  ;;  %v8258_v9 = vpack.i.bf16 %v2387_v13, %v2385_v59  ;;  %v2459_v59 = vrot.slane %v8246_v22, 2 }
 0x2ea   : > { %v8158_v51 = vpop.permute.xlu0 %5003  ;;  %v8160_v4 = vpop.permute.xlu1 %5028 }
 0x2eb   : > { %v5006_v6 = vunpack.i.h.bf16 %v8158_v51  ;;  %v5005_v32 = vunpack.i.l.bf16 %v8158_v51  ;;  %v5016_v51 = vunpack.i.h.bf16 %v8133_v56 }
 0x2ec   : > { %5288 = vrot.lane.b32.xlu0 %v8118_v26, %s5727_s21  ;;  %5308 = vrot.lane.b32.xlu1 %v5307_v42, %s5727_s21 }
 0x2ee   : > { %v5019_v58 = vpop.permute.xlu0 %5018  ;;  %v8173_v46 = vpop.permute.xlu1 %5043 }
 0x2ef   : > { %v5021_v47 = vunpack.i.h.bf16 %v5019_v58  ;;  %v5020_v12 = vunpack.i.l.bf16 %v5019_v58  ;;  %v5011_v58 = vunpack.i.h.bf16 %v8116_v0 }
 0x2f0   : > { %5323 = vrot.lane.b32.xlu0 %v5302_v40, %s5731_s17  ;;  %5313 = vrot.lane.b32.xlu1 %v5302_v40, %s5734_s13  ;;  %v3332_v40 = vsel %vm1660_vm9, %v3300_v44, %v4976_v36  ;;  %v5015_v36 = vunpack.i.l.bf16 %v8133_v56  ;;  %v8250_v56 = vpack.i.bf16 %v2452_v50, %v2450_v19  ;;  %v8279_v19 = vpack.i.bf16 %v8135_v33, %v8154_v38 }
 0x2f1   : > { %v3364_v48 = vsel %vm1726_vm11, %v3332_v40, %v5021_v47  ;;  %v3363_v62 = vsel %vm1726_vm11, %v3331_v45, %v5020_v12  ;;  %v3270_v10 = vsel %vm1528_vm4, %v5632_v43, %v5011_v58  ;;  %v3269_v40 = vsel %vm1528_vm4, %v7869_v31, %v5010_v20 }
 0x2f2   : > { %v5024_v8 = vpop.permute.xlu0 %5023  ;;  %v8196_v54 = vpop.permute.xlu1 %5058  ;;  %v3301_v23 = vsel %vm1594_vm7, %v3269_v40, %v5015_v36  ;;  %v3302_v45 = vsel %vm1594_vm7, %v3270_v10, %v5016_v51  ;;  %v2379_v31 = vrot.slane %v8246_v22, 1  ;;  %v5046_v20 = vunpack.i.h.bf16 %v8173_v46  ;;  %v2247_v51 = vld [vmem:[#allocation3 + $0x178] sm:$0x3] }
 0x2f3   : > { %v5026_v21 = vunpack.i.h.bf16 %v5024_v8  ;;  %v5025_v57 = vunpack.i.l.bf16 %v5024_v8  ;;  %v8248_v8 = vld [vmem:[#allocation3 + $0x148] sm:$0x3]  ;;  %v4996_v36 = vunpack.i.h.bf16 %v8103_v11 }
 0x2f4   : > { %5328 = vrot.lane.b32.xlu0 %v5307_v42, %s5733_s9  ;;  %5318 = vrot.lane.b32.xlu1 %v5307_v42, %s5735_s16  ;;  %v2461_v13 = vrot.slane %v8248_v8, 2 }
 0x2f5   : > { %v3396_v28 = vsel %vm3395_vm15, %v3363_v62, %v5025_v57  ;;  %v3397_v30 = vsel %vm3395_vm15, %v3364_v48, %v5026_v21  ;;  %v8265_v21 = vld [vmem:[#allocation3 + $0x138] sm:$0xff]  ;;  %v2381_v57 = vrot.slane %v8248_v8, 1 }
 0x2f6   : > { %v8216_v60 = vpop.permute.xlu0 %5033  ;;  %v8218_v44 = vpop.permute.xlu1 %5063  ;;  %v3429_v15 = vsel %vm3428_vm0, %v3396_v28, %v4970_v17  ;;  %v3430_v42 = vsel %vm3428_vm0, %v3397_v30, %v4971_v63  ;;  %v4966_v63 = vunpack.i.h.bf16 %v8088_v29  ;;  %v4965_v17 = vunpack.i.l.bf16 %v8088_v29 }
 0x2f7   : > { %v3462_v35 = vsel %vm3461_vm1, %v3429_v15, %v5000_v61  ;;  %v3463_v55 = vsel %vm3461_vm1, %v3430_v42, %v5001_v18  ;;  %v2465_v28 = vsel %vm621_vm3, %v2463_v49, %v2464_v24  ;;  %v2467_v30 = vsel %vm621_vm3, %v2464_v24, %v2466_v25 }
 0x2f8   : > { %5333 = vrot.lane.b32.xlu0 %v8181_v53, %s5725_s19  ;;  %5343 = vrot.lane.b32.xlu1 %v8189_v7, %s5725_s19  ;;  %v3495_v1 = vsel %vm3494_vm5, %v3462_v35, %v5005_v32  ;;  %v3496_v47 = vsel %vm3494_vm5, %v3463_v55, %v5006_v6  ;;  %v3333_v50 = vsel %vm1660_vm9, %v3301_v23, %v4965_v17  ;;  %v2378_v29 = vrot.slane %v8265_v21, 1  ;;  %v8302_v55 = vld [vmem:[#allocation3 + $0x170] sm:$0xff] }
 0x2f9   : > { %v3527_v37 = vpack.c.bf16 %v3496_v47, %v3495_v1  ;;  %v3334_v18 = vsel %vm1660_vm9, %v3302_v45, %v4966_v63  ;;  %v4991_v61 = vunpack.i.h.bf16 %v8095_v41  ;;  %v4990_v15 = vunpack.i.l.bf16 %v8095_v41 }
 0x2fa   : > { %v8238_v12 = vpop.permute.xlu0 %5038  ;;  %v8240_v0 = vpop.permute.xlu1 %5078  ;;  %v8290_v42 = vpack.i.bf16 %v2467_v30, %v2465_v28  ;;  %v2380_v6 = vsel %vm540_vm2, %v2378_v29, %v2379_v31  ;;  %v2382_v32 = vsel %vm540_vm2, %v2379_v31, %v2381_v57  ;;  %v5045_v35 = vunpack.i.l.bf16 %v8173_v46 }
 0x2fb   : > { %4225 = vmatprep.mubr.msk.bf16.mxu1 %vm3570_vm6, %v3527_v37  ;;  %v3365_v58 = vsel %vm1726_vm11, %v3333_v50, %v4990_v15  ;;  %v3366_v41 = vsel %vm1726_vm11, %v3334_v18, %v4991_v61  ;;  %v4995_v1 = vunpack.i.l.bf16 %v8103_v11  ;;  %v8310_v24 = vpack.i.bf16 %v2382_v32, %v2380_v6  ;;  %v8317_v11 = vld [vmem:[#allocation3 + $0x168] sm:$0xff] }
 0x2fc   : > { %5338 = vrot.lane.b32.xlu0 %v8242_v52, %s5727_s21  ;;  %5348 = vrot.lane.b32.xlu1 %v8250_v56, %s5727_s21  ;;  %v2458_v25 = vrot.slane %v8265_v21, 2  ;;  %v3399_v8 = vsel %vm3395_vm15, %v3366_v41, %v4996_v36  ;;  %v2389_v40 = vrot.slane %v8302_v55, 1  ;;  %v2391_v49 = vrot.slane %v2247_v51, 1 }
 0x2fd   : > { %v3398_v46 = vsel %vm3395_vm15, %v3365_v58, %v4995_v1  ;;  %v3432_v23 = vsel %vm3428_vm0, %v3399_v8, %v5046_v20  ;;  %v2462_v30 = vsel %vm621_vm3, %v2459_v59, %v2461_v13  ;;  %v2388_v29 = vrot.slane %v8317_v11, 1 }
 0x2fe   : > { %v8271_v48 = vpop.permute.xlu0 %5048  ;;  %v8273_v62 = vpop.permute.xlu1 %5083  ;;  %v3431_v45 = vsel %vm3428_vm0, %v3398_v46, %v5045_v35  ;;  %v2460_v28 = vsel %vm621_vm3, %v2458_v25, %v2459_v59  ;;  %v2392_v59 = vsel %vm540_vm2, %v2389_v40, %v2391_v49  ;;  %v2471_v13 = vrot.slane %v2247_v51, 2 }
 0x2ff   : > { %v8338_v6 = vpack.i.bf16 %v2462_v30, %v2460_v28  ;;  %v2390_v32 = vsel %vm540_vm2, %v2388_v29, %v2389_v40  ;;  %v4981_v58 = vunpack.i.h.bf16 %v8105_v27  ;;  %v4980_v41 = vunpack.i.l.bf16 %v8105_v27  ;;  %v5634_v40 = vld [vmem:[#allocation3 + $0x30] sm:$0xff] }
 0x300   : > { %5353 = vrot.lane.b32.xlu0 %v8258_v9, %s5725_s19  ;;  %5368 = vrot.lane.b32.xlu1 %v8279_v19, %s5732_s8  ;;  %v2468_v20 = vrot.slane %v8317_v11, 2  ;;  %v4986_v35 = vunpack.i.h.bf16 %v8114_v16  ;;  %v4985_v36 = vunpack.i.l.bf16 %v8114_v16  ;;  %v5036_v30 = vunpack.i.h.bf16 %v8216_v60 }
 0x301   : > { %v3271_v49 = vsel %vm1528_vm4, %v5634_v40, %v4980_v41 }
 0x302   : > { %v8292_v33 = vpop.permute.xlu0 %5053  ;;  %v5089_v38 = vpop.permute.xlu1 %5088 }
 0x303   : > { %v5091_v47 = vunpack.i.h.bf16 %v5089_v38  ;;  %v5090_v37 = vunpack.i.l.bf16 %v5089_v38 }
 0x304   : > { %5358 = vrot.lane.b32.xlu0 %v8290_v42, %s5727_s21  ;;  %5378 = vrot.lane.b32.xlu1 %v8189_v7, %s5734_s13 }
 0x305   : > { %v3465_v63 = vsel %vm3461_vm1, %v3432_v23, %v5091_v47  ;;  %v3464_v17 = vsel %vm3461_vm1, %v3431_v45, %v5090_v37  ;;  %v8354_v47 = vpack.i.bf16 %v2392_v59, %v2390_v32  ;;  %v5040_v37 = vunpack.i.l.bf16 %v8238_v12 }
 0x306   : > { %v8315_v43 = vpop.permute.xlu0 %5068  ;;  %v5094_v10 = vpop.permute.xlu1 %5093 }
 0x307   : > { %v5096_v31 = vunpack.i.h.bf16 %v5094_v10  ;;  %v5095_v57 = vunpack.i.l.bf16 %v5094_v10  ;;  %v5633_v10 = vld [vmem:[#allocation3 + $0x38] sm:$0xff]  ;;  %v5071_v32 = vunpack.i.h.bf16 %v8315_v43  ;;  %v5070_v59 = vunpack.i.l.bf16 %v8315_v43 }
 0x308   : > { %5363 = vrot.lane.b32.xlu0 %v8090_v39, %s5732_s8  ;;  %5388 = vrot.lane.b32.xlu1 %v8310_v24, %s5725_s19  ;;  %v2469_v39 = vrot.slane %v8302_v55, 2  ;;  %v3272_v16 = vsel %vm1528_vm4, %v5633_v10, %v4981_v58 }
 0x309   : > { %v3497_v50 = vsel %vm3494_vm5, %v3464_v17, %v5095_v57  ;;  %v3498_v18 = vsel %vm3494_vm5, %v3465_v63, %v5096_v31  ;;  %v3304_v23 = vsel %vm1594_vm7, %v3272_v16, %v4986_v35  ;;  %v5081_v35 = vunpack.i.h.bf16 %v8240_v0  ;;  %v5636_v16 = vld [vmem:[#allocation3 + $0x48] sm:$0xff] }
 0x30a   : > { %v8333_v61 = vpop.permute.xlu0 %5073  ;;  %v8335_v15 = vpop.permute.xlu1 %5108  ;;  %v3528_v38 = vpack.c.bf16 %v3498_v18, %v3497_v50  ;;  %v2470_v27 = vsel %vm621_vm3, %v2468_v20, %v2469_v39  ;;  %v2472_v25 = vsel %vm621_vm3, %v2469_v39, %v2471_v13  ;;  %v5035_v50 = vunpack.i.l.bf16 %v8216_v60 }
 0x30b   : > { %v8370_v57 = vpack.i.bf16 %v2472_v25, %v2470_v27  ;;  %v5075_v20 = vunpack.i.l.bf16 %v8333_v61 }
 0x30c   : > { %4226 = vmatmul.mubr.msk.bf16.vlgmr.msra.gmra.mrb[0].mxu1 %vm3570_vm6, %v3528_v38  ;;  %5373 = vrot.lane.b32.xlu0 %v8107_v14, %s5734_s13  ;;  %v5041_v14 = vunpack.i.h.bf16 %v8238_v12  ;;  %v3303_v12 = vsel %vm1594_vm7, %v3271_v49, %v4985_v36  ;;  %v5080_v36 = vunpack.i.l.bf16 %v8240_v0 }
 0x30d   : > { %5393 = vrot.lane.b32.xlu1 %v8338_v6, %s5727_s21  ;;  %v3335_v63 = vsel %vm1660_vm9, %v3303_v12, %v5040_v37  ;;  %v5085_v37 = vunpack.i.l.bf16 %v8273_v62  ;;  %v5031_v12 = vunpack.i.h.bf16 %v8160_v4 }
 0x30e   : > { %v5099_v1 = vpop.permute.xlu0 %5098  ;;  %v8352_v51 = vpop.permute.xlu1 %5123 }
 0x30f   : > { %v5101_v46 = vunpack.i.h.bf16 %v5099_v1  ;;  %v5100_v8 = vunpack.i.l.bf16 %v5099_v1 }
 0x310   : > { %5383 = vrot.lane.b32.xlu0 %v8118_v26, %s5735_s16  ;;  %v3336_v26 = vsel %vm1660_vm9, %v3304_v23, %v5041_v14  ;;  %v5086_v14 = vunpack.i.h.bf16 %v8273_v62  ;;  %v3273_v62 = vsel %vm1528_vm4, %v5636_v16, %v5080_v36 }
 0x311   : > { %5398 = vrot.lane.b32.xlu1 %v8354_v47, %s5725_s19  ;;  %v3368_v18 = vsel %vm1726_vm11, %v3336_v26, %v5101_v46  ;;  %v3367_v29 = vsel %vm1726_vm11, %v3335_v63, %v5100_v8  ;;  %v5417_v46 = vpack.i.bf16 %v8127_v3, %v8143_v2  ;;  %v5635_v8 = vld [vmem:[#allocation3 + $0x50] sm:$0xff]  ;;  %v3305_v40 = vsel %vm1594_vm7, %v3273_v62, %v5085_v37 }
 0x312   : > { %v5104_v45 = vpop.permute.xlu0 %5103  ;;  %v8368_v31 = vpop.permute.xlu1 %5138  ;;  %v3274_v10 = vsel %vm1528_vm4, %v5635_v8, %v5081_v35  ;;  %v5030_v3 = vunpack.i.l.bf16 %v8160_v4  ;;  %v5060_v63 = vunpack.i.l.bf16 %v8196_v54  ;;  %v5051_v37 = vunpack.i.h.bf16 %v8271_v48 }
 0x313   : > { %v5106_v17 = vunpack.i.h.bf16 %v5104_v45  ;;  %v5105_v28 = vunpack.i.l.bf16 %v5104_v45  ;;  %v3306_v49 = vsel %vm1594_vm7, %v3274_v10, %v5086_v14 }
 0x314   : > { %5413 = vrot.lane.b32.xlu0 %v8279_v19, %s5729_s23  ;;  %v5076_v19 = vunpack.i.h.bf16 %v8333_v61  ;;  %v3337_v45 = vsel %vm1660_vm9, %v3305_v40, %v5030_v3  ;;  %v3338_v26 = vsel %vm1660_vm9, %v3306_v49, %v5031_v12  ;;  %v5638_v49 = vld [vmem:[#allocation3 + $0x60] sm:$0xff] }
 0x315   : > { %v3400_v38 = vsel %vm3395_vm15, %v3367_v29, %v5105_v28  ;;  %v3401_v39 = vsel %vm3395_vm15, %v3368_v18, %v5106_v17  ;;  %5403 = vrot.lane.b32.xlu1 %v8370_v57, %s5727_s21  ;;  %v3369_v28 = vsel %vm1726_vm11, %v3337_v45, %v5060_v63  ;;  %v5125_v18 = vunpack.i.l.bf16 %v8352_v51  ;;  %s269_s21 = sand.u32 1, %s5713_s25  }
 0x316   : > { %v3433_v60 = vsel %vm3428_vm0, %v3400_v38, %v5035_v50  ;;  %v3434_v13 = vsel %vm3428_vm0, %v3401_v39, %v5036_v30  ;;  %v8388_v58 = vpop.permute.xlu0 %5113  ;;  %v8390_v41 = vpop.permute.xlu1 %5143  ;;  %v5126_v50 = vunpack.i.h.bf16 %v8352_v51  ;;  %v5066_v29 = vunpack.i.h.bf16 %v8218_v44  ;;  %s9029_s28 = scalar_lea.sflag [#allocation5], %s269_s21 }
 0x317   : > { %v3466_v43 = vsel %vm3461_vm1, %v3433_v60, %v5070_v59  ;;  %v3467_v1 = vsel %vm3461_vm1, %v3434_v13, %v5071_v32  ;;  %v5065_v38 = vunpack.i.l.bf16 %v8218_v44  ;;  %v5447_v51 = vpack.i.bf16 %v8246_v22, %v8265_v21 }
 0x318   : > { %5423 = vrot.lane.b32.xlu0 %v8189_v7, %s5731_s17  ;;  %v3499_v61 = vsel %vm3494_vm5, %v3466_v43, %v5075_v20  ;;  %v3500_v27 = vsel %vm3494_vm5, %v3467_v1, %v5076_v19 }
 0x319   : > { %5408 = vrot.lane.b32.xlu1 %v8250_v56, %s5735_s16  ;;  %v3529_v7 = vpack.c.bf16 %v3500_v27, %v3499_v61  ;;  %v3402_v32 = vsel %vm3395_vm15, %v3369_v28, %v5065_v38  ;;  %v5050_v61 = vunpack.i.l.bf16 %v8271_v48  ;;  %v5055_v27 = vunpack.i.l.bf16 %v8292_v33  ;;  %v5637_v48 = vld [vmem:[#allocation3 + $0x68] sm:$0xff] }
 0x31a   : > { %v8406_v25 = vpop.permute.xlu0 %5118  ;;  %v8408_v0 = vpop.permute.xlu1 %5158  ;;  %v3435_v19 = vsel %vm3428_vm0, %v3402_v32, %v5125_v18  ;;  %v3276_v40 = vsel %vm1528_vm4, %v5637_v48, %v5051_v37  ;;  %v5116_v28 = vunpack.i.h.bf16 %v8388_v58  ;;  %v5140_v48 = vunpack.i.l.bf16 %v8368_v31 }
 0x31b   : > { %4229 = vmatprep.mubr.msk.bf16.mxu1 %vm3570_vm6, %v3529_v7  ;;  %v5121_v8 = vunpack.i.h.bf16 %v8406_v25  ;;  %v5120_v10 = vunpack.i.l.bf16 %v8406_v25  ;;  %v3275_v12 = vsel %vm1528_vm4, %v5638_v49, %v5050_v61  ;;  %v2249_v49 = vld [vmem:[#allocation3 + $0x188] sm:$0xff] }
 0x31c   : > { %5433 = vrot.lane.b32.xlu0 %v8250_v56, %s5733_s9  ;;  %v5061_v56 = vunpack.i.h.bf16 %v8196_v54 }
 0x31d   : > { %5418 = vrot.lane.b32.xlu1 %v5417_v46, %s5729_s23 }
 0x31e   : > { %v8422_v2 = vpop.permute.xlu0 %5128  ;;  %v8424_v23 = vpop.permute.xlu1 %5163  ;;  %v3370_v30 = vsel %vm1726_vm11, %v3338_v26, %v5061_v56  ;;  %v5477_v26 = vpack.i.bf16 %v8183_v5, %v8177_v34 }
 0x31f   : > { %v3403_v59 = vsel %vm3395_vm15, %v3370_v30, %v5066_v29  ;;  %v5115_v30 = vunpack.i.l.bf16 %v8388_v58 }
 0x320   : > { %5443 = vrot.lane.b32.xlu0 %v5417_v46, %s5732_s8  ;;  %v3436_v44 = vsel %vm3428_vm0, %v3403_v59, %v5126_v50 }
 0x321   : > { %5428 = vrot.lane.b32.xlu1 %v8181_v53, %s5731_s17 }
 0x322   : > { %v8433_v17 = vpop.permute.xlu0 %5133  ;;  %v5169_v4 = vpop.permute.xlu1 %5168 }
 0x323   : > { %v5171_v39 = vunpack.i.h.bf16 %v5169_v4  ;;  %v5170_v54 = vunpack.i.l.bf16 %v5169_v4 }
 0x324   : > { %5453 = vrot.lane.b32.xlu0 %v8181_v53, %s5734_s13 }
 0x325   : > { %5438 = vrot.lane.b32.xlu1 %v8242_v52, %s5733_s9  ;;  %v3469_v53 = vsel %vm3461_vm1, %v3436_v44, %v5171_v39  ;;  %v3468_v36 = vsel %vm3461_vm1, %v3435_v19, %v5170_v54  ;;  %v5166_v19 = vunpack.i.h.bf16 %v8424_v23 }
 0x326   : > { %v8447_v60 = vpop.permute.xlu0 %5148  ;;  %v5174_v13 = vpop.permute.xlu1 %5173 }
 0x327   : > { %v5176_v20 = vunpack.i.h.bf16 %v5174_v13  ;;  %v5175_v35 = vunpack.i.l.bf16 %v5174_v13  ;;  %v5151_v5 = vunpack.i.h.bf16 %v8447_v60  ;;  %v5150_v38 = vunpack.i.l.bf16 %v8447_v60 }
 0x328   : > { %5463 = vrot.lane.b32.xlu0 %v8242_v52, %s5735_s16  ;;  %v5056_v52 = vunpack.i.h.bf16 %v8292_v33  ;;  %v3307_v33 = vsel %vm1594_vm7, %v3275_v12, %v5055_v27  ;;  %v5161_v13 = vunpack.i.h.bf16 %v8408_v0  ;;  %v5110_v27 = vunpack.i.l.bf16 %v8335_v15 }
 0x329   : > { %v3501_v43 = vsel %vm3494_vm5, %v3468_v36, %v5175_v35  ;;  %v3502_v1 = vsel %vm3494_vm5, %v3469_v53, %v5176_v20  ;;  %5448 = vrot.lane.b32.xlu1 %v5447_v51, %s5732_s8  ;;  %v3339_v56 = vsel %vm1660_vm9, %v3307_v33, %v5120_v10  ;;  %v5165_v20 = vunpack.i.l.bf16 %v8424_v23 }
 0x32a   : > { %v3530_v22 = vpack.c.bf16 %v3502_v1, %v3501_v43  ;;  %v5154_v21 = vpop.permute.xlu0 %5153  ;;  %v8460_v14 = vpop.permute.xlu1 %5188  ;;  %v3308_v3 = vsel %vm1594_vm7, %v3276_v40, %v5056_v52  ;;  %v5639_v1 = vld [vmem:[#allocation3 + $0x80] sm:$0xff]  ;;  %v5111_v52 = vunpack.i.h.bf16 %v8335_v15  ;;  %v5507_v10 = vpack.i.bf16 %v8302_v55, %v8317_v11 }
 0x32b   : > { %v5156_v59 = vunpack.i.h.bf16 %v5154_v21 }
 0x32c   : > { %4230 = vmatmul.mubr.msk.bf16.gmra.mrb[4].mxu1 %vm3570_vm6, %v3530_v22  ;;  %5473 = vrot.lane.b32.xlu0 %v5447_v51, %s5729_s23  ;;  %v5160_v51 = vunpack.i.l.bf16 %v8408_v0  ;;  %v3278_v22 = vsel %vm1528_vm4, %v5639_v1, %v5161_v13 }
 0x32d   : > { %5458 = vrot.lane.b32.xlu1 %v8310_v24, %s5734_s13  ;;  %v3310_v61 = vsel %vm1594_vm7, %v3278_v22, %v5166_v19 }
 0x32e   : > { %v5179_v7 = vpop.permute.xlu0 %5178  ;;  %v8470_v46 = vpop.permute.xlu1 %5203 }
 0x32f   : > { %v5181_v16 = vunpack.i.h.bf16 %v5179_v7  ;;  %v5180_v62 = vunpack.i.l.bf16 %v5179_v7 }
 0x330   : > { %5483 = vrot.lane.b32.xlu0 %v8310_v24, %s5731_s17  ;;  %v3340_v24 = vsel %vm1660_vm9, %v3308_v3, %v5121_v8  ;;  %v5206_v3 = vunpack.i.h.bf16 %v8470_v46 }
 0x331   : > { %5468 = vrot.lane.b32.xlu1 %v8338_v6, %s5735_s16  ;;  %v3372_v50 = vsel %vm1726_vm11, %v3340_v24, %v5181_v16  ;;  %v3371_v18 = vsel %vm1726_vm11, %v3339_v56, %v5180_v62  ;;  %v3342_v16 = vsel %vm1660_vm9, %v3310_v61, %v5111_v52  ;;  %v5141_v62 = vunpack.i.h.bf16 %v8368_v31  ;;  %v2250_v56 = vld [vmem:[#allocation3 + $0x190] sm:$0x3] }
 0x332   : > { %v5184_v45 = vpop.permute.xlu0 %5183  ;;  %v8482_v25 = vpop.permute.xlu1 %5218  ;;  %v2484_v13 = vrot.slane %v2250_v56, 2 }
 0x333   : > { %v5186_v63 = vunpack.i.h.bf16 %v5184_v45  ;;  %v5185_v4 = vunpack.i.l.bf16 %v5184_v45  ;;  %v3374_v33 = vsel %vm1726_vm11, %v3342_v16, %v5141_v62  ;;  %v5205_v45 = vunpack.i.l.bf16 %v8470_v46 }
 0x334   : > { %5493 = vrot.lane.b32.xlu0 %v8338_v6, %s5733_s9  ;;  %v5155_v6 = vunpack.i.l.bf16 %v5154_v21  ;;  %v5640_v21 = vld [vmem:[#allocation3 + $0x78] sm:$0xff] }
 0x335   : > { %v3404_v29 = vsel %vm3395_vm15, %v3371_v18, %v5185_v4  ;;  %v3405_v34 = vsel %vm3395_vm15, %v3372_v50, %v5186_v63  ;;  %5478 = vrot.lane.b32.xlu1 %v5477_v26, %s5729_s23  ;;  %v3277_v37 = vsel %vm1528_vm4, %v5640_v21, %v5160_v51  ;;  %v2477_v63 = vrot.slane %v2249_v49, 1 }
 0x336   : > { %v3437_v39 = vsel %vm3428_vm0, %v3404_v29, %v5115_v30  ;;  %v3438_v58 = vsel %vm3428_vm0, %v3405_v34, %v5116_v28  ;;  %v8501_v54 = vpop.permute.xlu0 %5193  ;;  %v8503_v32 = vpop.permute.xlu1 %5223  ;;  %v3309_v23 = vsel %vm1594_vm7, %v3277_v37, %v5165_v20  ;;  %v2248_v34 = vld [vmem:[#allocation3 + $0x180] sm:$0xff]  ;;  %v5131_v37 = vunpack.i.h.bf16 %v8422_v2 }
 0x337   : > { %v3470_v44 = vsel %vm3461_vm1, %v3437_v39, %v5150_v38  ;;  %v3471_v60 = vsel %vm3461_vm1, %v3438_v58, %v5151_v5  ;;  %v2479_v39 = vrot.slane %v2250_v56, 1  ;;  %v2482_v58 = vrot.slane %v2249_v49, 2 }
 0x338   : > { %5503 = vrot.lane.b32.xlu0 %v5477_v26, %s5732_s8  ;;  %v3503_v35 = vsel %vm3494_vm5, %v3470_v44, %v5155_v6  ;;  %v3504_v53 = vsel %vm3494_vm5, %v3471_v60, %v5156_v59  ;;  %v5145_v26 = vunpack.i.l.bf16 %v8390_v41  ;;  %v2476_v19 = vrot.slane %v2248_v34, 1 }
 0x339   : > { %5488 = vrot.lane.b32.xlu1 %v8258_v9, %s5731_s17  ;;  %v3531_v43 = vpack.c.bf16 %v3504_v53, %v3503_v35  ;;  %v2481_v20 = vrot.slane %v2248_v34, 2  ;;  %v8573_v35 = vld [vmem:[#allocation3 + $0x1a0] sm:$0xff]  ;;  %v8575_v53 = vld [vmem:[#allocation3 + $0x198] sm:$0xff]  ;;  %v2480_v22 = vsel %vm540_vm2, %v2477_v63, %v2479_v39  ;;  %v2485_v61 = vsel %vm621_vm3, %v2482_v58, %v2484_v13 }
 0x33a   : > { %v8516_v36 = vpop.permute.xlu0 %5198  ;;  %v8518_v0 = vpop.permute.xlu1 %5238  ;;  %v2478_v1 = vsel %vm540_vm2, %v2476_v19, %v2477_v63  ;;  %v2490_v52 = vrot.slane %v8573_v35, 1  ;;  %v2489_v16 = vrot.slane %v8575_v53, 1 }
 0x33b   : > { %4233 = vmatprep.mubr.msk.bf16.mxu1 %vm3570_vm6, %v3531_v43  ;;  %v8577_v43 = vld [vmem:[#allocation3 + $0x1a8] sm:$0x3]  ;;  %v2483_v21 = vsel %vm621_vm3, %v2481_v20, %v2482_v58 }
 0x33c   : > { %5513 = vrot.lane.b32.xlu0 %v8258_v9, %s5734_s13  ;;  %v3341_v9 = vsel %vm1660_vm9, %v3309_v23, %v5110_v27  ;;  %v5130_v23 = vunpack.i.l.bf16 %v8422_v2  ;;  %v5136_v27 = vunpack.i.h.bf16 %v8433_v17  ;;  %v2492_v62 = vrot.slane %v8577_v43, 1 }
 0x33d   : > { %5498 = vrot.lane.b32.xlu1 %v8290_v42, %s5733_s9  ;;  %v3373_v12 = vsel %vm1726_vm11, %v3341_v9, %v5140_v48  ;;  %v5201_v48 = vunpack.i.h.bf16 %v8516_v36  ;;  %v5200_v2 = vunpack.i.l.bf16 %v8516_v36 }
 0x33e   : > { %v8531_v7 = vpop.permute.xlu0 %5208  ;;  %v8533_v8 = vpop.permute.xlu1 %5243  ;;  %v3406_v4 = vsel %vm3395_vm15, %v3373_v12, %v5145_v26  ;;  %v2495_v26 = vrot.slane %v8573_v35, 2 }
 0x340   : > { %5523 = vrot.lane.b32.xlu0 %v8290_v42, %s5735_s16  ;;  %v5146_v42 = vunpack.i.h.bf16 %v8390_v41  ;;  %v3439_v41 = vsel %vm3428_vm0, %v3406_v4, %v5205_v45  ;;  %v5642_v45 = vld [vmem:[#allocation3 + $0x90] sm:$0xff]  ;;  %v2491_v4 = vsel %vm540_vm2, %v2489_v16, %v2490_v52 }
 0x341   : > { %5508 = vrot.lane.b32.xlu1 %v5507_v10, %s5732_s8  ;;  %v5643_v16 = vld [vmem:[#allocation3 + $0xb0] sm:$0xff] }
 0x342   : > { %v8544_v15 = vpop.permute.xlu0 %5213  ;;  %v5249_v40 = vpop.permute.xlu1 %5248  ;;  %v3407_v28 = vsel %vm3395_vm15, %v3374_v33, %v5146_v42  ;;  %v5557_v33 = vpack.i.bf16 %v2485_v61, %v2483_v21  ;;  %v3279_v42 = vsel %vm1528_vm4, %v5642_v45, %v5130_v23  ;;  %v5245_v23 = vunpack.i.l.bf16 %v8533_v8 }
 0x343   : > { %v5251_v24 = vunpack.i.h.bf16 %v5249_v40  ;;  %v5250_v31 = vunpack.i.l.bf16 %v5249_v40  ;;  %v3440_v50 = vsel %vm3428_vm0, %v3407_v28, %v5206_v3  ;;  %v5547_v40 = vpack.i.bf16 %v2480_v22, %v2478_v1  ;;  %v5641_v3 = vld [vmem:[#allocation3 + $0x98] sm:$0xff] }
 0x344   : > { %5533 = vrot.lane.b32.xlu0 %v5507_v10, %s5729_s23  ;;  %v2493_v28 = vsel %vm540_vm2, %v2490_v52, %v2492_v62 }
 0x345   : > { %5518 = vrot.lane.b32.xlu1 %v8354_v47, %s5734_s13  ;;  %v3473_v5 = vsel %vm3461_vm1, %v3440_v50, %v5251_v24  ;;  %v3472_v38 = vsel %vm3461_vm1, %v3439_v41, %v5250_v31  ;;  %v5567_v24 = vpack.i.bf16 %v8573_v35, %v8575_v53  ;;  %v5577_v22 = vpack.i.bf16 %v2493_v28, %v2491_v4 }
 0x346   : > { %v8557_v30 = vpop.permute.xlu0 %5228  ;;  %v5254_v46 = vpop.permute.xlu1 %5253 }
 0x347   : > { %v5256_v18 = vunpack.i.h.bf16 %v5254_v46  ;;  %v5255_v29 = vunpack.i.l.bf16 %v5254_v46  ;;  %v5231_v13 = vunpack.i.h.bf16 %v8557_v30 }
 0x348   : > { %5543 = vrot.lane.b32.xlu0 %v8354_v47, %s5731_s17  ;;  %v5537_v47 = vpack.i.bf16 %v2249_v49, %v2248_v34  ;;  %v5195_v34 = vunpack.i.l.bf16 %v8501_v54 }
 0x349   : > { %v3505_v59 = vsel %vm3494_vm5, %v3472_v38, %v5255_v29  ;;  %v3506_v6 = vsel %vm3494_vm5, %v3473_v5, %v5256_v18  ;;  %5528 = vrot.lane.b32.xlu1 %v8370_v57, %s5735_s16  ;;  %v5196_v29 = vunpack.i.h.bf16 %v8501_v54  ;;  %v5230_v54 = vunpack.i.l.bf16 %v8557_v30 }
 0x34a   : > { %v3532_v51 = vpack.c.bf16 %v3506_v6, %v3505_v59  ;;  %v8569_v44 = vpop.permute.xlu0 %5233  ;;  %v8571_v60 = vpop.permute.xlu1 %5268  ;;  %v2494_v59 = vrot.slane %v8575_v53, 2  ;;  %v2497_v6 = vrot.slane %v8577_v43, 2  ;;  %v5241_v53 = vunpack.i.h.bf16 %v8518_v0 }
 0x34b   : > { %v5235_v1 = vunpack.i.l.bf16 %v8569_v44  ;;  %v5240_v43 = vunpack.i.l.bf16 %v8518_v0 }
 0x34c   : > { %4234 = vmatmul.mubr.msk.bf16.gmra.mrb[8].mxu1 %vm3570_vm6, %v3532_v51  ;;  %5553 = vrot.lane.b32.xlu0 %v8370_v57, %s5733_s9  ;;  %v5135_v57 = vunpack.i.l.bf16 %v8433_v17  ;;  %v3280_v17 = vsel %vm1528_vm4, %v5641_v3, %v5131_v37  ;;  %v5246_v37 = vunpack.i.h.bf16 %v8533_v8  ;;  %v3282_v62 = vsel %vm1528_vm4, %v5643_v16, %v5241_v53  ;;  %v5645_v16 = vld [vmem:[#allocation3 + $0x158] sm:$0xff] }
 0x34d   : > { %5538 = vrot.lane.b32.xlu1 %v5537_v47, %s5729_s23  ;;  %v3312_v31 = vsel %vm1594_vm7, %v3280_v17, %v5136_v27  ;;  %s5736_s23 = smov [#allocation4]  }
 0x34e   : > { %v5259_v10 = vpop.permute.xlu0 %5258  ;;  %v8592_v9 = vpop.permute.xlu1 %5278  ;;  %v3311_v36 = vsel %vm1594_vm7, %v3279_v42, %v5135_v57  ;;  %v3344_v46 = vsel %vm1660_vm9, %v3312_v31, %v5201_v48  ;;  %v2496_v57 = vsel %vm621_vm3, %v2494_v59, %v2495_v26  ;;  %v5644_v48 = vld [vmem:[#allocation3 + $0xa8] sm:$0xff] }
 0x34f   : > { %v5261_v49 = vunpack.i.h.bf16 %v5259_v10  ;;  %v5260_v12 = vunpack.i.l.bf16 %v5259_v10  ;;  %v3343_v50 = vsel %vm1660_vm9, %v3311_v36, %v5200_v2  ;;  %v2498_v10 = vsel %vm621_vm3, %v2495_v26, %v2497_v6 }
 0x350   : > { %5563 = vrot.lane.b32.xlu0 %v5537_v47, %s5732_s8  ;;  %v5236_v47 = vunpack.i.h.bf16 %v8569_v44  ;;  %v3281_v8 = vsel %vm1528_vm4, %v5644_v48, %v5240_v43  ;;  %v5221_v26 = vunpack.i.h.bf16 %v8482_v25  ;;  %v5281_v4 = vunpack.i.h.bf16 %v8592_v9  ;;  %v5646_v48 = vld [vmem:[#allocation3 + $0x150] sm:$0xff] }
 0x351   : > { %5548 = vrot.lane.b32.xlu1 %v5547_v40, %s5731_s17  ;;  %v3376_v5 = vsel %vm1726_vm11, %v3344_v46, %v5261_v49  ;;  %v3375_v38 = vsel %vm1726_vm11, %v3343_v50, %v5260_v12  ;;  %v3313_v2 = vsel %vm1594_vm7, %v3281_v8, %v5245_v23  ;;  %v5587_v49 = vpack.i.bf16 %v2498_v10, %v2496_v57  ;;  %s5663_s17 = sshll.u32 %s5736_s23, 4  ;;  %s5664_s17 = int_to_ptr.vmem [resolvable:$false] %s5663_s17 }
 0x352   : > { %v5264_v56 = vpop.permute.xlu0 %5263  ;;  %v8607_v63 = vpop.permute.xlu1 %5293  ;;  %v5191_v12 = vunpack.i.h.bf16 %v8460_v14  ;;  %v5280_v28 = vunpack.i.l.bf16 %v8592_v9  ;;  %v5226_v46 = vunpack.i.h.bf16 %v8503_v32  ;;  %v5225_v50 = vunpack.i.l.bf16 %v8503_v32 }
 0x353   : > { %v5266_v41 = vunpack.i.h.bf16 %v5264_v56  ;;  %v5265_v18 = vunpack.i.l.bf16 %v5264_v56  ;;  %v5210_v23 = vunpack.i.l.bf16 %v8531_v7  ;;  %v5216_v57 = vunpack.i.h.bf16 %v8544_v15 }
 0x354   : > { %5573 = vrot.lane.b32.xlu0 %v5547_v40, %s5734_s13  ;;  %v3314_v40 = vsel %vm1594_vm7, %v3282_v62, %v5246_v37  ;;  %v5211_v37 = vunpack.i.h.bf16 %v8531_v7  ;;  %v5215_v10 = vunpack.i.l.bf16 %v8544_v15 }
 0x355   : > { %v3408_v39 = vsel %vm3395_vm15, %v3375_v38, %v5265_v18  ;;  %v3409_v58 = vsel %vm3395_vm15, %v3376_v5, %v5266_v41  ;;  %5558 = vrot.lane.b32.xlu1 %v5557_v33, %s5733_s9  ;;  %v3346_v42 = vsel %vm1660_vm9, %v3314_v40, %v5191_v12 }
 0x356   : > { %v3441_v51 = vsel %vm3428_vm0, %v3408_v39, %v5195_v34  ;;  %v3442_v19 = vsel %vm3428_vm0, %v3409_v58, %v5196_v29  ;;  %v8627_v20 = vpop.permute.xlu1 %5298  ;;  %v8629_v35 = vpop.permute.xlu0 %5273 }
 0x357   : > { %v3474_v30 = vsel %vm3461_vm1, %v3441_v51, %v5230_v54  ;;  %v3475_v21 = vsel %vm3461_vm1, %v3442_v19, %v5231_v13  ;;  %v5276_v15 = vunpack.i.h.bf16 %v8629_v35 }
 0x358   : > { %5583 = vrot.lane.b32.xlu0 %v5557_v33, %s5735_s16  ;;  %v3507_v61 = vsel %vm3494_vm5, %v3474_v30, %v5235_v1  ;;  %v3508_v44 = vsel %vm3494_vm5, %v3475_v21, %v5236_v47  ;;  %v5190_v33 = vunpack.i.l.bf16 %v8460_v14  ;;  %v3378_v14 = vsel %vm1726_vm11, %v3346_v42, %v5221_v26 }
 0x359   : > { %5568 = vrot.lane.b32.xlu1 %v5567_v24, %s5732_s8  ;;  %v3533_v0 = vpack.c.bf16 %v3508_v44, %v3507_v61  ;;  %v5220_v24 = vunpack.i.l.bf16 %v8482_v25  ;;  %v3411_v29 = vsel %vm3395_vm15, %v3378_v14, %v5226_v46  ;;  %v5275_v42 = vunpack.i.l.bf16 %v8629_v35  ;;  %s5665_s8 = scalar_lea.vmem %s5664_s17, 8192 }
 0x35a   : > { %v8643_v52 = vpop.permute.xlu0 %5283  ;;  %v8645_v27 = vpop.permute.xlu1 %5303  ;;  %v3345_v45 = vsel %vm1660_vm9, %v3313_v2, %v5190_v33  ;;  %v3444_v38 = vsel %vm3428_vm0, %v3411_v29, %v5281_v4  ;;  %v5648_v33 = vld [vmem:[#allocation3 + $0xc0] sm:$0xff]  ;;  %v5271_v35 = vunpack.i.h.bf16 %v8571_v60 }
 0x35b   : > { %4237 = vmatprep.mubr.msk.bf16.mxu1 %vm3570_vm6, %v3533_v0  ;;  %v3377_v56 = vsel %vm1726_vm11, %v3345_v45, %v5220_v24  ;;  %v3283_v45 = vsel %vm1528_vm4, %v5648_v33, %v5210_v23  ;;  %v5305_v14 = vunpack.i.l.bf16 %v8645_v27 }
 0x35c   : > { %v3410_v25 = vsel %vm3395_vm15, %v3377_v56, %v5225_v50  ;;  %v3315_v24 = vsel %vm1594_vm7, %v3283_v45, %v5215_v10  ;;  %v5306_v56 = vunpack.i.h.bf16 %v8645_v27 }
 0x35d   : > { %5578 = vrot.lane.b32.xlu1 %v5577_v22, %s5734_s13  ;;  %v3443_v39 = vsel %vm3428_vm0, %v3410_v25, %v5280_v28  ;;  %v3347_v27 = vsel %vm1660_vm9, %v3315_v24, %v5275_v42  ;;  %v5300_v42 = vunpack.i.l.bf16 %v8627_v20  ;;  %s4004_s13 = sshll.u32 %s269_s21, 8 }
 0x35e   : > { %v8657_v3 = vpop.permute.xlu0 %5288  ;;  %v8659_v17 = vpop.permute.xlu1 %5308 }
 0x35f   : > { %v5311_v4 = vunpack.i.h.bf16 %v8659_v17  ;;  %v5310_v28 = vunpack.i.l.bf16 %v8659_v17 }
 0x361   : > { %5588 = vrot.lane.b32.xlu1 %v5587_v49, %s5735_s16  ;;  %v5647_v49 = vld [vmem:[#allocation3 + $0xc8] sm:$0xff]  ;;  %s8928_s16 = scalar_lea.vmem [#allocation4], %s4004_s13 }
 0x362   : > { %v8666_v36 = vpop.permute.xlu0 %5323  ;;  %v5314_v31 = vpop.permute.xlu1 %5313  ;;  %v3284_v12 = vsel %vm1528_vm4, %v5647_v49, %v5211_v37  ;;  %s3938_s29 = sshll.u32 %s8928_s16, 4  ;;  %s9023_s29 = int_to_ptr.vmem [resolvable:$true] %s3938_s29 }
 0x363   : > { %v5316_v41 = vunpack.i.h.bf16 %v5314_v31  ;;  %v5315_v18 = vunpack.i.l.bf16 %v5314_v31  ;;  %v3316_v31 = vsel %vm1594_vm7, %v3284_v12, %v5216_v57  ;;  %v5326_v46 = vunpack.i.h.bf16 %v8666_v36  ;;  %s5659_s20 = scalar_lea.vmem %s9023_s29, 4096  ;;  %p5666_p0 = scmp.lt.s32.totalorder %s9023_s29, %s5664_s17 }
 0x364   : > { %v5325_v50 = vunpack.i.l.bf16 %v8666_v36  ;;  %p5660_p11 = scmp.ne.s32.totalorder %s9023_s29, %s5659_s20  ;;  %p5667_p1 = scmp.lt.s32.totalorder %s5665_s8, %s5659_s20 }
 0x365   : > { %v3477_v9 = vsel %vm3461_vm1, %v3444_v38, %v5316_v41  ;;  %v3476_v6 = vsel %vm3461_vm1, %v3443_v39, %v5315_v18  ;;  %v5270_v41 = vunpack.i.l.bf16 %v8571_v60 }
 0x366   : > { %v8676_v34 = vpop.permute.xlu0 %5328  ;;  %v5319_v5 = vpop.permute.xlu1 %5318  ;;  %p5661_p12 = pnand %p5660_p11, %p5816_p5  ;;  %p5668_p2 = por %p5667_p1, %p5666_p0 }
 0x367   : > { %v5321_v58 = vunpack.i.h.bf16 %v5319_v5  ;;  %v5320_v59 = vunpack.i.l.bf16 %v5319_v5  ;;  %v5331_v18 = vunpack.i.h.bf16 %v8676_v34  ;;  %v5330_v25 = vunpack.i.l.bf16 %v8676_v34 }
 0x368   : > { %v3348_v5 = vsel %vm1660_vm9, %v3316_v31, %v5276_v15  ;;  %v5301_v15 = vunpack.i.h.bf16 %v8627_v20  ;;  %p5662_p13 = pneg %p5661_p12 }
 0x369   : > { %v3509_v32 = vsel %vm3494_vm5, %v3476_v6, %v5320_v59  ;;  %v3510_v13 = vsel %vm3494_vm5, %v3477_v9, %v5321_v58  ;;  %v5649_v58 = vld [vmem:[#allocation3 + $0xe0] sm:$0xff]  ;;  %v5650_v59 = vld [vmem:[#allocation3 + $0xd8] sm:$0xff] }
 0x36a   : > { %v3534_v54 = vpack.c.bf16 %v3510_v13, %v3509_v32  ;;  %v8684_v51 = vpop.permute.xlu0 %5333  ;;  %v8686_v19 = vpop.permute.xlu1 %5343  ;;  %v3286_v36 = vsel %vm1528_vm4, %v5649_v58, %v5306_v56  ;;  %v3285_v9 = vsel %vm1528_vm4, %v5650_v59, %v5305_v14  ;;  %v3380_v13 = vsel %vm1726_vm11, %v3348_v5, %v5326_v46  ;;  %p5669_p3 = pnand %p5668_p2, %p5662_p13 }
 0x36b   : > { %v3317_v32 = vsel %vm1594_vm7, %v3285_v9, %v5310_v28  ;;  %v3318_v34 = vsel %vm1594_vm7, %v3286_v36, %v5311_v4 }
 0x36c   : > { %4238 = vmatmul.mubr.msk.bf16.gmra.mrb[12].mxu1 %vm3570_vm6, %v3534_v54  ;;  %v3379_v54 = vsel %vm1726_vm11, %v3347_v27, %v5325_v50 }
 0x36e   : > { %v8689_v47 = vpop.permute.xlu0 %5338  ;;  %v8691_v1 = vpop.permute.xlu1 %5348 }
 0x372   : > { %v5354_v22 = vpop.permute.xlu0 %5353  ;;  %v8693_v53 = vpop.permute.xlu1 %5368 }
 0x373   : > { %v5356_v43 = vunpack.i.h.bf16 %v5354_v22  ;;  %v5355_v30 = vunpack.i.l.bf16 %v5354_v22  ;;  %v5296_v22 = vunpack.i.h.bf16 %v8607_v63  ;;  %v5371_v14 = vunpack.i.h.bf16 %v8693_v53 }
 0x374   : > { %v5370_v4 = vunpack.i.l.bf16 %v8693_v53 }
 0x375   : > { %v3296_v62 = vsel %vm1528_vm4, %v5645_v16, %v5356_v43  ;;  %v3295_v8 = vsel %vm1528_vm4, %v5646_v48, %v5355_v30  ;;  %v5295_v43 = vunpack.i.l.bf16 %v8607_v63  ;;  %v3412_v30 = vsel %vm3395_vm15, %v3379_v54, %v5330_v25 }
 0x376   : > { %v5359_v21 = vpop.permute.xlu0 %5358  ;;  %v8697_v61 = vpop.permute.xlu1 %5378  ;;  %v3349_v16 = vsel %vm1660_vm9, %v3317_v32, %v5270_v41  ;;  %v5286_v32 = vunpack.i.h.bf16 %v8643_v52  ;;  %v5291_v54 = vunpack.i.h.bf16 %v8657_v3 }
 0x377   : > { %v5361_v44 = vunpack.i.h.bf16 %v5359_v21  ;;  %v5360_v0 = vunpack.i.l.bf16 %v5359_v21  ;;  %v3413_v21 = vsel %vm3395_vm15, %v3380_v13, %v5331_v18  ;;  %v3381_v24 = vsel %vm1726_vm11, %v3349_v16, %v5295_v43 }
 0x378   : > { %v5381_v50 = vunpack.i.h.bf16 %v8697_v61 }
 0x379   : > { %v8704_v2 = vsel %vm1594_vm7, %v3295_v8, %v5360_v0  ;;  %v8707_v40 = vsel %vm1594_vm7, %v3296_v62, %v5361_v44  ;;  %v3350_v62 = vsel %vm1660_vm9, %v3318_v34, %v5271_v35  ;;  %v5380_v35 = vunpack.i.l.bf16 %v8697_v61 }
 0x37a   : > { %v5364_v7 = vpop.permute.xlu0 %5363  ;;  %v8713_v26 = vpop.permute.xlu1 %5388  ;;  %v3382_v31 = vsel %vm1726_vm11, %v3350_v62, %v5296_v22  ;;  %v5285_v34 = vunpack.i.l.bf16 %v8643_v52  ;;  %v5290_v22 = vunpack.i.l.bf16 %v8657_v3 }
 0x37b   : > { %v5366_v38 = vunpack.i.h.bf16 %v5364_v7  ;;  %v5365_v39 = vunpack.i.l.bf16 %v5364_v7  ;;  %v3415_v5 = vsel %vm3395_vm15, %v3382_v31, %v5301_v15  ;;  %v5345_v31 = vunpack.i.l.bf16 %v8686_v19 }
 0x37c   : > { %v3448_v61 = vsel %vm3428_vm0, %v3415_v5, %v5371_v14 }
 0x37d   : > { %v3446_v23 = vsel %vm3428_vm0, %v3413_v21, %v5366_v38  ;;  %v3445_v44 = vsel %vm3428_vm0, %v3412_v30, %v5365_v39  ;;  %v3481_v58 = vsel %vm3461_vm1, %v3448_v61, %v5381_v50 }
 0x37e   : > { %v5374_v29 = vpop.permute.xlu0 %5373 }
 0x37f   : > { %v8729_v17 = vpop.permute.xlu1 %5393  ;;  %v5376_v60 = vunpack.i.h.bf16 %v5374_v29  ;;  %v5375_v6 = vunpack.i.l.bf16 %v5374_v29  ;;  %v3414_v29 = vsel %vm3395_vm15, %v3381_v24, %v5300_v42  ;;  %v5346_v24 = vunpack.i.h.bf16 %v8686_v19 }
 0x380   : > { %v3447_v38 = vsel %vm3428_vm0, %v3414_v29, %v5370_v4 }
 0x381   : > { %v3478_v48 = vsel %vm3461_vm1, %v3445_v44, %v5375_v6  ;;  %v3479_v63 = vsel %vm3461_vm1, %v3446_v23, %v5376_v60  ;;  %v5651_v44 = vld [vmem:[#allocation3 + $0xf8] sm:$0xff] }
 0x382   : > { %v5384_v37 = vpop.permute.xlu0 %5383 }
 0x383   : > { %v5386_v0 = vunpack.i.h.bf16 %v5384_v37  ;;  %v5385_v57 = vunpack.i.l.bf16 %v5384_v37  ;;  %v5399_v10 = vpop.permute.xlu1 %5398 }
 0x384   : > { %v5401_v49 = vunpack.i.h.bf16 %v5399_v10  ;;  %v5400_v12 = vunpack.i.l.bf16 %v5399_v10 }
 0x385   : > { %v3511_v8 = vsel %vm3494_vm5, %v3478_v48, %v5385_v57  ;;  %v3512_v7 = vsel %vm3494_vm5, %v3479_v63, %v5386_v0  ;;  %v3288_v0 = vsel %vm1528_vm4, %v5651_v44, %v5286_v32  ;;  %v5652_v57 = vld [vmem:[#allocation3 + $0xf0] sm:$0xff] }
 0x386   : > { %v3535_v33 = vpack.c.bf16 %v3512_v7, %v3511_v8  ;;  %v5414_v45 = vpop.permute.xlu0 %5413  ;;  %v3298_v20 = vsel %vm1528_vm4, %v8302_v55, %v5401_v49  ;;  %v3297_v41 = vsel %vm1528_vm4, %v8317_v11, %v5400_v12  ;;  %v3480_v11 = vsel %vm3461_vm1, %v3447_v38, %v5380_v35 }
 0x387   : > { %v5404_v56 = vpop.permute.xlu1 %5403  ;;  %v5416_v30 = vunpack.i.h.bf16 %v5414_v45  ;;  %v5415_v21 = vunpack.i.l.bf16 %v5414_v45  ;;  %v3287_v10 = vsel %vm1528_vm4, %v5652_v57, %v5285_v34  ;;  %v3320_v63 = vsel %vm1594_vm7, %v3288_v0, %v5291_v54 }
 0x388   : > { %v5406_v28 = vunpack.i.h.bf16 %v5404_v56  ;;  %v5405_v46 = vunpack.i.l.bf16 %v5404_v56  ;;  %4241 = vmatprep.mubr.msk.bf16.mxu1 %vm3570_vm6, %v3535_v33  ;;  %v3319_v48 = vsel %vm1594_vm7, %v3287_v10, %v5290_v22 }
 0x389   : > { %v3352_v49 = vsel %vm1660_vm9, %v3320_v63, %v5416_v30  ;;  %v3351_v12 = vsel %vm1660_vm9, %v3319_v48, %v5415_v21 }
 0x38a   : > { %v8763_v18 = vsel %vm1594_vm7, %v3297_v41, %v5405_v46  ;;  %v8766_v25 = vsel %vm1594_vm7, %v3298_v20, %v5406_v28  ;;  %v5424_v53 = vpop.permute.xlu0 %5423  ;;  %v5351_v41 = vunpack.i.h.bf16 %v8691_v1 }
 0x38b   : > { %v5409_v27 = vpop.permute.xlu1 %5408  ;;  %v5426_v37 = vunpack.i.h.bf16 %v5424_v53  ;;  %v5425_v23 = vunpack.i.l.bf16 %v5424_v53  ;;  %v5350_v53 = vunpack.i.l.bf16 %v8691_v1 }
 0x38c   : > { %v5411_v55 = vunpack.i.h.bf16 %v5409_v27  ;;  %v5410_v39 = vunpack.i.l.bf16 %v5409_v27 }
 0x38d   : > { %v3383_v15 = vsel %vm1726_vm11, %v3351_v12, %v5425_v23  ;;  %v3384_v42 = vsel %vm1726_vm11, %v3352_v49, %v5426_v37 }
 0x38e   : > { %v3514_v36 = vsel %vm3494_vm5, %v3481_v58, %v5411_v55  ;;  %v3513_v59 = vsel %vm3494_vm5, %v3480_v11, %v5410_v39  ;;  %v5434_v9 = vpop.permute.xlu0 %5433 }
 0x38f   : > { %v3536_v60 = vpack.c.bf16 %v3514_v36, %v3513_v59  ;;  %v8776_v6 = vpop.permute.xlu1 %5418  ;;  %v5436_v16 = vunpack.i.h.bf16 %v5434_v9  ;;  %v5435_v62 = vunpack.i.l.bf16 %v5434_v9  ;;  %v5653_v36 = vld [vmem:[#allocation3 + $0x110] sm:$0xff]  ;;  %v5654_v59 = vld [vmem:[#allocation3 + $0x108] sm:$0xff] }
 0x390   : > { %v5421_v5 = vunpack.i.h.bf16 %v8776_v6  ;;  %v5420_v27 = vunpack.i.l.bf16 %v8776_v6  ;;  %v3290_v1 = vsel %vm1528_vm4, %v5653_v36, %v5346_v24  ;;  %v3289_v9 = vsel %vm1528_vm4, %v5654_v59, %v5345_v31 }
 0x391   : > { %4242 = vmatmul.mubr.msk.bf16.gmra.mrb[16].mxu1 %vm3570_vm6, %v3536_v60  ;;  %v3416_v56 = vsel %vm3395_vm15, %v3383_v15, %v5435_v62  ;;  %v3417_v14 = vsel %vm3395_vm15, %v3384_v42, %v5436_v16  ;;  %v3321_v6 = vsel %vm1594_vm7, %v3289_v9, %v5350_v53  ;;  %v5336_v15 = vunpack.i.h.bf16 %v8684_v51 }
 0x392   : > { %v5444_v13 = vpop.permute.xlu0 %5443  ;;  %v3353_v30 = vsel %vm1660_vm9, %v3321_v6, %v5420_v27  ;;  %v5335_v42 = vunpack.i.l.bf16 %v8684_v51  ;;  %v5341_v31 = vunpack.i.h.bf16 %v8689_v47  ;;  %v5391_v59 = vunpack.i.h.bf16 %v8713_v26 }
 0x393   : > { %v8783_v43 = vpop.permute.xlu1 %5428  ;;  %v5446_v3 = vunpack.i.h.bf16 %v5444_v13  ;;  %v5445_v8 = vunpack.i.l.bf16 %v5444_v13  ;;  %v3322_v13 = vsel %vm1594_vm7, %v3290_v1, %v5351_v41  ;;  %v5656_v41 = vld [vmem:[#allocation3 + $0x120] sm:$0xff]  ;;  %v5390_v9 = vunpack.i.l.bf16 %v8713_v26 }
 0x394   : > { %v5431_v55 = vunpack.i.h.bf16 %v8783_v43  ;;  %v5430_v39 = vunpack.i.l.bf16 %v8783_v43  ;;  %v3354_v43 = vsel %vm1660_vm9, %v3322_v13, %v5421_v5  ;;  %v3291_v53 = vsel %vm1528_vm4, %v5656_v41, %v5335_v42 }
 0x395   : > { %v3449_v28 = vsel %vm3428_vm0, %v3416_v56, %v5445_v8  ;;  %v3450_v46 = vsel %vm3428_vm0, %v3417_v14, %v5446_v3  ;;  %v5340_v56 = vunpack.i.l.bf16 %v8689_v47 }
 0x396   : > { %v5454_v52 = vpop.permute.xlu0 %5453  ;;  %v3385_v23 = vsel %vm1726_vm11, %v3353_v30, %v5430_v39  ;;  %v3386_v44 = vsel %vm1726_vm11, %v3354_v43, %v5431_v55  ;;  %v5396_v30 = vunpack.i.h.bf16 %v8729_v17 }
 0x397   : > { %v5439_v7 = vpop.permute.xlu1 %5438  ;;  %v5456_v33 = vunpack.i.h.bf16 %v5454_v52  ;;  %v5455_v45 = vunpack.i.l.bf16 %v5454_v52  ;;  %v3323_v5 = vsel %vm1594_vm7, %v3291_v53, %v5340_v56 }
 0x398   : > { %v5441_v60 = vunpack.i.h.bf16 %v5439_v7  ;;  %v5440_v32 = vunpack.i.l.bf16 %v5439_v7 }
 0x399   : > { %v3482_v29 = vsel %vm3461_vm1, %v3449_v28, %v5455_v45  ;;  %v3483_v19 = vsel %vm3461_vm1, %v3450_v46, %v5456_v33 }
 0x39a   : > { %v5464_v4 = vpop.permute.xlu0 %5463  ;;  %v3418_v57 = vsel %vm3395_vm15, %v3385_v23, %v5440_v32  ;;  %v3419_v10 = vsel %vm3395_vm15, %v3386_v44, %v5441_v60 }
 0x39b   : > { %v5466_v50 = vunpack.i.h.bf16 %v5464_v4  ;;  %v5465_v35 = vunpack.i.l.bf16 %v5464_v4  ;;  %v5449_v20 = vpop.permute.xlu1 %5448 }
 0x39c   : > { %v5451_v54 = vunpack.i.h.bf16 %v5449_v20  ;;  %v5450_v22 = vunpack.i.l.bf16 %v5449_v20 }
 0x39d   : > { %v3515_v61 = vsel %vm3494_vm5, %v3482_v29, %v5465_v35  ;;  %v3516_v38 = vsel %vm3494_vm5, %v3483_v19, %v5466_v50  ;;  %v5655_v35 = vld [vmem:[#allocation3 + $0x128] sm:$0xff] }
 0x39e   : > { %v3537_v11 = vpack.c.bf16 %v3516_v38, %v3515_v61  ;;  %v5474_v58 = vpop.permute.xlu0 %5473  ;;  %v3451_v62 = vsel %vm3428_vm0, %v3418_v57, %v5450_v22  ;;  %v3452_v52 = vsel %vm3428_vm0, %v3419_v10, %v5451_v54  ;;  %v3292_v20 = vsel %vm1528_vm4, %v5655_v35, %v5336_v15 }
 0x39f   : > { %v5459_v34 = vpop.permute.xlu1 %5458  ;;  %v5476_v4 = vunpack.i.h.bf16 %v5474_v58  ;;  %v5475_v28 = vunpack.i.l.bf16 %v5474_v58  ;;  %v3324_v27 = vsel %vm1594_vm7, %v3292_v20, %v5341_v31 }
 0x3a0   : > { %4245 = vmatprep.mubr.msk.bf16.mxu1 %vm3570_vm6, %v3537_v11  ;;  %v5461_v21 = vunpack.i.h.bf16 %v5459_v34  ;;  %v5460_v37 = vunpack.i.l.bf16 %v5459_v34 }
 0x3a1   : > { %v3356_v55 = vsel %vm1660_vm9, %v3324_v27, %v5476_v4  ;;  %v3355_v39 = vsel %vm1660_vm9, %v3323_v5, %v5475_v28 }
 0x3a2   : > { %v5484_v0 = vpop.permute.xlu0 %5483  ;;  %v3484_v3 = vsel %vm3461_vm1, %v3451_v62, %v5460_v37  ;;  %v3485_v8 = vsel %vm3461_vm1, %v3452_v52, %v5461_v21  ;;  %v5395_v21 = vunpack.i.l.bf16 %v8729_v17 }
 0x3a3   : > { %v5469_v16 = vpop.permute.xlu1 %5468  ;;  %v5486_v46 = vunpack.i.h.bf16 %v5484_v0  ;;  %v5485_v50 = vunpack.i.l.bf16 %v5484_v0 }
 0x3a4   : > { %v5471_v48 = vunpack.i.h.bf16 %v5469_v16  ;;  %v5470_v63 = vunpack.i.l.bf16 %v5469_v16 }
 0x3a5   : > { %v3388_v36 = vsel %vm1726_vm11, %v3356_v55, %v5486_v46  ;;  %v3387_v1 = vsel %vm1726_vm11, %v3355_v39, %v5485_v50 }
 0x3a6   : > { %v3517_v7 = vsel %vm3494_vm5, %v3484_v3, %v5470_v63  ;;  %v3518_v49 = vsel %vm3494_vm5, %v3485_v8, %v5471_v48  ;;  %v5494_v12 = vpop.permute.xlu0 %5493  ;;  %v5657_v48 = vld [vmem:[#allocation3 + $0x140] sm:$0xff]  ;;  %v5658_v63 = vld [vmem:[#allocation3 + $0x138] sm:$0xff] }
 0x3a7   : > { %v3538_v33 = vpack.c.bf16 %v3518_v49, %v3517_v7  ;;  %v8826_v45 = vpop.permute.xlu1 %5478  ;;  %v5496_v29 = vunpack.i.h.bf16 %v5494_v12  ;;  %v5495_v19 = vunpack.i.l.bf16 %v5494_v12  ;;  %v3294_v17 = vsel %vm1528_vm4, %v5657_v48, %v5391_v59 }
 0x3a8   : > { %v5481_v23 = vunpack.i.h.bf16 %v8826_v45  ;;  %v5480_v44 = vunpack.i.l.bf16 %v8826_v45  ;;  %v3293_v3 = vsel %vm1528_vm4, %v5658_v63, %v5390_v9 }
 0x3a9   : > { %4246 = vmatmul.mubr.msk.bf16.gmra.mrb[20].mxu1 %vm3570_vm6, %v3538_v33  ;;  %v3420_v60 = vsel %vm3395_vm15, %v3387_v1, %v5495_v19  ;;  %v3421_v32 = vsel %vm3395_vm15, %v3388_v36, %v5496_v29  ;;  %v3325_v12 = vsel %vm1594_vm7, %v3293_v3, %v5395_v21  ;;  %v3326_v33 = vsel %vm1594_vm7, %v3294_v17, %v5396_v30 }
 0x3aa   : > { %v5504_v24 = vpop.permute.xlu0 %5503  ;;  %v3358_v42 = vsel %vm1660_vm9, %v3326_v33, %v5481_v23 }
 0x3ab   : > { %v8833_v14 = vpop.permute.xlu1 %5488  ;;  %v5506_v47 = vunpack.i.h.bf16 %v5504_v24  ;;  %v5505_v61 = vunpack.i.l.bf16 %v5504_v24  ;;  %v3357_v24 = vsel %vm1660_vm9, %v3325_v12, %v5480_v44 }
 0x3ac   : > { %v5491_v10 = vunpack.i.h.bf16 %v8833_v14  ;;  %v5490_v16 = vunpack.i.l.bf16 %v8833_v14 }
 0x3ad   : > { %v3453_v6 = vsel %vm3428_vm0, %v3420_v60, %v5505_v61  ;;  %v3454_v13 = vsel %vm3428_vm0, %v3421_v32, %v5506_v47 }
 0x3ae   : > { %v5514_v51 = vpop.permute.xlu0 %5513  ;;  %v3389_v14 = vsel %vm1726_vm11, %v3357_v24, %v5490_v16  ;;  %v3390_v4 = vsel %vm1726_vm11, %v3358_v42, %v5491_v10 }
 0x3af   : > { %v5499_v38 = vpop.permute.xlu1 %5498  ;;  %v5516_v11 = vunpack.i.h.bf16 %v5514_v51  ;;  %v5515_v58 = vunpack.i.l.bf16 %v5514_v51 }
 0x3b0   : > { %v5501_v8 = vunpack.i.h.bf16 %v5499_v38  ;;  %v5500_v7 = vunpack.i.l.bf16 %v5499_v38 }
 0x3b1   : > { %v3486_v37 = vsel %vm3461_vm1, %v3453_v6, %v5515_v58  ;;  %v3487_v26 = vsel %vm3461_vm1, %v3454_v13, %v5516_v11 }
 0x3b2   : > { %v5524_v34 = vpop.permute.xlu0 %5523  ;;  %v3422_v46 = vsel %vm3395_vm15, %v3389_v14, %v5500_v7  ;;  %v3423_v50 = vsel %vm3395_vm15, %v3390_v4, %v5501_v8 }
 0x3b3   : > { %v5526_v54 = vunpack.i.h.bf16 %v5524_v34  ;;  %v5525_v22 = vunpack.i.l.bf16 %v5524_v34  ;;  %v5509_v43 = vpop.permute.xlu1 %5508 }
 0x3b4   : > { %v5511_v45 = vunpack.i.h.bf16 %v5509_v43  ;;  %v5510_v15 = vunpack.i.l.bf16 %v5509_v43 }
 0x3b5   : > { %v3519_v0 = vsel %vm3494_vm5, %v3486_v37, %v5525_v22  ;;  %v3520_v57 = vsel %vm3494_vm5, %v3487_v26, %v5526_v54 }
 0x3b6   : > { %v3539_v62 = vpack.c.bf16 %v3520_v57, %v3519_v0  ;;  %v5534_v52 = vpop.permute.xlu0 %5533  ;;  %v3455_v20 = vsel %vm3428_vm0, %v3422_v46, %v5510_v15  ;;  %v3456_v41 = vsel %vm3428_vm0, %v3423_v50, %v5511_v45 }
 0x3b7   : > { %v5519_v49 = vpop.permute.xlu1 %5518  ;;  %v5536_v11 = vunpack.i.h.bf16 %v5534_v52  ;;  %v5535_v58 = vunpack.i.l.bf16 %v5534_v52 }
 0x3b8   : > { %4249 = vmatprep.mubr.msk.bf16.mxu1 %vm3570_vm6, %v3539_v62  ;;  %v5521_v31 = vunpack.i.h.bf16 %v5519_v49  ;;  %v5520_v56 = vunpack.i.l.bf16 %v5519_v49 }
 0x3b9   : > { %v3360_v13 = vsel %vm1660_vm9, %v8707_v40, %v5536_v11  ;;  %v3359_v54 = vsel %vm1660_vm9, %v8704_v2, %v5535_v58 }
 0x3ba   : > { %v5544_v28 = vpop.permute.xlu0 %5543  ;;  %v3488_v19 = vsel %vm3461_vm1, %v3455_v20, %v5520_v56  ;;  %v3489_v51 = vsel %vm3461_vm1, %v3456_v41, %v5521_v31 }
 0x3bb   : > { %v5529_v35 = vpop.permute.xlu1 %5528  ;;  %v5546_v36 = vunpack.i.h.bf16 %v5544_v28  ;;  %v5545_v1 = vunpack.i.l.bf16 %v5544_v28 }
 0x3bc   : > { %v5531_v53 = vunpack.i.h.bf16 %v5529_v35  ;;  %v5530_v29 = vunpack.i.l.bf16 %v5529_v35 }
 0x3bd   : > { %v3392_v30 = vsel %vm1726_vm11, %v3360_v13, %v5546_v36  ;;  %v3391_v21 = vsel %vm1726_vm11, %v3359_v54, %v5545_v1 }
 0x3be   : > { %v3521_v5 = vsel %vm3494_vm5, %v3488_v19, %v5530_v29  ;;  %v3522_v27 = vsel %vm3494_vm5, %v3489_v51, %v5531_v53  ;;  %v5554_v47 = vpop.permute.xlu0 %5553  ;;  %v8911_v51 = vld [vmem:[%s9076_s5] ss:$0 sm:$0xff] }
 0x3bf   : > { %v3540_v61 = vpack.c.bf16 %v3522_v27, %v3521_v5  ;;  %v5539_v38 = vpop.permute.xlu1 %5538  ;;  %v5556_v59 = vunpack.i.h.bf16 %v5554_v47  ;;  %v5555_v9 = vunpack.i.l.bf16 %v5554_v47  ;;  %v8916_v5 = vld [vmem:[%s9077_s6] ss:$0 sm:$0xff] }
 0x3c0   : > { %v5541_v62 = vunpack.i.h.bf16 %v5539_v38  ;;  %v5540_v52 = vunpack.i.l.bf16 %v5539_v38 }
 0x3c1   : > { %4250 = vmatmul.mubr.msk.bf16.gmra.mrb[24].mxu1 %vm3570_vm6, %v3540_v61  ;;  %v3424_v37 = vsel %vm3395_vm15, %v3391_v21, %v5555_v9  ;;  %v3425_v26 = vsel %vm3395_vm15, %v3392_v30, %v5556_v59 }
 0x3c2   : > { %v5564_v55 = vpop.permute.xlu0 %5563  ;;  %v3361_v15 = vsel %vm1660_vm9, %v8763_v18, %v5540_v52  ;;  %v3362_v42 = vsel %vm1660_vm9, %v8766_v25, %v5541_v62 }
 0x3c3   : > { %v5549_v39 = vpop.permute.xlu1 %5548  ;;  %v5566_v32 = vunpack.i.h.bf16 %v5564_v55  ;;  %v5565_v34 = vunpack.i.l.bf16 %v5564_v55 }
 0x3c4   : > { %v5551_v63 = vunpack.i.h.bf16 %v5549_v39  ;;  %v5550_v3 = vunpack.i.l.bf16 %v5549_v39 }
 0x3c5   : > { %v3457_v44 = vsel %vm3428_vm0, %v3424_v37, %v5565_v34  ;;  %v3458_v0 = vsel %vm3428_vm0, %v3425_v26, %v5566_v32 }
 0x3c6   : > { %v5574_v60 = vpop.permute.xlu0 %5573  ;;  %v3393_v56 = vsel %vm1726_vm11, %v3361_v15, %v5550_v3  ;;  %v3394_v14 = vsel %vm1726_vm11, %v3362_v42, %v5551_v63 }
 0x3c7   : > { %v5559_v6 = vpop.permute.xlu1 %5558  ;;  %v5576_v22 = vunpack.i.h.bf16 %v5574_v60  ;;  %v5575_v43 = vunpack.i.l.bf16 %v5574_v60 }
 0x3c8   : > { %v5561_v7 = vunpack.i.h.bf16 %v5559_v6  ;;  %v5560_v49 = vunpack.i.l.bf16 %v5559_v6 }
 0x3c9   : > { %v3490_v2 = vsel %vm3461_vm1, %v3457_v44, %v5575_v43  ;;  %v3491_v16 = vsel %vm3461_vm1, %v3458_v0, %v5576_v22 }
 0x3ca   : > { %v5584_v23 = vpop.permute.xlu0 %5583  ;;  %v3426_v4 = vsel %vm3395_vm15, %v3393_v56, %v5560_v49  ;;  %v3427_v28 = vsel %vm3395_vm15, %v3394_v14, %v5561_v7 }
 0x3cb   : > { %v5586_v57 = vunpack.i.h.bf16 %v5584_v23  ;;  %v5585_v40 = vunpack.i.l.bf16 %v5584_v23  ;;  %v5569_v10 = vpop.permute.xlu1 %5568 }
 0x3cc   : > { %v5571_v33 = vunpack.i.h.bf16 %v5569_v10  ;;  %v5570_v45 = vunpack.i.l.bf16 %v5569_v10 }
 0x3cd   : > { %v3523_v48 = vsel %vm3494_vm5, %v3490_v2, %v5585_v40  ;;  %v3524_v17 = vsel %vm3494_vm5, %v3491_v16, %v5586_v57 }
 0x3ce   : > { %v3541_v8 = vpack.c.bf16 %v3524_v17, %v3523_v48  ;;  %v3459_v50 = vsel %vm3428_vm0, %v3426_v4, %v5570_v45  ;;  %v3460_v18 = vsel %vm3428_vm0, %v3427_v28, %v5571_v33 }
 0x3cf   : > { %v5579_v12 = vpop.permute.xlu1 %5578 }
 0x3d0   : > { %4253 = vmatprep.mubr.msk.bf16.mxu1 %vm3570_vm6, %v3541_v8  ;;  %v5581_v24 = vunpack.i.h.bf16 %v5579_v12  ;;  %v5580_v31 = vunpack.i.l.bf16 %v5579_v12 }
 0x3d2   : > { %v3492_v25 = vsel %vm3461_vm1, %v3459_v50, %v5580_v31  ;;  %v3493_v41 = vsel %vm3461_vm1, %v3460_v18, %v5581_v24 }
 0x3d3   : > { %v5589_v46 = vpop.permute.xlu1 %5588 }
 0x3d4   : > { %v5591_v35 = vunpack.i.h.bf16 %v5589_v46  ;;  %v5590_v20 = vunpack.i.l.bf16 %v5589_v46 }
 0x3d6   : > { %v3525_v53 = vsel %vm3494_vm5, %v3492_v25, %v5590_v20  ;;  %v3526_v29 = vsel %vm3494_vm5, %v3493_v41, %v5591_v35 }
 0x3d7   : > { %v3542_v19 = vpack.c.bf16 %v3526_v29, %v3525_v53 }
 0x3d9   : > { %4254 = vmatmul.mubr.msk.bf16.gmra.mrb[28].mxu1 %vm3570_vm6, %v3542_v19 }
 0x3df   : > { %v4227_v27 = vpop.f32.mrb[0].mxu1 }
 0x3e0   : > { %v3792_v47 = vmul.f32 %v4227_v27, %v8911_v51  ;;  %v3657_v61 = vpop.f32.mrb[1].mxu1 }
 0x3e1   : > { %v3790_v38 = vmul.f32 %v8911_v51, %v3657_v61  ;;  %v4228_v55 = vpop.f32.mrb[2].mxu1 }
 0x3e2   : > { %v3830_v39 = vadd.f32 %v8916_v5, %v3792_v47  ;;  %v3793_v11 = vmul.f32 %v4228_v55, %v8911_v51  ;;  %v3660_v58 = vpop.f32.mrb[3].mxu1 }
 0x3e3   : > { %v3828_v36 = vadd.f32 %v8916_v5, %v3790_v38  ;;  %v3791_v1 = vmul.f32 %v8911_v51, %v3660_v58 }
 0x3e4   : > { %v3862_v59 = vmax.f32 %v3830_v39, 0.0  ;;  %v3831_v9 = vadd.f32 %v8916_v5, %v3793_v11 }
 0x3e5   : > { %v3860_v60 = vmax.f32 %v3828_v36, 0.0  ;;  %v3829_v32 = vadd.f32 %v8916_v5, %v3791_v1 }
 0x3e6   : > { %3894 = vst [vmem:[%s8928_s16 + $0x10] sm:$0xff] %v3862_v59  ;;  %v3863_v34 = vmax.f32 %v3831_v9, 0.0 }
 0x3e7   : > { %3892 = vst [vmem:[%s8928_s16] sm:$0xff] %v3860_v60  ;;  %v3861_v6 = vmax.f32 %v3829_v32, 0.0 }
 0x3e8   : > { %3895 = vst [vmem:[%s8928_s16 + $0x18] sm:$0xff] %v3863_v34 }
 0x3e9   : > { %3893 = vst [vmem:[%s8928_s16 + $0x8] sm:$0xff] %v3861_v6 }
 0x3ff   : > { %v4231_v13 = vpop.f32.mrb[4].mxu1 }
 0x400   : > { %v3796_v54 = vmul.f32 %v4231_v13, %v8911_v51  ;;  %v3673_v22 = vpop.f32.mrb[5].mxu1 }
 0x401   : > { %v3794_v43 = vmul.f32 %v8911_v51, %v3673_v22  ;;  %v4232_v30 = vpop.f32.mrb[6].mxu1 }
 0x402   : > { %v3834_v21 = vadd.f32 %v8916_v5, %v3796_v54  ;;  %v3797_v37 = vmul.f32 %v4232_v30, %v8911_v51  ;;  %v3676_v26 = vpop.f32.mrb[7].mxu1 }
 0x403   : > { %v3832_v23 = vadd.f32 %v8916_v5, %v3794_v43  ;;  %v3795_v44 = vmul.f32 %v8911_v51, %v3676_v26 }
 0x404   : > { %v3866_v0 = vmax.f32 %v3834_v21, 0.0  ;;  %v3835_v57 = vadd.f32 %v8916_v5, %v3797_v37 }
 0x405   : > { %v3864_v40 = vmax.f32 %v3832_v23, 0.0  ;;  %v3833_v10 = vadd.f32 %v8916_v5, %v3795_v44 }
 0x406   : > { %3898 = vst [vmem:[%s8928_s16 + $0x30] sm:$0xff] %v3866_v0  ;;  %v3867_v2 = vmax.f32 %v3835_v57, 0.0 }
 0x407   : > { %3896 = vst [vmem:[%s8928_s16 + $0x20] sm:$0xff] %v3864_v40  ;;  %v3865_v16 = vmax.f32 %v3833_v10, 0.0 }
 0x408   : > { %3899 = vst [vmem:[%s8928_s16 + $0x38] sm:$0xff] %v3867_v2 }
 0x409   : > { %3897 = vst [vmem:[%s8928_s16 + $0x28] sm:$0xff] %v3865_v16 }
 0x41f   : > { %v4235_v62 = vpop.f32.mrb[8].mxu1 }
 0x420   : > { %v3800_v52 = vmul.f32 %v4235_v62, %v8911_v51  ;;  %v3689_v48 = vpop.f32.mrb[9].mxu1 }
 0x421   : > { %v3798_v17 = vmul.f32 %v8911_v51, %v3689_v48  ;;  %v4236_v63 = vpop.f32.mrb[10].mxu1 }
 0x422   : > { %v3838_v3 = vadd.f32 %v8916_v5, %v3800_v52  ;;  %v3801_v8 = vmul.f32 %v4236_v63, %v8911_v51  ;;  %v3692_v7 = vpop.f32.mrb[11].mxu1 }
 0x423   : > { %v3836_v49 = vadd.f32 %v8916_v5, %v3798_v17  ;;  %v3799_v12 = vmul.f32 %v8911_v51, %v3692_v7 }
 0x424   : > { %v3870_v33 = vmax.f32 %v3838_v3, 0.0  ;;  %v3839_v45 = vadd.f32 %v8916_v5, %v3801_v8 }
 0x425   : > { %v3868_v15 = vmax.f32 %v3836_v49, 0.0  ;;  %v3837_v42 = vadd.f32 %v8916_v5, %v3799_v12 }
 0x426   : > { %3902 = vst [vmem:[%s8928_s16 + $0x50] sm:$0xff] %v3870_v33  ;;  %v3871_v24 = vmax.f32 %v3839_v45, 0.0 }
 0x427   : > { %3900 = vst [vmem:[%s8928_s16 + $0x40] sm:$0xff] %v3868_v15  ;;  %v3869_v31 = vmax.f32 %v3837_v42, 0.0 }
 0x428   : > { %3903 = vst [vmem:[%s8928_s16 + $0x58] sm:$0xff] %v3871_v24 }
 0x429   : > { %3901 = vst [vmem:[%s8928_s16 + $0x48] sm:$0xff] %v3869_v31 }
 0x43f   : > { %v4239_v56 = vpop.f32.mrb[12].mxu1 }
 0x440   : > { %v3804_v14 = vmul.f32 %v4239_v56, %v8911_v51  ;;  %v3705_v4 = vpop.f32.mrb[13].mxu1 }
 0x441   : > { %v3802_v28 = vmul.f32 %v8911_v51, %v3705_v4  ;;  %v4240_v46 = vpop.f32.mrb[14].mxu1 }
 0x442   : > { %v3842_v50 = vadd.f32 %v8916_v5, %v3804_v14  ;;  %v3805_v18 = vmul.f32 %v4240_v46, %v8911_v51  ;;  %v3708_v35 = vpop.f32.mrb[15].mxu1 }
 0x443   : > { %v3840_v20 = vadd.f32 %v8916_v5, %v3802_v28  ;;  %v3803_v25 = vmul.f32 %v8911_v51, %v3708_v35 }
 0x444   : > { %v3874_v41 = vmax.f32 %v3842_v50, 0.0  ;;  %v3843_v53 = vadd.f32 %v8916_v5, %v3805_v18 }
 0x445   : > { %v3872_v29 = vmax.f32 %v3840_v20, 0.0  ;;  %v3841_v19 = vadd.f32 %v8916_v5, %v3803_v25 }
 0x446   : > { %3906 = vst [vmem:[%s8928_s16 + $0x70] sm:$0xff] %v3874_v41  ;;  %v3875_v27 = vmax.f32 %v3843_v53, 0.0 }
 0x447   : > { %3904 = vst [vmem:[%s8928_s16 + $0x60] sm:$0xff] %v3872_v29  ;;  %v3873_v47 = vmax.f32 %v3841_v19, 0.0 }
 0x448   : > { %3907 = vst [vmem:[%s8928_s16 + $0x78] sm:$0xff] %v3875_v27 }
 0x449   : > { %3905 = vst [vmem:[%s8928_s16 + $0x68] sm:$0xff] %v3873_v47 }
 0x464   : > { %v4243_v61 = vpop.f32.mrb[16].mxu1 }
 0x465   : > { %v3808_v38 = vmul.f32 %v4243_v61, %v8911_v51  ;;  %v3721_v55 = vpop.f32.mrb[17].mxu1 }
 0x466   : > { %v3806_v39 = vmul.f32 %v8911_v51, %v3721_v55  ;;  %v4244_v11 = vpop.f32.mrb[18].mxu1 }
 0x467   : > { %v3846_v58 = vadd.f32 %v8916_v5, %v3808_v38  ;;  %v3809_v36 = vmul.f32 %v4244_v11, %v8911_v51  ;;  %v3724_v1 = vpop.f32.mrb[19].mxu1 }
 0x468   : > { %v3844_v59 = vadd.f32 %v8916_v5, %v3806_v39  ;;  %v3807_v9 = vmul.f32 %v8911_v51, %v3724_v1 }
 0x469   : > { %v3878_v60 = vmax.f32 %v3846_v58, 0.0  ;;  %v3847_v32 = vadd.f32 %v8916_v5, %v3809_v36 }
 0x46a   : > { %v3876_v34 = vmax.f32 %v3844_v59, 0.0  ;;  %v3845_v6 = vadd.f32 %v8916_v5, %v3807_v9 }
 0x46b   : > { %3910 = vst [vmem:[%s8928_s16 + $0x90] sm:$0xff] %v3878_v60  ;;  %v3879_v13 = vmax.f32 %v3847_v32, 0.0 }
 0x46c   : > { %3908 = vst [vmem:[%s8928_s16 + $0x80] sm:$0xff] %v3876_v34  ;;  %v3877_v54 = vmax.f32 %v3845_v6, 0.0 }
 0x46d   : > { %3911 = vst [vmem:[%s8928_s16 + $0x98] sm:$0xff] %v3879_v13 }
 0x46e   : > { %3909 = vst [vmem:[%s8928_s16 + $0x88] sm:$0xff] %v3877_v54 }
 0x47c   : > { %v4247_v22 = vpop.f32.mrb[20].mxu1 }
 0x47d   : > { %v3812_v43 = vmul.f32 %v4247_v22, %v8911_v51  ;;  %v3737_v30 = vpop.f32.mrb[21].mxu1 }
 0x47e   : > { %v3810_v21 = vmul.f32 %v8911_v51, %v3737_v30  ;;  %v4248_v37 = vpop.f32.mrb[22].mxu1 }
 0x47f   : > { %v3850_v26 = vadd.f32 %v8916_v5, %v3812_v43  ;;  %v3813_v23 = vmul.f32 %v4248_v37, %v8911_v51  ;;  %v3740_v44 = vpop.f32.mrb[23].mxu1 }
 0x480   : > { %v3848_v0 = vadd.f32 %v8916_v5, %v3810_v21  ;;  %v3811_v57 = vmul.f32 %v8911_v51, %v3740_v44 }
 0x481   : > { %v3882_v40 = vmax.f32 %v3850_v26, 0.0  ;;  %v3851_v10 = vadd.f32 %v8916_v5, %v3813_v23 }
 0x482   : > { %v3880_v2 = vmax.f32 %v3848_v0, 0.0  ;;  %v3849_v16 = vadd.f32 %v8916_v5, %v3811_v57 }
 0x483   : > { %3914 = vst [vmem:[%s8928_s16 + $0xb0] sm:$0xff] %v3882_v40  ;;  %v3883_v62 = vmax.f32 %v3851_v10, 0.0 }
 0x484   : > { %3912 = vst [vmem:[%s8928_s16 + $0xa0] sm:$0xff] %v3880_v2  ;;  %v3881_v52 = vmax.f32 %v3849_v16, 0.0 }
 0x485   : > { %3915 = vst [vmem:[%s8928_s16 + $0xb8] sm:$0xff] %v3883_v62 }
 0x486   : > { %3913 = vst [vmem:[%s8928_s16 + $0xa8] sm:$0xff] %v3881_v52 }
 0x494   : > { %v4251_v48 = vpop.f32.mrb[24].mxu1 }
 0x495   : > { %v3816_v17 = vmul.f32 %v4251_v48, %v8911_v51  ;;  %v3753_v63 = vpop.f32.mrb[25].mxu1 }
 0x496   : > { %v3814_v3 = vmul.f32 %v8911_v51, %v3753_v63  ;;  %v4252_v8 = vpop.f32.mrb[26].mxu1 }
 0x497   : > { %v3854_v7 = vadd.f32 %v8916_v5, %v3816_v17  ;;  %v3817_v49 = vmul.f32 %v4252_v8, %v8911_v51  ;;  %v3756_v12 = vpop.f32.mrb[27].mxu1 }
 0x498   : > { %v3852_v33 = vadd.f32 %v8916_v5, %v3814_v3  ;;  %v3815_v45 = vmul.f32 %v8911_v51, %v3756_v12 }
 0x499   : > { %v3886_v15 = vmax.f32 %v3854_v7, 0.0  ;;  %v3855_v42 = vadd.f32 %v8916_v5, %v3817_v49 }
 0x49a   : > { %v3884_v24 = vmax.f32 %v3852_v33, 0.0  ;;  %v3853_v31 = vadd.f32 %v8916_v5, %v3815_v45 }
 0x49b   : > { %3918 = vst [vmem:[%s8928_s16 + $0xd0] sm:$0xff] %v3886_v15  ;;  %v3887_v56 = vmax.f32 %v3855_v42, 0.0 }
 0x49c   : > { %3916 = vst [vmem:[%s8928_s16 + $0xc0] sm:$0xff] %v3884_v24  ;;  %v3885_v14 = vmax.f32 %v3853_v31, 0.0 }
 0x49d   : > { %3919 = vst [vmem:[%s8928_s16 + $0xd8] sm:$0xff] %v3887_v56 }
 0x49e   : > { %3917 = vst [vmem:[%s8928_s16 + $0xc8] sm:$0xff] %v3885_v14 }
 0x4ac   : > { %v4255_v4 = vpop.f32.mrb[28].mxu1 }
 0x4ad   : > { %v3820_v28 = vmul.f32 %v4255_v4, %v8911_v51  ;;  %v3769_v46 = vpop.f32.mrb[29].mxu1 }
 0x4ae   : > { %v3818_v50 = vmul.f32 %v8911_v51, %v3769_v46  ;;  %v4256_v18 = vpop.f32.mrb[30].mxu1 }
 0x4af   : > { %v3858_v35 = vadd.f32 %v8916_v5, %v3820_v28  ;;  %v3821_v20 = vmul.f32 %v4256_v18, %v8911_v51  ;;  %v3772_v25 = vpop.f32.mrb[31].mxu1 }
 0x4b0   : > { %v3856_v41 = vadd.f32 %v8916_v5, %v3818_v50  ;;  %v3819_v53 = vmul.f32 %v8911_v51, %v3772_v25 }
 0x4b1   : > { %v3890_v29 = vmax.f32 %v3858_v35, 0.0  ;;  %v3859_v19 = vadd.f32 %v8916_v5, %v3821_v20 }
 0x4b2   : > { %v3888_v27 = vmax.f32 %v3856_v41, 0.0  ;;  %v3857_v47 = vadd.f32 %v8916_v5, %v3819_v53 }
 0x4b3   : > { %3922 = vst [vmem:[%s8928_s16 + $0xf0] sm:$0xff] %v3890_v29  ;;  %v3891_v61 = vmax.f32 %v3859_v19, 0.0 }
 0x4b4   : > { %3920 = vst [vmem:[%s8928_s16 + $0xe0] sm:$0xff] %v3888_v27  ;;  %v3889_v38 = vmax.f32 %v3857_v47, 0.0 }
 0x4b5   : > { %3923 = vst [vmem:[%s8928_s16 + $0xf8] sm:$0xff] %v3891_v61 }
 0x4b6   : > { %3921 = vst [vmem:[%s8928_s16 + $0xe8] sm:$0xff] %v3889_v38 }
 0x4b7   : > { %5672 = shalt.err (!%p5669_p3)
}
 0x4b8   : > { %s5673_s21 = scalar_lea.hbm %s9020_s18, 4096  ;;  %s5677_s16 = scalar_lea.hbm %s9078_s7, 8192 }
 0x4b9   : > { %p5674_p4 = scmp.ne.s32.totalorder %s9020_s18, %s5673_s21  ;;  %p5678_p9 = scmp.lt.u32.totalorder %s9020_s18, %s9078_s7 }
 0x4ba   : > { %p5679_p10 = scmp.lt.u32.totalorder %s5677_s16, %s5673_s21  ;;  %p5681_p12 = scmp.lt.u32.totalorder %s5673_s21, %s9020_s18 }
 0x4bb   : > { %p5675_p7 = pnand %p5674_p4, %p5816_p5 }
 0x4bc   : > { %p5680_p11 = por %p5679_p10, %p5678_p9 }
 0x4bd   : > { %p5676_p8 = pneg %p5675_p7 }
 0x4be   : > { %p5682_p13 = por %p5681_p12, %p5680_p11 }
 0x4c0   : > { %p5683_p0 = pnand %p5682_p13, %p5676_p8 }
 0x4c2   : > { %5686 = shalt.err (!%p5683_p0)
}
 0x4c3   : > { %s5737_s15 = smov 128  }
 0x4c4   : > { %4259 = dma.vmem_to_hbm [thread:$0]  (%p5816_p5), %s9023_s29, 4096, %s9020_s18, %s9029_s28, %s5737_s15, %s5737_s15, %s5725_s19  }
 0x4c5 PF: > { %p4265_p1 = scmp.ge.s32.totalorder %s5721_s27, 2  ;;  %s3953_s20 = sand.u32 1, %s5709_s24  }
 0x4c6   : > { %s3954_s23 = scalar_lea.sflag [#allocation5], %s3953_s20 }
 0x4c7   : > { %p4262_p2 = pnand %p4265_p1, %p5820_p6 }
 0x4c9   : > { %5704 = dma.done.wait (!%p4262_p2), %s3954_s23, 4096  }
 0x4ca   : > { %5706 = vsyncadd (!%p4262_p2), %s3954_s23, 4294963200  ;;  %p17_p3 = scmp.ge.s32.totalorder %s5803_s30, 4   ;;  %s9330_s24 = smov %s5713_s25 }
 0x4cb   : > { %s9331_s25 = smov %s5717_s26  ;;  %s9332_s26 = smov %s5814_s10 }
 0x4cc   : > { %s9333_s27 = smov %s5803_s30  ;;  %19 = sbr.rel (!%p17_p3) target bundleno = 3 (0x3), region = 85 }
 0x4d3   :  { %3959 = vsyncpa [#allocation5], 1 }
 0x4d4   :  { %3961 = vsyncpa [#allocation5 + $0x1], 1 }

</bundles_post_ra>
